<compile_context>
chip_gen: v7x
topology: tpu7x:2x2x1
jax: 0.10.0
libtpu: 0.0.40
codegen_flags: <defaults>
</compile_context>

<pallas_src>
import functools

import jax
import jax.numpy as jnp
from jax import lax
from jax.experimental import pallas as pl
from jax.experimental.pallas import tpu as pltpu


def _round_up(x, m):
    return ((x + m - 1) // m) * m


# ---------------------------------------------------------------------------
# Kernel 1: direct conv (stride == 1).  One grid step = one (image, row-tile,
# Cout-tile).  The kernel slices the KH*KW taps out of a VMEM-resident halo'd
# input block and accumulates KH*KW matmuls into an f32 accumulator, then fuses
# bias + activation and writes a lane-dense (Cout padded to x128) output block.
# ---------------------------------------------------------------------------
def _conv_direct_kernel(x_ref, w_ref, b_ref, o_ref, *, kh, kw, th, w_out, activation):
    # x_ref: (1, 1, th+kh-1, W_pad, Cin)   compute dtype (bf16 by default)
    # w_ref: (kh*kw, Cin, TN)              compute dtype (VMEM-resident panel)
    # b_ref: (1, TN)                       f32 (conv bias with BN folded in)
    # o_ref: (1, th, w_out, TN)            f32
    cin = x_ref.shape[-1]
    tn = w_ref.shape[-1]
    acc = jnp.zeros((th * w_out, tn), jnp.float32)
    for i in range(kh):                      # static tap loops (kernel size)
        for j in range(kw):
            patch = x_ref[0, 0, i:i + th, j:j + w_out, :]      # (th, w_out, Cin)
            patch = patch.reshape(th * w_out, cin)
            acc = acc + jnp.dot(patch, w_ref[i * kw + j],
                                preferred_element_type=jnp.float32)
    out = acc + b_ref[...]                   # f32 epilogue (v5e-safe)
    if activation == "relu":
        out = jnp.maximum(out, 0.0)
    elif activation == "silu":
        out = out * jax.nn.sigmoid(out)
    o_ref[...] = out.reshape(1, th, w_out, tn).astype(o_ref.dtype)


# ---------------------------------------------------------------------------
# Kernel 2: fused im2col matmul (stride > 1 fallback).  Full-K, W-resident:
# out = act(LHS @ W + b) in a single dot per (M-tile, Cout-tile) grid step.
# No reduction grid axis -> no accumulator scratch, no pl.when machinery.
# ---------------------------------------------------------------------------
def _matmul_bias_act_kernel(lhs_ref, w_ref, b_ref, o_ref, *, activation):
    out = jnp.dot(lhs_ref[...], w_ref[...], preferred_element_type=jnp.float32)
    out = out + b_ref[...]
    if activation == "relu":
        out = jnp.maximum(out, 0.0)
    elif activation == "silu":
        out = out * jax.nn.sigmoid(out)
    o_ref[...] = out.astype(o_ref.dtype)


def _conv_direct(x_pad, w_f, b_f, n, h_out, w_out, cin, cout, c_pad, kh, kw,
                 activation, compute_dtype):
    """stride == 1 path: no im2col materialization."""
    w_pad_cols = x_pad.shape[2]
    itemsize = jnp.dtype(compute_dtype).itemsize

    # ---- output-row tile: ~1024 matmul rows per grid step.
    th = min(h_out, max(1, 1024 // max(1, w_out)))
    # shrink if the haloed input block would be too big for comfortable VMEM use
    while th > 1 and (th + kh - 1) * w_pad_cols * cin * itemsize > 12 * 1024 * 1024:
        th = max(1, th // 2)
    # give v7x's 2 TensorCores work even at batch 1
    if n * ((h_out + th - 1) // th) < 2 and h_out >= 2:
        th = (h_out + 1) // 2
    n_hblocks = (h_out + th - 1) // th
    h_out_pad = n_hblocks * th
    th_in = th + kh - 1

    # ---- Cout tile: keep the whole weight panel VMEM-resident when it fits.
    if kh * kw * cin * c_pad * itemsize <= 8 * 1024 * 1024:
        tn = c_pad
    elif c_pad % 256 == 0:
        tn = 256
    else:
        tn = 128

    # ---- wrapper-side restructuring (only ~1x input size, not KH*KW x):
    # pad extra bottom rows so every halo window is in range, then stack the
    # per-tile halo windows along a new axis so BlockSpec blocks never overlap.
    extra_rows = (h_out_pad + kh - 1) - x_pad.shape[1]
    if extra_rows > 0:
        x_pad = jnp.pad(x_pad, ((0, 0), (0, extra_rows), (0, 0), (0, 0)))
    blocks = [x_pad[:, hb * th: hb * th + th_in] for hb in range(n_hblocks)]
    x_halo = jnp.stack(blocks, axis=1)       # (N, n_hblocks, th_in, W_pad, Cin)

    # weights: (Cout, Cin, KH, KW) -> (KH*KW, Cin, Cout_pad)
    w_taps = jnp.transpose(w_f, (2, 3, 1, 0)).reshape(kh * kw, cin, cout)
    w_taps = jnp.pad(w_taps, ((0, 0), (0, 0), (0, c_pad - cout))).astype(compute_dtype)
    b_row = jnp.pad(b_f, (0, c_pad - cout)).reshape(1, c_pad)          # f32

    # ---- VMEM budget from the actual double-buffered block footprint.
    x_blk = th_in * w_pad_cols * cin * itemsize
    w_blk = kh * kw * cin * tn * itemsize
    o_blk = th * w_out * tn * 4
    footprint = 2 * (x_blk + w_blk + tn * 4 + o_blk) + o_blk            # + f32 acc
    vmem_limit = int(min(48 * 1024 * 1024, max(16 * 1024 * 1024, 2 * footprint)))

    kernel = functools.partial(_conv_direct_kernel, kh=kh, kw=kw, th=th,
                               w_out=w_out, activation=activation)
    out = pl.pallas_call(
        kernel,
        out_shape=jax.ShapeDtypeStruct((n, h_out_pad, w_out, c_pad), jnp.float32),
        grid_spec=pltpu.PrefetchScalarGridSpec(
            num_scalar_prefetch=0,
            grid=(n, n_hblocks, c_pad // tn),
            in_specs=[
                pl.BlockSpec((1, 1, th_in, w_pad_cols, cin),
                             lambda b, hb, j: (b, hb, 0, 0, 0)),
                pl.BlockSpec((kh * kw, cin, tn), lambda b, hb, j: (0, 0, j)),
                pl.BlockSpec((1, tn), lambda b, hb, j: (0, j)),
            ],
            out_specs=pl.BlockSpec((1, th, w_out, tn), lambda b, hb, j: (b, hb, 0, j)),
        ),
        compiler_params=pltpu.CompilerParams(
            dimension_semantics=("parallel", "parallel", "parallel"),
            vmem_limit_bytes=vmem_limit,
        ),
    )(x_halo, w_taps, b_row)

    return out[:, :h_out, :, :cout]          # (N, H_out, W_out, Cout), NHWC


def _conv_im2col(x_pad, w_f, b_f, n, h_out, w_out, cin, cout, c_pad, kh, kw,
                 stride, activation, compute_dtype):
    """stride > 1 fallback: im2col (decimated by stride, so only ~KH*KW/stride^2 x)."""
    cols = []
    for i in range(kh):                      # static (kernel size) loops
        for j in range(kw):
            cols.append(lax.slice(
                x_pad, (0, i, j, 0),
                (n, i + (h_out - 1) * stride + 1, j + (w_out - 1) * stride + 1, cin),
                (1, stride, stride, 1)))
    patches = jnp.concatenate(cols, axis=-1)                 # (N, Ho, Wo, K)
    k_dim = kh * kw * cin
    m_dim = n * h_out * w_out
    lhs = patches.reshape(m_dim, k_dim)

    w_mat = jnp.transpose(w_f, (2, 3, 1, 0)).reshape(k_dim, cout)

    itemsize = jnp.dtype(compute_dtype).itemsize
    k_pad = _round_up(k_dim, 128)
    if m_dim >= 2048:
        tm = 512
    elif m_dim >= 512:
        tm = 256
    else:
        tm = 128
    m_pad = _round_up(m_dim, tm)
    # keep the whole weight panel resident when it fits (LHS streams exactly once)
    if k_pad * c_pad * itemsize <= 8 * 1024 * 1024:
        tn = c_pad
    elif c_pad % 256 == 0:
        tn = 256
    else:
        tn = 128
    # TODO(synk): add K tiling for very large k_pad*tn weight panels (>8 MiB).

    lhs = jnp.pad(lhs, ((0, m_pad - m_dim), (0, k_pad - k_dim))).astype(compute_dtype)
    w_mat = jnp.pad(w_mat, ((0, k_pad - k_dim), (0, c_pad - cout))).astype(compute_dtype)
    b_row = jnp.pad(b_f, (0, c_pad - cout)).reshape(1, c_pad)          # f32

    footprint = 2 * (tm * k_pad * itemsize + k_pad * tn * itemsize
                     + tn * 4 + tm * tn * 4)
    vmem_limit = int(min(48 * 1024 * 1024, max(16 * 1024 * 1024, 2 * footprint)))

    kernel = functools.partial(_matmul_bias_act_kernel, activation=activation)
    out = pl.pallas_call(
        kernel,
        out_shape=jax.ShapeDtypeStruct((m_pad, c_pad), jnp.float32),
        grid_spec=pltpu.PrefetchScalarGridSpec(
            num_scalar_prefetch=0,
            grid=(m_pad // tm, c_pad // tn),
            in_specs=[
                pl.BlockSpec((tm, k_pad), lambda i, j: (i, 0)),
                pl.BlockSpec((k_pad, tn), lambda i, j: (0, j)),
                pl.BlockSpec((1, tn), lambda i, j: (0, j)),
            ],
            out_specs=pl.BlockSpec((tm, tn), lambda i, j: (i, j)),
        ),
        compiler_params=pltpu.CompilerParams(
            dimension_semantics=("parallel", "parallel"),
            vmem_limit_bytes=vmem_limit,
        ),
    )(lhs, w_mat, b_row)

    return out[:m_dim, :cout].reshape(n, h_out, w_out, cout)          # NHWC


def base_conv_forward(x_nchw, weight_oihw, bias, *, stride=1,
                      use_bn=False, bn_gamma=None, bn_beta=None,
                      bn_mean=None, bn_var=None, bn_eps=1e-5,
                      activation=None, use_bf16=True, nhwc_output=False):
    """Equivalent of BaseConv.forward.  x_nchw: (N, Cin, H, W) float32; NCHW out."""
    n, cin, h, w = x_nchw.shape
    cout, cin_w, kh, kw = weight_oihw.shape
    assert cin == cin_w
    assert kh == kw, "BaseConv uses square kernels (padding = kernel // 2)"
    pad = kh // 2                                   # PyTorch: padding = kernel // 2
    h_out = (h + 2 * pad - kh) // stride + 1
    w_out = (w + 2 * pad - kw) // stride + 1
    if activation not in (None, "relu", "silu"):
        # TODO(synk): only relu / silu are wired into the fused epilogue.
        raise NotImplementedError(activation)

    compute_dtype = jnp.bfloat16 if use_bf16 else jnp.float32

    # Fold (inference-mode) BatchNorm affine into the conv weight / bias once.
    w_f = weight_oihw.astype(jnp.float32)
    b_f = bias.astype(jnp.float32)
    if use_bn:
        mean = jnp.zeros((cout,), jnp.float32) if bn_mean is None else bn_mean.astype(jnp.float32)
        var = jnp.ones((cout,), jnp.float32) if bn_var is None else bn_var.astype(jnp.float32)
        scale = bn_gamma.astype(jnp.float32) / jnp.sqrt(var + bn_eps)
        w_f = w_f * scale[:, None, None, None]
        b_f = scale * (b_f - mean) + bn_beta.astype(jnp.float32)

    c_pad = _round_up(cout, 128)

    # NHWC + spatial zero-padding, in the matmul compute dtype (halves DMA bytes).
    x_nhwc = jnp.transpose(x_nchw, (0, 2, 3, 1)).astype(compute_dtype)
    x_pad = jnp.pad(x_nhwc, ((0, 0), (pad, pad), (pad, pad), (0, 0)))

    if stride == 1:
        out_nhwc = _conv_direct(x_pad, w_f, b_f, n, h_out, w_out, cin, cout, c_pad,
                                kh, kw, activation, compute_dtype)
    else:
        out_nhwc = _conv_im2col(x_pad, w_f, b_f, n, h_out, w_out, cin, cout, c_pad,
                                kh, kw, stride, activation, compute_dtype)

    if nhwc_output:
        # TODO(synk): NHWC output avoids one full HBM round trip when the consumer
        # can take channels-last; default stays NCHW to match the PyTorch module.
        return out_nhwc
    return jnp.transpose(out_nhwc, (0, 3, 1, 2))    # back to NCHW


def _reference(x, weight, bias, *, stride, activation, use_bn,
               gamma=None, beta=None, eps=1e-5):
    pad = weight.shape[2] // 2
    w_hwio = jnp.transpose(weight, (2, 3, 1, 0))
    x_nhwc = jnp.transpose(x, (0, 2, 3, 1))
    y = lax.conv_general_dilated(
        x_nhwc, w_hwio, window_strides=(stride, stride),
        padding=((pad, pad), (pad, pad)),
        dimension_numbers=("NHWC", "HWIO", "NHWC"),
        precision=lax.Precision.HIGHEST)
    y = y + bias.reshape(1, 1, 1, -1)
    if use_bn:   # fresh BatchNorm2d (running_mean=0, running_var=1) in eval mode
        y = gamma.reshape(1, 1, 1, -1) * y / jnp.sqrt(1.0 + eps) + beta.reshape(1, 1, 1, -1)
    if activation == "relu":
        y = jnp.maximum(y, 0.0)
    elif activation == "silu":
        y = y * jax.nn.sigmoid(y)
    return jnp.transpose(y, (0, 3, 1, 2))


if __name__ == "__main__":
    # BaseConv(in_channels=4, out_channels=8, kernel=3)
    N, CIN, COUT, H, W, K = 2, 4, 8, 16, 16, 3

    key = jax.random.PRNGKey(0)
    kx, kw_ = jax.random.split(key)
    x = jax.random.normal(kx, (N, CIN, H, W), dtype=jnp.float32)

    # conv.weight ~ N(0, 0.01), conv.bias = 0, bn.weight = 1, bn.bias = 0
    conv_w = 0.01 * jax.random.normal(kw_, (COUT, CIN, K, K), dtype=jnp.float32)
    conv_b = jnp.zeros((COUT,), jnp.float32)
    bn_gamma = jnp.ones((COUT,), jnp.float32)
    bn_beta = jnp.zeros((COUT,), jnp.float32)

    # Case 1: stride=1, no BN, no activation (direct in-kernel tap path, bf16 MXU).
    out1 = base_conv_forward(x, conv_w, conv_b, stride=1,
                             use_bn=False, activation=None)
    out1 = jax.block_until_ready(out1)
    ref1 = _reference(x, conv_w, conv_b, stride=1, activation=None, use_bn=False)
    assert out1.shape == ref1.shape == (N, COUT, H, W), (out1.shape, ref1.shape)
    assert jnp.allclose(out1, ref1, rtol=1e-2, atol=2e-3), (
        "case1 max abs diff:", float(jnp.max(jnp.abs(out1 - ref1))))

    # Case 2: stride=2, BN folded, ReLU fused (strided im2col fallback path).
    out2 = base_conv_forward(x, conv_w, conv_b, stride=2,
                             use_bn=True, bn_gamma=bn_gamma, bn_beta=bn_beta,
                             activation="relu")
    out2 = jax.block_until_ready(out2)
    ref2 = _reference(x, conv_w, conv_b, stride=2, activation="relu",
                      use_bn=True, gamma=bn_gamma, beta=bn_beta)
    assert out2.shape == ref2.shape == (N, COUT, H // 2, W // 2), (out2.shape, ref2.shape)
    assert jnp.allclose(out2, ref2, rtol=1e-2, atol=2e-3), (
        "case2 max abs diff:", float(jnp.max(jnp.abs(out2 - ref2))))

    print("KERNEL_OK")
</pallas_src>

<mosaic_0001>
module attributes {stable_mosaic.version = 11 : i64} {
  func.func @_conv_direct_kernel(%arg0: i32, %arg1: i32, %arg2: i32, %arg3: memref<1x1x18x18x4xbf16, #tpu.memory_space<vmem>>, %arg4: memref<9x4x128xbf16, #tpu.memory_space<vmem>>, %arg5: memref<1x128xf32, #tpu.memory_space<vmem>>, %arg6: memref<1x16x16x128xf32, #tpu.memory_space<vmem>>) attributes {dimension_semantics = [#tpu.dimension_semantics<parallel>, #tpu.dimension_semantics<parallel>, #tpu.dimension_semantics<parallel>], iteration_bounds = array<i64: 2, 1, 1>, scalar_prefetch = 0 : i64, scratch_operands = 0 : i64, tpu.core_type = #tpu.core_type<tc>, window_params = [{transform_indices = @transform_0, window_bounds = array<i64: 1, 1, 18, 18, 4>}, {transform_indices = @transform_1, window_bounds = array<i64: 9, 4, 128>}, {transform_indices = @transform_2, window_bounds = array<i64: 1, 128>}, {transform_indices = @transform_3, window_bounds = array<i64: 1, 16, 16, 128>}]} {
    %cst = arith.constant 0.000000e+00 : f32
    %0 = vector.broadcast %cst : f32 to vector<256x128xf32>
    %c0 = arith.constant 0 : index
    %c0_0 = arith.constant 0 : index
    %c0_1 = arith.constant 0 : index
    %c0_2 = arith.constant 0 : index
    %c0_3 = arith.constant 0 : index
    %1 = vector.load %arg3[%c0, %c0_0, %c0_1, %c0_2, %c0_3] : memref<1x1x18x18x4xbf16, #tpu.memory_space<vmem>>, vector<1x1x16x16x4xbf16>
    %2 = vector.shape_cast %1 : vector<1x1x16x16x4xbf16> to vector<16x16x4xbf16>
    %3 = vector.shape_cast %2 : vector<16x16x4xbf16> to vector<256x4xbf16>
    %c0_4 = arith.constant 0 : index
    %c0_5 = arith.constant 0 : index
    %c0_6 = arith.constant 0 : index
    %4 = vector.load %arg4[%c0_4, %c0_5, %c0_6] : memref<9x4x128xbf16, #tpu.memory_space<vmem>>, vector<1x4x128xbf16>
    %5 = vector.shape_cast %4 : vector<1x4x128xbf16> to vector<4x128xbf16>
    %cst_7 = arith.constant dense<0.000000e+00> : vector<256x128xf32>
    %6 = tpu.matmul %3, %5, %cst_7 {dimension_numbers = #tpu.dot_dimension_numbers<[1], [0], [0], [1], [0, 0, 1, 1], [], []>} : vector<256x4xbf16>, vector<4x128xbf16>, vector<256x128xf32> -> vector<256x128xf32>
    %7 = arith.addf %0, %6 : vector<256x128xf32>
    %c0_8 = arith.constant 0 : index
    %c0_9 = arith.constant 0 : index
    %c0_10 = arith.constant 0 : index
    %c1 = arith.constant 1 : index
    %c0_11 = arith.constant 0 : index
    %8 = vector.load %arg3[%c0_8, %c0_9, %c0_10, %c1, %c0_11] : memref<1x1x18x18x4xbf16, #tpu.memory_space<vmem>>, vector<1x1x16x16x4xbf16>
    %9 = vector.shape_cast %8 : vector<1x1x16x16x4xbf16> to vector<16x16x4xbf16>
    %10 = vector.shape_cast %9 : vector<16x16x4xbf16> to vector<256x4xbf16>
    %c1_12 = arith.constant 1 : index
    %c0_13 = arith.constant 0 : index
    %c0_14 = arith.constant 0 : index
    %11 = vector.load %arg4[%c1_12, %c0_13, %c0_14] : memref<9x4x128xbf16, #tpu.memory_space<vmem>>, vector<1x4x128xbf16>
    %12 = vector.shape_cast %11 : vector<1x4x128xbf16> to vector<4x128xbf16>
    %cst_15 = arith.constant dense<0.000000e+00> : vector<256x128xf32>
    %13 = tpu.matmul %10, %12, %cst_15 {dimension_numbers = #tpu.dot_dimension_numbers<[1], [0], [0], [1], [0, 0, 1, 1], [], []>} : vector<256x4xbf16>, vector<4x128xbf16>, vector<256x128xf32> -> vector<256x128xf32>
    %14 = arith.addf %7, %13 : vector<256x128xf32>
    %c0_16 = arith.constant 0 : index
    %c0_17 = arith.constant 0 : index
    %c0_18 = arith.constant 0 : index
    %c2 = arith.constant 2 : index
    %c0_19 = arith.constant 0 : index
    %15 = vector.load %arg3[%c0_16, %c0_17, %c0_18, %c2, %c0_19] : memref<1x1x18x18x4xbf16, #tpu.memory_space<vmem>>, vector<1x1x16x16x4xbf16>
    %16 = vector.shape_cast %15 : vector<1x1x16x16x4xbf16> to vector<16x16x4xbf16>
    %17 = vector.shape_cast %16 : vector<16x16x4xbf16> to vector<256x4xbf16>
    %c2_20 = arith.constant 2 : index
    %c0_21 = arith.constant 0 : index
    %c0_22 = arith.constant 0 : index
    %18 = vector.load %arg4[%c2_20, %c0_21, %c0_22] : memref<9x4x128xbf16, #tpu.memory_space<vmem>>, vector<1x4x128xbf16>
    %19 = vector.shape_cast %18 : vector<1x4x128xbf16> to vector<4x128xbf16>
    %cst_23 = arith.constant dense<0.000000e+00> : vector<256x128xf32>
    %20 = tpu.matmul %17, %19, %cst_23 {dimension_numbers = #tpu.dot_dimension_numbers<[1], [0], [0], [1], [0, 0, 1, 1], [], []>} : vector<256x4xbf16>, vector<4x128xbf16>, vector<256x128xf32> -> vector<256x128xf32>
    %21 = arith.addf %14, %20 : vector<256x128xf32>
    %c0_24 = arith.constant 0 : index
    %c0_25 = arith.constant 0 : index
    %c1_26 = arith.constant 1 : index
    %c0_27 = arith.constant 0 : index
    %c0_28 = arith.constant 0 : index
    %22 = vector.load %arg3[%c0_24, %c0_25, %c1_26, %c0_27, %c0_28] : memref<1x1x18x18x4xbf16, #tpu.memory_space<vmem>>, vector<1x1x16x16x4xbf16>
    %23 = vector.shape_cast %22 : vector<1x1x16x16x4xbf16> to vector<16x16x4xbf16>
    %24 = vector.shape_cast %23 : vector<16x16x4xbf16> to vector<256x4xbf16>
    %c3 = arith.constant 3 : index
    %c0_29 = arith.constant 0 : index
    %c0_30 = arith.constant 0 : index
    %25 = vector.load %arg4[%c3, %c0_29, %c0_30] : memref<9x4x128xbf16, #tpu.memory_space<vmem>>, vector<1x4x128xbf16>
    %26 = vector.shape_cast %25 : vector<1x4x128xbf16> to vector<4x128xbf16>
    %cst_31 = arith.constant dense<0.000000e+00> : vector<256x128xf32>
    %27 = tpu.matmul %24, %26, %cst_31 {dimension_numbers = #tpu.dot_dimension_numbers<[1], [0], [0], [1], [0, 0, 1, 1], [], []>} : vector<256x4xbf16>, vector<4x128xbf16>, vector<256x128xf32> -> vector<256x128xf32>
    %28 = arith.addf %21, %27 : vector<256x128xf32>
    %c0_32 = arith.constant 0 : index
    %c0_33 = arith.constant 0 : index
    %c1_34 = arith.constant 1 : index
    %c1_35 = arith.constant 1 : index
    %c0_36 = arith.constant 0 : index
    %29 = vector.load %arg3[%c0_32, %c0_33, %c1_34, %c1_35, %c0_36] : memref<1x1x18x18x4xbf16, #tpu.memory_space<vmem>>, vector<1x1x16x16x4xbf16>
    %30 = vector.shape_cast %29 : vector<1x1x16x16x4xbf16> to vector<16x16x4xbf16>
    %31 = vector.shape_cast %30 : vector<16x16x4xbf16> to vector<256x4xbf16>
    %c4 = arith.constant 4 : index
    %c0_37 = arith.constant 0 : index
    %c0_38 = arith.constant 0 : index
    %32 = vector.load %arg4[%c4, %c0_37, %c0_38] : memref<9x4x128xbf16, #tpu.memory_space<vmem>>, vector<1x4x128xbf16>
    %33 = vector.shape_cast %32 : vector<1x4x128xbf16> to vector<4x128xbf16>
    %cst_39 = arith.constant dense<0.000000e+00> : vector<256x128xf32>
    %34 = tpu.matmul %31, %33, %cst_39 {dimension_numbers = #tpu.dot_dimension_numbers<[1], [0], [0], [1], [0, 0, 1, 1], [], []>} : vector<256x4xbf16>, vector<4x128xbf16>, vector<256x128xf32> -> vector<256x128xf32>
    %35 = arith.addf %28, %34 : vector<256x128xf32>
    %c0_40 = arith.constant 0 : index
    %c0_41 = arith.constant 0 : index
    %c1_42 = arith.constant 1 : index
    %c2_43 = arith.constant 2 : index
    %c0_44 = arith.constant 0 : index
    %36 = vector.load %arg3[%c0_40, %c0_41, %c1_42, %c2_43, %c0_44] : memref<1x1x18x18x4xbf16, #tpu.memory_space<vmem>>, vector<1x1x16x16x4xbf16>
    %37 = vector.shape_cast %36 : vector<1x1x16x16x4xbf16> to vector<16x16x4xbf16>
    %38 = vector.shape_cast %37 : vector<16x16x4xbf16> to vector<256x4xbf16>
    %c5 = arith.constant 5 : index
    %c0_45 = arith.constant 0 : index
    %c0_46 = arith.constant 0 : index
    %39 = vector.load %arg4[%c5, %c0_45, %c0_46] : memref<9x4x128xbf16, #tpu.memory_space<vmem>>, vector<1x4x128xbf16>
    %40 = vector.shape_cast %39 : vector<1x4x128xbf16> to vector<4x128xbf16>
    %cst_47 = arith.constant dense<0.000000e+00> : vector<256x128xf32>
    %41 = tpu.matmul %38, %40, %cst_47 {dimension_numbers = #tpu.dot_dimension_numbers<[1], [0], [0], [1], [0, 0, 1, 1], [], []>} : vector<256x4xbf16>, vector<4x128xbf16>, vector<256x128xf32> -> vector<256x128xf32>
    %42 = arith.addf %35, %41 : vector<256x128xf32>
    %c0_48 = arith.constant 0 : index
    %c0_49 = arith.constant 0 : index
    %c2_50 = arith.constant 2 : index
    %c0_51 = arith.constant 0 : index
    %c0_52 = arith.constant 0 : index
    %43 = vector.load %arg3[%c0_48, %c0_49, %c2_50, %c0_51, %c0_52] : memref<1x1x18x18x4xbf16, #tpu.memory_space<vmem>>, vector<1x1x16x16x4xbf16>
    %44 = vector.shape_cast %43 : vector<1x1x16x16x4xbf16> to vector<16x16x4xbf16>
    %45 = vector.shape_cast %44 : vector<16x16x4xbf16> to vector<256x4xbf16>
    %c6 = arith.constant 6 : index
    %c0_53 = arith.constant 0 : index
    %c0_54 = arith.constant 0 : index
    %46 = vector.load %arg4[%c6, %c0_53, %c0_54] : memref<9x4x128xbf16, #tpu.memory_space<vmem>>, vector<1x4x128xbf16>
    %47 = vector.shape_cast %46 : vector<1x4x128xbf16> to vector<4x128xbf16>
    %cst_55 = arith.constant dense<0.000000e+00> : vector<256x128xf32>
    %48 = tpu.matmul %45, %47, %cst_55 {dimension_numbers = #tpu.dot_dimension_numbers<[1], [0], [0], [1], [0, 0, 1, 1], [], []>} : vector<256x4xbf16>, vector<4x128xbf16>, vector<256x128xf32> -> vector<256x128xf32>
    %49 = arith.addf %42, %48 : vector<256x128xf32>
    %c0_56 = arith.constant 0 : index
    %c0_57 = arith.constant 0 : index
    %c2_58 = arith.constant 2 : index
    %c1_59 = arith.constant 1 : index
    %c0_60 = arith.constant 0 : index
    %50 = vector.load %arg3[%c0_56, %c0_57, %c2_58, %c1_59, %c0_60] : memref<1x1x18x18x4xbf16, #tpu.memory_space<vmem>>, vector<1x1x16x16x4xbf16>
    %51 = vector.shape_cast %50 : vector<1x1x16x16x4xbf16> to vector<16x16x4xbf16>
    %52 = vector.shape_cast %51 : vector<16x16x4xbf16> to vector<256x4xbf16>
    %c7 = arith.constant 7 : index
    %c0_61 = arith.constant 0 : index
    %c0_62 = arith.constant 0 : index
    %53 = vector.load %arg4[%c7, %c0_61, %c0_62] : memref<9x4x128xbf16, #tpu.memory_space<vmem>>, vector<1x4x128xbf16>
    %54 = vector.shape_cast %53 : vector<1x4x128xbf16> to vector<4x128xbf16>
    %cst_63 = arith.constant dense<0.000000e+00> : vector<256x128xf32>
    %55 = tpu.matmul %52, %54, %cst_63 {dimension_numbers = #tpu.dot_dimension_numbers<[1], [0], [0], [1], [0, 0, 1, 1], [], []>} : vector<256x4xbf16>, vector<4x128xbf16>, vector<256x128xf32> -> vector<256x128xf32>
    %56 = arith.addf %49, %55 : vector<256x128xf32>
    %c0_64 = arith.constant 0 : index
    %c0_65 = arith.constant 0 : index
    %c2_66 = arith.constant 2 : index
    %c2_67 = arith.constant 2 : index
    %c0_68 = arith.constant 0 : index
    %57 = vector.load %arg3[%c0_64, %c0_65, %c2_66, %c2_67, %c0_68] : memref<1x1x18x18x4xbf16, #tpu.memory_space<vmem>>, vector<1x1x16x16x4xbf16>
    %58 = vector.shape_cast %57 : vector<1x1x16x16x4xbf16> to vector<16x16x4xbf16>
    %59 = vector.shape_cast %58 : vector<16x16x4xbf16> to vector<256x4xbf16>
    %c8 = arith.constant 8 : index
    %c0_69 = arith.constant 0 : index
    %c0_70 = arith.constant 0 : index
    %60 = vector.load %arg4[%c8, %c0_69, %c0_70] : memref<9x4x128xbf16, #tpu.memory_space<vmem>>, vector<1x4x128xbf16>
    %61 = vector.shape_cast %60 : vector<1x4x128xbf16> to vector<4x128xbf16>
    %cst_71 = arith.constant dense<0.000000e+00> : vector<256x128xf32>
    %62 = tpu.matmul %59, %61, %cst_71 {dimension_numbers = #tpu.dot_dimension_numbers<[1], [0], [0], [1], [0, 0, 1, 1], [], []>} : vector<256x4xbf16>, vector<4x128xbf16>, vector<256x128xf32> -> vector<256x128xf32>
    %63 = arith.addf %56, %62 : vector<256x128xf32>
    %c0_72 = arith.constant 0 : index
    %c0_73 = arith.constant 0 : index
    %64 = vector.load %arg5[%c0_72, %c0_73] : memref<1x128xf32, #tpu.memory_space<vmem>>, vector<1x128xf32>
    %65 = vector.broadcast %64 : vector<1x128xf32> to vector<256x128xf32>
    %66 = arith.addf %63, %65 : vector<256x128xf32>
    %67 = vector.shape_cast %66 : vector<256x128xf32> to vector<1x16x16x128xf32>
    %c0_74 = arith.constant 0 : index
    %c0_75 = arith.constant 0 : index
    %c0_76 = arith.constant 0 : index
    %c0_77 = arith.constant 0 : index
    %68 = vector.load %arg6[%c0_74, %c0_75, %c0_76, %c0_77] : memref<1x16x16x128xf32, #tpu.memory_space<vmem>>, vector<1x16x16x128xf32>
    tpu.vector_store %arg6[%c0_74, %c0_75, %c0_76, %c0_77], %67 {strides = array<i32>} : memref<1x16x16x128xf32, #tpu.memory_space<vmem>>, vector<1x16x16x128xf32>,
    return
  }
  func.func @transform_0(%arg0: i32, %arg1: i32, %arg2: i32) -> (i32, i32, i32, i32, i32) {
    %c0_i32 = arith.constant 0 : i32
    %c0_i32_0 = arith.constant 0 : i32
    %c0_i32_1 = arith.constant 0 : i32
    %c0_i32_2 = arith.constant 0 : i32
    return %arg0, %arg1, %c0_i32, %c0_i32_0, %c0_i32_1 : i32, i32, i32, i32, i32
  }
  func.func @transform_1(%arg0: i32, %arg1: i32, %arg2: i32) -> (i32, i32, i32) {
    %c0_i32 = arith.constant 0 : i32
    %c0_i32_0 = arith.constant 0 : i32
    %c0_i32_1 = arith.constant 0 : i32
    return %c0_i32, %c0_i32_0, %arg2 : i32, i32, i32
  }
  func.func @transform_2(%arg0: i32, %arg1: i32, %arg2: i32) -> (i32, i32) {
    %c0_i32 = arith.constant 0 : i32
    %c0_i32_0 = arith.constant 0 : i32
    return %c0_i32, %arg2 : i32, i32
  }
  func.func @transform_3(%arg0: i32, %arg1: i32, %arg2: i32) -> (i32, i32, i32, i32) {
    %c0_i32 = arith.constant 0 : i32
    %c0_i32_0 = arith.constant 0 : i32
    return %arg0, %arg1, %c0_i32, %arg2 : i32, i32, i32, i32
  }
}

</mosaic_0001>

<bundles_post_ra>
// kernel: tpu_custom_call.1
= control target key start
LH: loop header
LB: loop body
LE: loop exit
PB: predicated region body
PF: predicated region fallthrough
CT: control target
= control target key end

     0   :  { %8 = vsyncpa [#allocation3], 0  ;;  %s8433_s0 = inlined_call_operand.vmem [shape: bf16[2,1,18,18,4], index: 0, kind: input, shape index: {}]   ;;  %s8434_s1 = inlined_call_operand.vmem [shape: bf16[9,4,128], index: 1, kind: input, shape index: {}]   ;;  %s8435_s2 = inlined_call_operand.vmem [shape: f32[1,128], index: 2, kind: input, shape index: {}]   ;;  %s8436_s3 = inlined_call_operand.hbm [shape: f32[2,16,16,128], index: 3, kind: output, shape index: {}]  }
   0x1   :  { %10 = vsyncpa [#allocation3 + $0x1], 0  ;;  %s6545_s12 = smov 0   ;;  %s6547_s13 = smov 0  }
   0x2   :  { %s6549_s14 = smov 0   ;;  %s6551_s15 = smov 0  }
   0x3   :  { %s6553_s16 = smov 0   ;;  %s6555_s17 = smov 0  }
   0x4 LB: > { %s5000_s18 = sadd.s32 4294967295, %s6520_s17   ;;  %s5001_s19 = sadd.s32 4294967294, %s6520_s17   ;;  %s6520_s17 = sphi %s6555_s17, %s16_s17   ;;  %s6516_s16 = sphi %s6553_s16, %s8510_s16   ;;  %s6512_s15 = sphi %s6551_s15, %s8509_s15   ;;  %s6508_s14 = sphi %s6549_s14, %s8508_s14   ;;  %s6504_s13 = sphi %s6547_s13, %s8507_s13   ;;  %s6500_s12 = sphi %s6545_s12, %s8506_s12  }
   0x5   : > { %s35_s20 = sadd.s32 1, %s6516_s16  ;;  %s126_s21 = sadd.s32 1, %s6508_s14 }
   0x6   : > { %p37_p0 = scmp.ge.s32.totalorder %s35_s20, 2  ;;  %p136_p1 = scmp.ne.s32.totalorder %s6508_s14, %s6504_s13 }
   0x7   : > { %p137_p2 = scmp.eq.s32.totalorder %s5000_s18, 1  ;;  %p142_p3 = scmp.ne.s32.totalorder %s6504_s13, %s6500_s12 }
   0x8   : > { %s8512_s20 = smov (%p37_p0, %s35_s20), 0  ;;  %p143_p5 = scmp.eq.s32.totalorder %s5001_s19, 1 }
   0x9   : > { %p6585_p4 = por %p137_p2, %p136_p1  ;;  %s119_s23 = ssub.s32 %s6516_s16, %s8512_s20 }
   0xa   : > { %p5006_p6 = scmp.ge.s32.totalorder %s6520_s17, 1  ;;  %p124_p7 = scmp.eq.s32.totalorder %s119_s23, 0 }
   0xb   : > { %p6592_p8 = por %p143_p5, %p142_p3  ;;  %p186_p9 = scmp.lt.s32.totalorder %s6520_s17, 3 }
   0xc   : > { %s6598_s25 = scalar_select %p124_p7, %s6508_s14, %s126_s21  }
   0xd   : > { %p187_p10 = pnand %p5006_p6, %p186_p9 }
   0xf   : > { %190 = sbr.rel (%p187_p10) target bundleno = 609 (0x261), region = 32 }
  0x16   : > { %v5009_v0 = vld [vmem:[%s8434_s1 + $0x2] sm:$0x3]  ;;  %vm774_vm0 = vcmask 1041408   ;;  %v5236_v1 = vld [vmem:[%s8434_s1 + $0x8] sm:$0x3]  ;;  %p221_p11 = scmp.lt.s32.totalorder %s6512_s15, 1 }
  0x17   : > { %6269 = vmatprep.subr.msk.bf16.mxu1 %vm774_vm0, %v5009_v0  ;;  %6273 = vmatprep.subr.msk.bf16.mxu0 %vm774_vm0, %v5236_v1  ;;  %v776_v2 = vsel %vm774_vm0, %v5009_v0, 0  ;;  %v6611_v3 = vsel %vm774_vm0, %v5236_v1, 0  ;;  %v271_v4 = vld [vmem:[%s8434_s1] sm:$0x3]  ;;  %v5301_v5 = vld [vmem:[%s8434_s1 + $0xa] sm:$0x3] }
  0x18   : > { %8452 = vst [vmem:[#allocation5_spill] sm:$0xff] %v6611_v3  ;;  %5706 = vmatpush3.bf16.msra.mxu1 %v776_v2  ;;  %5842 = vmatpush3.bf16.msra.mxu0 %v6611_v3  ;;  %s222_s30 = scalar_select %p221_p11, %s6512_s15, 1  ;;  %vm288_vm1 = vsmask.f32 3328  ;;  %vm289_vm2 = vsmask.f32 7440 }
  0x19   : > { %6270 = vmatprep.subr.msk.bf16.mxu1 %vm774_vm0, %v271_v4  ;;  %6275 = vmatprep.subr.msk.bf16.mxu0 %vm774_vm0, %v5301_v5  ;;  %vm725_vm3 = vcmask 31744   ;;  %v6639_v17 = vsel %vm774_vm0, %v271_v4, 0  ;;  %v6645_v26 = vld [vmem:[%s8434_s1 + $0xc] sm:$0x3]  ;;  %vm6652_vm4 = vmor %vm288_vm1, %vm289_vm2  ;;  %v6658_v37 = vsel %vm774_vm0, %v5301_v5, 0  ;;  %vm1279_vm5 = vcmask 1042432  }
  0x1a   : > { %s6279_s8 = smul.u32 216, %s222_s30  ;;  %v6662_v41 = vsel %vm774_vm0, %v6645_v26, 0  ;;  %vm1280_vm6 = vcmask 1046532   ;;  %s218_s9 = sand.u32 1, %s6504_s13  }
  0x1b   : > { %vm6878_vm7 = vmor %vm1279_vm5, %vm1280_vm6  ;;  %s5007_s10 = sshll.u32 %s218_s9, 8  ;;  %s5551_s21 = sshll.u32 %s6512_s15, 12 }
  0x1c   : > { %s6626_s11 = scalar_lea.vmem %s8433_s0, %s6279_s8  ;;  %s8312_s19 = scalar_lea.vmem [#allocation2], %s5007_s10 }
  0x1d   : > { %v239_v6 = vld [vmem:[%s6626_s11] sm:$0xf]  ;;  %v240_v7 = vld [vmem:[%s6626_s11 + $0x4] sm:$0xf]  ;;  %v272_v8 = vld [vmem:[%s6626_s11 + $0x8] sm:$0x1]  ;;  %s8377_s28 = scalar_lea.hbm %s8436_s3, %s5551_s21 }
  0x1e   : > { %v292_v9 = vshrl.u32 %v239_v6, 16  ;;  %v295_v10 = vshll.u32 %v239_v6, 16  ;;  %v301_v11 = vshll.u32 %v240_v7, 16  ;;  %v305_v12 = vshrl.u32 %v240_v7, 16  ;;  %v5188_v13 = vld [vmem:[%s6626_s11 + $0xc] sm:$0xf] }
  0x1f   : > { %v311_v14 = vshll.u32 %v272_v8, 16  ;;  %v6633_v15 = vld [vmem:[%s6626_s11 + $0x10] sm:$0xf]  ;;  %v6636_v16 = vld [vmem:[%s6626_s11 + $0x14] sm:$0x1]  ;;  %v2096_v23 = vshrl.u32 %v5188_v13, 16 }
  0x20   : > { %v294_v18 = vrot.slane %v292_v9, 4  ;;  %v297_v19 = vrot.slane %v295_v10, 5  ;;  %v303_v20 = vrot.slane %v301_v11, 5  ;;  %v307_v21 = vrot.slane %v305_v12, 4  ;;  %v241_v31 = vld [vmem:[%s6626_s11 + $0xc] sm:$0xf] }
  0x21   : > { %v313_v22 = vrot.slane %v311_v14, 5  ;;  %v2099_v24 = vshll.u32 %v5188_v13, 16  ;;  %v2105_v25 = vshll.u32 %v6633_v15, 16  ;;  %v2109_v29 = vshrl.u32 %v6633_v15, 16  ;;  %v242_v36 = vld [vmem:[%s6626_s11 + $0x10] sm:$0xf] }
  0x22   : > { %v298_v27 = vor.u32 %v297_v19, %v294_v18  ;;  %v308_v28 = vor.u32 %v307_v21, %v303_v20  ;;  %v2115_v30 = vshll.u32 %v6636_v16, 16  ;;  %v2098_v33 = vrot.slane %v2096_v23, 4  ;;  %v273_v44 = vld [vmem:[%s6626_s11 + $0x14] sm:$0x1]  ;;  %v5191_v55 = vld [vmem:[%s6626_s11 + $0x18] sm:$0xf] }
  0x23   : > { %v2101_v34 = vrot.slane %v2099_v24, 5  ;;  %v2107_v35 = vrot.slane %v2105_v25, 5  ;;  %v2111_v40 = vrot.slane %v2109_v29, 4  ;;  %v316_v45 = vshrl.u32 %v241_v31, 16  ;;  %v6671_v60 = vld [vmem:[%s6626_s11 + $0x1c] sm:$0xf] }
  0x24   : > { %v299_v38 = vrot.slane %v298_v27, 4  ;;  %v309_v39 = vrot.slane %v308_v28, 4  ;;  %v2117_v43 = vrot.slane %v2115_v30, 5  ;;  %v319_v46 = vshll.u32 %v241_v31, 16  ;;  %v6679_v1 = vld [vmem:[%s6626_s11 + $0x20] sm:$0x1] }
  0x25   : > { %v2102_v42 = vor.u32 %v2101_v34, %v2098_v33  ;;  %v2112_v49 = vor.u32 %v2111_v40, %v2107_v35  ;;  %v325_v50 = vshll.u32 %v242_v36, 16  ;;  %v318_v53 = vrot.slane %v316_v45, 4  ;;  %v243_v18 = vld [vmem:[%s6626_s11 + $0x18] sm:$0xf]  ;;  %v244_v23 = vld [vmem:[%s6626_s11 + $0x1c] sm:$0xf] }
  0x26   : > { %v304_v47 = vsel %vm6652_vm4, %v299_v38, %v303_v20  ;;  %v314_v48 = vsel %vm6652_vm4, %v309_v39, %v313_v22  ;;  %v321_v54 = vrot.slane %v319_v46, 5  ;;  %v329_v58 = vshrl.u32 %v242_v36, 16  ;;  %v274_v31 = vld [vmem:[%s6626_s11 + $0x20] sm:$0x1]  ;;  %v5194_v40 = vld [vmem:[%s6626_s11 + $0x24] sm:$0xf] }
  0x27   : > { %v5010_v51 = vcombine.low %v304_v47, %v314_v48  ;;  %v2103_v52 = vrot.slane %v2102_v42, 4  ;;  %v2113_v56 = vrot.slane %v2112_v49, 4  ;;  %v327_v57 = vrot.slane %v325_v50, 5  ;;  %v6702_v46 = vld [vmem:[%s6626_s11 + $0x28] sm:$0xf]  ;;  %s4887_s23 = sshll.u32 %s8312_s19, 4  ;;  %s8379_s23 = int_to_ptr.vmem [resolvable:$true] %s4887_s23 }
  0x28   : > { %v335_v59 = vshll.u32 %v273_v44, 16  ;;  %v2839_v62 = vrot.slane %v6633_v15, 5  ;;  %v2842_v63 = vrot.slane %v6636_v16, 5  ;;  %v322_v0 = vor.u32 %v321_v54, %v318_v53  ;;  %v6711_v54 = vld [vmem:[%s6626_s11 + $0x2c] sm:$0x1]  ;;  %s8387_s15 = scalar_lea.sflag [#allocation3], %s218_s9 }
  0x29   : > { %5707 = vmatprep.mubr.msk.bf16.mxu1 %vm725_vm3, %v5010_v51  ;;  %v2108_v61 = vsel %vm6652_vm4, %v2103_v52, %v2107_v35  ;;  %v2118_v2 = vsel %vm6652_vm4, %v2113_v56, %v2117_v43  ;;  %v331_v4 = vrot.slane %v329_v58, 4  ;;  %v2120_v6 = vshrl.u32 %v5191_v55, 16  ;;  %v5090_v51 = vld [vmem:[%s8434_s1 + $0x4] sm:$0x3]  ;;  %v6911_v16 = vld [vmem:[%s6626_s11 + $0x7c] sm:$0xf] }
  0x2a   : > { %v337_v5 = vrot.slane %v335_v59, 5  ;;  %v5237_v7 = vcombine.low %v2108_v61, %v2118_v2  ;;  %v323_v8 = vrot.slane %v322_v0, 4  ;;  %v2123_v9 = vshll.u32 %v5191_v55, 16  ;;  %v245_v0 = vld [vmem:[%s6626_s11 + $0x24] sm:$0xf]  ;;  %s6442_s29 = scalar_lea.vmem %s8379_s23, 4096 }
  0x2b   : > { %v2129_v10 = vshll.u32 %v6671_v60, 16  ;;  %v332_v11 = vor.u32 %v331_v4, %v327_v57  ;;  %v2122_v12 = vrot.slane %v2120_v6, 4  ;;  %v2133_v13 = vshrl.u32 %v6671_v60, 16  ;;  %p6443_p12 = scmp.ne.s32.totalorder %s8379_s23, %s6442_s29  ;;  %s6522_s30 = smov [#allocation2]  }
  0x2c   : > { %v2139_v14 = vshll.u32 %v6679_v1, 16  ;;  %5843 = vmatprep.mubr.msk.bf16.mxu0 %vm725_vm3, %v5237_v7  ;;  %v328_v19 = vsel %vm6652_vm4, %v323_v8, %v327_v57  ;;  %v2125_v20 = vrot.slane %v2123_v9, 5  ;;  %v2846_v22 = vrot.slane %v6671_v60, 5  ;;  %v246_v7 = vld [vmem:[%s6626_s11 + $0x28] sm:$0xf]  ;;  %s6446_s4 = sshll.u32 %s6522_s30, 4  ;;  %s6447_s4 = int_to_ptr.vmem [resolvable:$false] %s6446_s4 }
  0x2d   : > { %v2131_v21 = vrot.slane %v2129_v10, 5  ;;  %v333_v24 = vrot.slane %v332_v11, 4  ;;  %v2135_v25 = vrot.slane %v2133_v13, 4  ;;  %v2849_v28 = vrot.slane %v6679_v1, 5  ;;  %v275_v13 = vld [vmem:[%s6626_s11 + $0x2c] sm:$0x1]  ;;  %p6444_p13 = pnand %p6443_p12, %p6585_p4  ;;  %p6449_p1 = scmp.lt.s32.totalorder %s8379_s23, %s6447_s4 }
  0x2e   : > { %v2141_v27 = vrot.slane %v2139_v14, 5  ;;  %v2126_v29 = vor.u32 %v2125_v20, %v2122_v12  ;;  %v6695_v30 = vrot.slane %v2846_v22, 4  ;;  %v340_v33 = vshrl.u32 %v243_v18, 16  ;;  %s6448_s5 = scalar_lea.vmem %s6447_s4, 8192 }
  0x2f   : > { %v343_v34 = vshll.u32 %v243_v18, 16  ;;  %v338_v35 = vsel %vm6652_vm4, %v333_v24, %v337_v5  ;;  %v2136_v36 = vor.u32 %v2135_v25, %v2131_v21  ;;  %v349_v38 = vshll.u32 %v244_v23, 16  ;;  %v5197_v24 = vld [vmem:[%s6626_s11 + $0x30] sm:$0xf]  ;;  %p6445_p0 = pneg %p6444_p13  ;;  %p6450_p2 = scmp.lt.s32.totalorder %s6448_s5, %s6442_s29 }
  0x30   : > { %v353_v39 = vshrl.u32 %v244_v23, 16  ;;  %v5011_v42 = vcombine.low %v328_v19, %v338_v35  ;;  %v2127_v43 = vrot.slane %v2126_v29, 4  ;;  %v342_v44 = vrot.slane %v340_v33, 4  ;;  %v6731_v33 = vld [vmem:[%s6626_s11 + $0x34] sm:$0xf] }
  0x31   : > { %v345_v45 = vrot.slane %v343_v34, 5  ;;  %v2137_v47 = vrot.slane %v2136_v36, 4  ;;  %v351_v48 = vrot.slane %v349_v38, 5  ;;  %v359_v50 = vshll.u32 %v274_v31, 16  ;;  %p6451_p3 = por %p6450_p2, %p6449_p1 }
  0x32   : > { %v355_v49 = vrot.slane %v353_v39, 4  ;;  %5708 = vmatmul.mubr.msk.bf16.vlgmr.msra.gmra.mrb[0].mxu1 %vm725_vm3, %v5011_v42  ;;  %v2132_v52 = vsel %vm6652_vm4, %v2127_v43, %v2131_v21  ;;  %v2144_v55 = vshrl.u32 %v5194_v40, 16  ;;  %v2147_v56 = vshll.u32 %v5194_v40, 16  ;;  %v6739_v40 = vld [vmem:[%s6626_s11 + $0x38] sm:$0x1] }
  0x33   : > { %v346_v53 = vor.u32 %v345_v45, %v342_v44  ;;  %5740 = vmatpush3.bf16.msra.mxu1 %v6639_v17  ;;  %v2142_v57 = vsel %vm6652_vm4, %v2137_v47, %v2141_v27  ;;  %v361_v59 = vrot.slane %v359_v50, 5  ;;  %v2153_v61 = vshll.u32 %v6702_v46, 16  ;;  %p6452_p5 = pnand %p6451_p3, %p6445_p0 }
  0x34   : > { %v356_v58 = vor.u32 %v355_v49, %v351_v48  ;;  %v5238_v2 = vcombine.low %v2132_v52, %v2142_v57  ;;  %v2146_v5 = vrot.slane %v2144_v55, 4  ;;  %v2149_v6 = vrot.slane %v2147_v56, 5  ;;  %6271 = vmatprep.subr.msk.bf16.mxu1 %vm774_vm0, %v5090_v51  ;;  %v247_v52 = vld [vmem:[%s6626_s11 + $0x30] sm:$0xf] }
  0x35   : > { %v347_v4 = vrot.slane %v346_v53, 4  ;;  %v2155_v9 = vrot.slane %v2153_v61, 5  ;;  %v2157_v17 = vshrl.u32 %v6702_v46, 16  ;;  %v2163_v10 = vshll.u32 %v6711_v54, 16 }
  0x36   : > { %v357_v8 = vrot.slane %v356_v58, 4  ;;  %5844 = vmatmul.mubr.msk.bf16.vlgmr.msra.gmra.mrb[0].mxu0 %vm725_vm3, %v5238_v2  ;;  %v2150_v12 = vor.u32 %v2149_v6, %v2146_v5  ;;  %v364_v14 = vshrl.u32 %v245_v0, 16  ;;  %v367_v18 = vshll.u32 %v245_v0, 16  ;;  %v248_v58 = vld [vmem:[%s6626_s11 + $0x34] sm:$0xf] }
  0x37   : > { %v352_v11 = vsel %vm6652_vm4, %v347_v4, %v351_v48  ;;  %5876 = vmatpush3.bf16.msra.mxu0 %v6658_v37  ;;  %v2159_v20 = vrot.slane %v2157_v17, 4  ;;  %v2165_v21 = vrot.slane %v2163_v10, 5  ;;  %v373_v23 = vshll.u32 %v246_v7, 16  ;;  %v276_v4 = vld [vmem:[%s6626_s11 + $0x38] sm:$0x1] }
  0x38   : > { %v362_v19 = vsel %vm6652_vm4, %v357_v8, %v361_v59  ;;  %v2151_v27 = vrot.slane %v2150_v12, 4  ;;  %v366_v29 = vrot.slane %v364_v14, 4  ;;  %v369_v31 = vrot.slane %v367_v18, 5  ;;  %6276 = vmatprep.subr.msk.bf16.mxu0 %vm774_vm0, %v6645_v26  ;;  %v5200_v12 = vld [vmem:[%s6626_s11 + $0x3c] sm:$0xf] }
  0x39   : > { %v5012_v25 = vcombine.low %v352_v11, %v362_v19  ;;  %v2160_v34 = vor.u32 %v2159_v20, %v2155_v9  ;;  %v375_v35 = vrot.slane %v373_v23, 5  ;;  %v377_v37 = vshrl.u32 %v246_v7, 16  ;;  %v6756_v20 = vld [vmem:[%s6626_s11 + $0x40] sm:$0xf] }
  0x3a   : > { %v383_v36 = vshll.u32 %v275_v13, 16  ;;  %v2156_v38 = vsel %vm6652_vm4, %v2151_v27, %v2155_v9  ;;  %v370_v39 = vor.u32 %v369_v31, %v366_v29  ;;  %v2168_v42 = vshrl.u32 %v5197_v24, 16 }
  0x3b   : > { %5711 = vmatprep.mubr.msk.bf16.mxu1 %vm725_vm3, %v5012_v25  ;;  %v2171_v43 = vshll.u32 %v5197_v24, 16  ;;  %v2161_v44 = vrot.slane %v2160_v34, 4  ;;  %v379_v45 = vrot.slane %v377_v37, 4  ;;  %v2177_v26 = vshll.u32 %v6731_v33, 16  ;;  %v6761_v34 = vld [vmem:[%s6626_s11 + $0x44] sm:$0x1] }
  0x3c   : > { %v385_v47 = vrot.slane %v383_v36, 5  ;;  %v371_v48 = vrot.slane %v370_v39, 4  ;;  %v2170_v49 = vrot.slane %v2168_v42, 4  ;;  %v2181_v51 = vshrl.u32 %v6731_v33, 16  ;;  %v249_v42 = vld [vmem:[%s6626_s11 + $0x3c] sm:$0xf] }
  0x3d   : > { %v2173_v50 = vrot.slane %v2171_v43, 5  ;;  %v2166_v53 = vsel %vm6652_vm4, %v2161_v44, %v2165_v21  ;;  %v380_v55 = vor.u32 %v379_v45, %v375_v35  ;;  %v2179_v56 = vrot.slane %v2177_v26, 5  ;;  %v250_v26 = vld [vmem:[%s6626_s11 + $0x40] sm:$0xf] }
  0x3e   : > { %v2187_v57 = vshll.u32 %v6739_v40, 16  ;;  %v5239_v59 = vcombine.low %v2156_v38, %v2166_v53  ;;  %v376_v61 = vsel %vm6652_vm4, %v371_v48, %v375_v35  ;;  %v2183_v2 = vrot.slane %v2181_v51, 4 }
  0x3f   : > { %v2174_v0 = vor.u32 %v2173_v50, %v2170_v49  ;;  %v381_v5 = vrot.slane %v380_v55, 4  ;;  %v388_v7 = vshrl.u32 %v247_v52, 16  ;;  %v391_v8 = vshll.u32 %v247_v52, 16 }
  0x40   : > { %v2189_v6 = vrot.slane %v2187_v57, 5  ;;  %5847 = vmatprep.mubr.msk.bf16.mxu0 %vm725_vm3, %v5239_v59  ;;  %v2184_v17 = vor.u32 %v2183_v2, %v2179_v56  ;;  %v397_v10 = vshll.u32 %v248_v58, 16  ;;  %v401_v11 = vshrl.u32 %v248_v58, 16  ;;  %v5203_v2 = vld [vmem:[%s6626_s11 + $0x48] sm:$0xf] }
  0x41   : > { %v2175_v9 = vrot.slane %v2174_v0, 4  ;;  %v386_v13 = vsel %vm6652_vm4, %v381_v5, %v385_v47  ;;  %v390_v14 = vrot.slane %v388_v7, 4  ;;  %v393_v18 = vrot.slane %v391_v8, 5  ;;  %v6779_v8 = vld [vmem:[%s6626_s11 + $0x4c] sm:$0xf] }
  0x42   : > { %v407_v19 = vshll.u32 %v276_v4, 16  ;;  %v5013_v21 = vcombine.low %v376_v61, %v386_v13  ;;  %v2185_v24 = vrot.slane %v2184_v17, 4  ;;  %v399_v25 = vrot.slane %v397_v10, 5  ;;  %v277_v61 = vld [vmem:[%s6626_s11 + $0x44] sm:$0x1] }
  0x43   : > { %v2180_v23 = vsel %vm6652_vm4, %v2175_v9, %v2179_v56  ;;  %v394_v27 = vor.u32 %v393_v18, %v390_v14  ;;  %v403_v29 = vrot.slane %v401_v11, 4  ;;  %v2192_v35 = vshrl.u32 %v5200_v12, 16 }
  0x44   : > { %v409_v31 = vrot.slane %v407_v19, 5  ;;  %5712 = vmatmul.mubr.msk.bf16.gmra.mrb[4].mxu1 %vm725_vm3, %v5013_v21  ;;  %v2190_v37 = vsel %vm6652_vm4, %v2185_v24, %v2189_v6  ;;  %v2195_v36 = vshll.u32 %v5200_v12, 16  ;;  %v2201_v38 = vshll.u32 %v6756_v20, 16 }
  0x45   : > { %v2205_v39 = vshrl.u32 %v6756_v20, 16  ;;  %v5240_v43 = vcombine.low %v2180_v23, %v2190_v37  ;;  %v395_v44 = vrot.slane %v394_v27, 4  ;;  %v404_v45 = vor.u32 %v403_v29, %v399_v25  ;;  %v6787_v23 = vld [vmem:[%s6626_s11 + $0x50] sm:$0x1]  ;;  %v6791_v27 = vld [vmem:[%s6626_s11 + $0x48] sm:$0xf] }
  0x46   : > { %v2194_v47 = vrot.slane %v2192_v35, 4  ;;  %v2197_v48 = vrot.slane %v2195_v36, 5  ;;  %v2203_v49 = vrot.slane %v2201_v38, 5  ;;  %v2211_v51 = vshll.u32 %v6761_v34, 16  ;;  %v6794_v36 = vld [vmem:[%s6626_s11 + $0x4c] sm:$0xf] }
  0x47   : > { %v2207_v50 = vrot.slane %v2205_v39, 4  ;;  %5848 = vmatmul.mubr.msk.bf16.gmra.mrb[4].mxu0 %vm725_vm3, %v5240_v43  ;;  %v400_v52 = vsel %vm6652_vm4, %v395_v44, %v399_v25  ;;  %v405_v53 = vrot.slane %v404_v45, 4  ;;  %v412_v55 = vshrl.u32 %v249_v42, 16 }
  0x48   : > { %v415_v56 = vshll.u32 %v249_v42, 16  ;;  %v2198_v57 = vor.u32 %v2197_v48, %v2194_v47  ;;  %v2213_v59 = vrot.slane %v2211_v51, 5  ;;  %v421_v0 = vshll.u32 %v250_v26, 16 }
  0x49   : > { %v2208_v58 = vor.u32 %v2207_v50, %v2203_v49  ;;  %v410_v4 = vsel %vm6652_vm4, %v405_v53, %v409_v31  ;;  %v414_v5 = vrot.slane %v412_v55, 4  ;;  %v425_v7 = vshrl.u32 %v250_v26, 16  ;;  %v278_v26 = vld [vmem:[%s6626_s11 + $0x50] sm:$0x1]  ;;  %v5206_v53 = vld [vmem:[%s6626_s11 + $0x54] sm:$0xf] }
  0x4a   : > { %v417_v6 = vrot.slane %v415_v56, 5  ;;  %v5014_v9 = vcombine.low %v400_v52, %v410_v4  ;;  %v2199_v17 = vrot.slane %v2198_v57, 4  ;;  %v423_v11 = vrot.slane %v421_v0, 5  ;;  %v6810_v4 = vld [vmem:[%s6626_s11 + $0x58] sm:$0xf] }
  0x4b   : > { %v2209_v10 = vrot.slane %v2208_v58, 4  ;;  %v427_v13 = vrot.slane %v425_v7, 4  ;;  %v431_v14 = vshll.u32 %v277_v61, 16  ;;  %v2216_v18 = vshrl.u32 %v5203_v2, 16 }
  0x4c   : > { %v418_v12 = vor.u32 %v417_v6, %v414_v5  ;;  %5715 = vmatprep.mubr.msk.bf16.mxu1 %vm725_vm3, %v5014_v9  ;;  %v2204_v19 = vsel %vm6652_vm4, %v2199_v17, %v2203_v49  ;;  %v2219_v24 = vshll.u32 %v5203_v2, 16  ;;  %v2225_v25 = vshll.u32 %v6779_v8, 16 }
  0x4d   : > { %v2214_v21 = vsel %vm6652_vm4, %v2209_v10, %v2213_v59  ;;  %v428_v35 = vor.u32 %v427_v13, %v423_v11  ;;  %v433_v37 = vrot.slane %v431_v14, 5  ;;  %v2218_v38 = vrot.slane %v2216_v18, 4 }
  0x4e   : > { %v5241_v29 = vcombine.low %v2204_v19, %v2214_v21  ;;  %v419_v31 = vrot.slane %v418_v12, 4  ;;  %v2221_v39 = vrot.slane %v2219_v24, 5  ;;  %v2227_v42 = vrot.slane %v2225_v25, 5  ;;  %v6816_v12 = vld [vmem:[%s6626_s11 + $0x5c] sm:$0x1] }
  0x4f   : > { %v2229_v43 = vshrl.u32 %v6779_v8, 16  ;;  %v429_v45 = vrot.slane %v428_v35, 4  ;;  %v2235_v47 = vshll.u32 %v6787_v23, 16  ;;  %v436_v48 = vshrl.u32 %v6791_v27, 16  ;;  %v6820_v24 = vld [vmem:[%s6626_s11 + $0x54] sm:$0xf] }
  0x50   : > { %5851 = vmatprep.mubr.msk.bf16.mxu0 %vm725_vm3, %v5241_v29  ;;  %v424_v44 = vsel %vm6652_vm4, %v419_v31, %v423_v11  ;;  %v2222_v49 = vor.u32 %v2221_v39, %v2218_v38  ;;  %v439_v51 = vshll.u32 %v6791_v27, 16  ;;  %v445_v52 = vshll.u32 %v6794_v36, 16 }
  0x51   : > { %v2231_v50 = vrot.slane %v2229_v43, 4  ;;  %v434_v55 = vsel %vm6652_vm4, %v429_v45, %v433_v37  ;;  %v2237_v56 = vrot.slane %v2235_v47, 5  ;;  %v438_v57 = vrot.slane %v436_v48, 4  ;;  %v6826_v37 = vld [vmem:[%s6626_s11 + $0x58] sm:$0xf] }
  0x52   : > { %v449_v58 = vshrl.u32 %v6794_v36, 16  ;;  %v5015_v59 = vcombine.low %v424_v44, %v434_v55  ;;  %v2223_v61 = vrot.slane %v2222_v49, 4  ;;  %v441_v2 = vrot.slane %v439_v51, 5 }
  0x53   : > { %v2232_v0 = vor.u32 %v2231_v50, %v2227_v42  ;;  %v447_v5 = vrot.slane %v445_v52, 5  ;;  %v455_v7 = vshll.u32 %v278_v26, 16  ;;  %v2240_v9 = vshrl.u32 %v5206_v53, 16  ;;  %v279_v26 = vld [vmem:[%s6626_s11 + $0x5c] sm:$0x1] }
  0x54   : > { %v451_v6 = vrot.slane %v449_v58, 4  ;;  %5716 = vmatmul.mubr.msk.bf16.gmra.mrb[8].mxu1 %vm725_vm3, %v5015_v59  ;;  %v2228_v17 = vsel %vm6652_vm4, %v2223_v61, %v2227_v42  ;;  %v442_v11 = vor.u32 %v441_v2, %v438_v57  ;;  %v2243_v13 = vshll.u32 %v5206_v53, 16  ;;  %v5209_v53 = vld [vmem:[%s6626_s11 + $0x60] sm:$0xf]  ;;  %v6840_v59 = vld [vmem:[%s6626_s11 + $0x64] sm:$0xf] }
  0x55   : > { %v2233_v10 = vrot.slane %v2232_v0, 4  ;;  %v457_v18 = vrot.slane %v455_v7, 5  ;;  %v2242_v19 = vrot.slane %v2240_v9, 4  ;;  %v2249_v21 = vshll.u32 %v6810_v4, 16  ;;  %v6847_v9 = vld [vmem:[%s6626_s11 + $0x68] sm:$0x1] }
  0x56   : > { %v452_v14 = vor.u32 %v451_v6, %v447_v5  ;;  %v443_v29 = vrot.slane %v442_v11, 4  ;;  %v2245_v31 = vrot.slane %v2243_v13, 5  ;;  %v2253_v35 = vshrl.u32 %v6810_v4, 16 }
  0x57   : > { %v2238_v25 = vsel %vm6652_vm4, %v2233_v10, %v2237_v56  ;;  %v2251_v42 = vrot.slane %v2249_v21, 5  ;;  %v2259_v43 = vshll.u32 %v6816_v12, 16  ;;  %v460_v48 = vshrl.u32 %v6820_v24, 16 }
  0x58   : > { %v5242_v38 = vcombine.low %v2228_v17, %v2238_v25  ;;  %v453_v39 = vrot.slane %v452_v14, 4  ;;  %v448_v44 = vsel %vm6652_vm4, %v443_v29, %v447_v5  ;;  %v2246_v45 = vor.u32 %v2245_v31, %v2242_v19  ;;  %v6851_v19 = vld [vmem:[%s6626_s11 + $0x60] sm:$0xf] }
  0x59   : > { %v2255_v47 = vrot.slane %v2253_v35, 4  ;;  %v2261_v50 = vrot.slane %v2259_v43, 5  ;;  %v463_v51 = vshll.u32 %v6820_v24, 16  ;;  %v469_v52 = vshll.u32 %v6826_v37, 16  ;;  %v6857_v35 = vld [vmem:[%s6626_s11 + $0x64] sm:$0xf] }
  0x5a   : > { %5852 = vmatmul.mubr.msk.bf16.gmra.mrb[8].mxu0 %vm725_vm3, %v5242_v38  ;;  %v458_v49 = vsel %vm6652_vm4, %v453_v39, %v457_v18  ;;  %v2247_v56 = vrot.slane %v2246_v45, 4  ;;  %v462_v58 = vrot.slane %v460_v48, 4  ;;  %v473_v2 = vshrl.u32 %v6826_v37, 16 }
  0x5b   : > { %v5016_v55 = vcombine.low %v448_v44, %v458_v49  ;;  %v2256_v57 = vor.u32 %v2255_v47, %v2251_v42  ;;  %v465_v61 = vrot.slane %v463_v51, 5  ;;  %v471_v0 = vrot.slane %v469_v52, 5 }
  0x5c   : > { %v479_v5 = vshll.u32 %v279_v26, 16  ;;  %v2252_v6 = vsel %vm6652_vm4, %v2247_v56, %v2251_v42  ;;  %v2264_v17 = vshrl.u32 %v5209_v53, 16  ;;  %v2267_v10 = vshll.u32 %v5209_v53, 16 }
  0x5d   : > { %5719 = vmatprep.mubr.msk.bf16.mxu1 %vm725_vm3, %v5016_v55  ;;  %v2257_v7 = vrot.slane %v2256_v57, 4  ;;  %v466_v11 = vor.u32 %v465_v61, %v462_v58  ;;  %v475_v13 = vrot.slane %v473_v2, 4  ;;  %v2273_v18 = vshll.u32 %v6840_v59, 16  ;;  %v5269_v58 = vld [vmem:[%s6626_s11 + $0xc] sm:$0xe] }
  0x5e   : > { %v481_v14 = vrot.slane %v479_v5, 5  ;;  %v2266_v25 = vrot.slane %v2264_v17, 4  ;;  %v2269_v29 = vrot.slane %v2267_v10, 5  ;;  %v2277_v31 = vshrl.u32 %v6840_v59, 16 }
  0x5f   : > { %v2262_v21 = vsel %vm6652_vm4, %v2257_v7, %v2261_v50  ;;  %v467_v39 = vrot.slane %v466_v11, 4  ;;  %v476_v42 = vor.u32 %v475_v13, %v471_v0  ;;  %v2275_v43 = vrot.slane %v2273_v18, 5  ;;  %v280_v50 = vld [vmem:[%s6626_s11 + $0x68] sm:$0x1] }
  0x60   : > { %v5243_v38 = vcombine.low %v2252_v6, %v2262_v21  ;;  %v2270_v44 = vor.u32 %v2269_v29, %v2266_v25  ;;  %v2279_v45 = vrot.slane %v2277_v31, 4  ;;  %v2283_v47 = vshll.u32 %v6847_v9, 16  ;;  %v6885_v29 = vld [vmem:[%s6626_s11 + $0x70] sm:$0xf] }
  0x61   : > { %v484_v26 = vshrl.u32 %v6851_v19, 16  ;;  %v472_v48 = vsel %vm6652_vm4, %v467_v39, %v471_v0  ;;  %v477_v49 = vrot.slane %v476_v42, 4  ;;  %v487_v51 = vshll.u32 %v6851_v19, 16  ;;  %v6872_v0 = vld [vmem:[%s6626_s11 + $0x6c] sm:$0xf] }
  0x62   : > { %5855 = vmatprep.mubr.msk.bf16.mxu0 %vm725_vm3, %v5243_v38  ;;  %v493_v52 = vshll.u32 %v6857_v35, 16  ;;  %v2271_v53 = vrot.slane %v2270_v44, 4  ;;  %v2280_v55 = vor.u32 %v2279_v45, %v2275_v43  ;;  %v2285_v56 = vrot.slane %v2283_v47, 5 }
  0x63   : > { %v486_v57 = vrot.slane %v484_v26, 4  ;;  %v482_v61 = vsel %vm6652_vm4, %v477_v49, %v481_v14  ;;  %v489_v2 = vrot.slane %v487_v51, 5  ;;  %v497_v6 = vshrl.u32 %v6857_v35, 16  ;;  %v281_v26 = vld [vmem:[%s6626_s11 + $0x74] sm:$0x1] }
  0x64   : > { %v495_v5 = vrot.slane %v493_v52, 5  ;;  %v5017_v7 = vcombine.low %v472_v48, %v482_v61  ;;  %v2276_v17 = vsel %vm6652_vm4, %v2271_v53, %v2275_v43  ;;  %v2281_v10 = vrot.slane %v2280_v55, 4  ;;  %v5270_v48 = vld [vmem:[%s6626_s11 + $0x18] sm:$0xe] }
  0x65   : > { %v503_v11 = vshll.u32 %v280_v50, 16  ;;  %v490_v14 = vor.u32 %v489_v2, %v486_v57  ;;  %v499_v18 = vrot.slane %v497_v6, 4  ;;  %v5285_v21 = vrot.slane %v5269_v58, 9  ;;  %v6904_v53 = vld [vmem:[%s6626_s11 + $0x78] sm:$0xf] }
  0x66   : > { %v2841_v25 = vrot.slane %v2839_v62, 4  ;;  %5720 = vmatmul.mubr.msk.bf16.gmra.mrb[12].mxu1 %vm725_vm3, %v5017_v7  ;;  %v2286_v31 = vsel %vm6652_vm4, %v2281_v10, %v2285_v56  ;;  %v508_v39 = vshrl.u32 %v6872_v0, 16  ;;  %v511_v42 = vshll.u32 %v6872_v0, 16  ;;  %v282_v57 = vld [vmem:[%s6626_s11 + $0x80] sm:$0x1] }
  0x67   : > { %v505_v38 = vrot.slane %v503_v11, 5  ;;  %v5244_v43 = vcombine.low %v2276_v17, %v2286_v31  ;;  %v491_v44 = vrot.slane %v490_v14, 4  ;;  %v500_v45 = vor.u32 %v499_v18, %v495_v5  ;;  %v5271_v10 = vld [vmem:[%s6626_s11 + $0x24] sm:$0xe] }
  0x68   : > { %v2840_v47 = vsel %vm6878_vm7, %v5285_v21, %v2839_v62  ;;  %v2843_v49 = vsel %vm6878_vm7, %v2841_v25, %v2842_v63  ;;  %v510_v50 = vrot.slane %v508_v39, 4  ;;  %v513_v51 = vrot.slane %v511_v42, 5  ;;  %v6930_v39 = vld [vmem:[%s6626_s11 + $0x84] sm:$0xf] }
  0x69   : > { %v517_v52 = vshll.u32 %v6885_v29, 16  ;;  %5856 = vmatmul.mubr.msk.bf16.gmra.mrb[12].mxu0 %vm725_vm3, %v5244_v43  ;;  %v496_v15 = vsel %vm6652_vm4, %v491_v44, %v495_v5  ;;  %v501_v62 = vrot.slane %v500_v45, 4  ;;  %v5302_v55 = vcombine.low %v2840_v47, %v2843_v49  ;;  %v6938_v43 = vld [vmem:[%s6626_s11 + $0x88] sm:$0xf] }
  0x6a   : > { %v521_v56 = vshrl.u32 %v6885_v29, 16  ;;  %v514_v63 = vor.u32 %v513_v51, %v510_v50  ;;  %v527_v61 = vshll.u32 %v281_v26, 16  ;;  %v5286_v2 = vrot.slane %v5270_v48, 9 }
  0x6b   : > { %v519_v58 = vrot.slane %v517_v52, 5  ;;  %v506_v6 = vsel %vm6652_vm4, %v501_v62, %v505_v38  ;;  %5877 = vmatprep.mubr.msk.bf16.mxu0 %vm725_vm3, %v5302_v55  ;;  %v2850_v5 = vsel %vm6878_vm7, %v6695_v30, %v2849_v28  ;;  %v532_v17 = vshrl.u32 %v6904_v53, 16  ;;  %v283_v52 = vld [vmem:[%s6626_s11 + $0x8c] sm:$0x1] }
  0x6c   : > { %v523_v7 = vrot.slane %v521_v56, 4  ;;  %v5018_v11 = vcombine.low %v496_v15, %v506_v6  ;;  %v515_v14 = vrot.slane %v514_v63, 4  ;;  %v529_v18 = vrot.slane %v527_v61, 5 }
  0x6d   : > { %v2847_v21 = vsel %vm6878_vm7, %v5286_v2, %v2846_v22  ;;  %v534_v38 = vrot.slane %v532_v17, 4  ;;  %v535_v1 = vshll.u32 %v6904_v53, 16  ;;  %v541_v30 = vshll.u32 %v6911_v16, 16  ;;  %v6943_v22 = vld [vmem:[%s8434_s1 + $0xe] sm:$0x3] }
  0x6e   : > { %v524_v25 = vor.u32 %v523_v7, %v519_v58  ;;  %v5303_v31 = vcombine.low %v2847_v21, %v2850_v5  ;;  %5723 = vmatprep.mubr.msk.bf16.mxu1 %vm725_vm3, %v5018_v11  ;;  %v520_v28 = vsel %vm6652_vm4, %v515_v14, %v519_v58  ;;  %v545_v60 = vshrl.u32 %v6911_v16, 16  ;;  %v6962_v5 = vld [vmem:[%s6626_s11 + $0x90] sm:$0xf] }
  0x6f   : > { %v551_v42 = vshll.u32 %v282_v57, 16  ;;  %v537_v45 = vrot.slane %v535_v1, 5  ;;  %v5287_v47 = vrot.slane %v5271_v10, 9  ;;  %v2853_v26 = vrot.slane %v6702_v46, 5  ;;  %v5272_v57 = vld [vmem:[%s6626_s11 + $0x30] sm:$0xe] }
  0x70   : > { %v525_v44 = vrot.slane %v524_v25, 4  ;;  %v543_v48 = vrot.slane %v541_v30, 5  ;;  %v547_v49 = vrot.slane %v545_v60, 4  ;;  %v2856_v51 = vrot.slane %v6711_v54, 5  ;;  %v6974_v30 = vld [vmem:[%s6626_s11 + $0x94] sm:$0xf] }
  0x71   : > { %v553_v50 = vrot.slane %v551_v42, 5  ;;  %5878 = vmatmul.mubr.msk.bf16.vlgmr.msra.gmra.mrb[0].mxu0 %vm725_vm3, %v5303_v31  ;;  %v538_v62 = vor.u32 %v537_v45, %v534_v38  ;;  %v2854_v55 = vsel %vm6878_vm7, %v5287_v47, %v2853_v26  ;;  %v2855_v56 = vrot.slane %v2853_v26, 4  ;;  %v284_v60 = vld [vmem:[%s6626_s11 + $0x98] sm:$0x1]  ;;  %v5273_v26 = vld [vmem:[%s6626_s11 + $0x3c] sm:$0xe] }
  0x72   : > { %v530_v15 = vsel %vm6652_vm4, %v525_v44, %v529_v18  ;;  %5910 = vmatpush3.bf16.msra.mxu0 %v6662_v41  ;;  %v548_v46 = vor.u32 %v547_v49, %v543_v48  ;;  %v556_v58 = vshrl.u32 %v6930_v39, 16  ;;  %v559_v54 = vshll.u32 %v6930_v39, 16 }
  0x73   : > { %v5019_v63 = vcombine.low %v520_v28, %v530_v15  ;;  %v539_v61 = vrot.slane %v538_v62, 4  ;;  %v2857_v2 = vsel %vm6878_vm7, %v2855_v56, %v2856_v51  ;;  %v565_v6 = vshll.u32 %v6938_v43, 16  ;;  %6277 = vmatprep.subr.msk.bf16.mxu0 %vm774_vm0, %v6943_v22 }
  0x74   : > { %v569_v7 = vshrl.u32 %v6938_v43, 16  ;;  %v549_v41 = vrot.slane %v548_v46, 4  ;;  %v5304_v17 = vcombine.low %v2854_v55, %v2857_v2  ;;  %v558_v10 = vrot.slane %v556_v58, 4  ;;  %v6994_v46 = vld [vmem:[%s6626_s11 + $0xa0] sm:$0xf] }
  0x75   : > { %5724 = vmatmul.mubr.msk.bf16.gmra.mrb[16].mxu1 %vm725_vm3, %v5019_v63  ;;  %v561_v11 = vrot.slane %v559_v54, 5  ;;  %v544_v14 = vsel %vm6652_vm4, %v539_v61, %v543_v48  ;;  %v567_v18 = vrot.slane %v565_v6, 5  ;;  %v575_v25 = vshll.u32 %v283_v52, 16  ;;  %v6983_v52 = vld [vmem:[%s6626_s11 + $0x9c] sm:$0xf] }
  0x76   : > { %v571_v21 = vrot.slane %v569_v7, 4  ;;  %v554_v31 = vsel %vm6652_vm4, %v549_v41, %v553_v50  ;;  %5881 = vmatprep.mubr.msk.bf16.mxu0 %vm725_vm3, %v5304_v17  ;;  %v5288_v1 = vrot.slane %v5272_v57, 9  ;;  %v2860_v28 = vrot.slane %v6731_v33, 5 }
  0x77   : > { %v562_v38 = vor.u32 %v561_v11, %v558_v10  ;;  %v5020_v42 = vcombine.low %v544_v14, %v554_v31  ;;  %v577_v45 = vrot.slane %v575_v25, 5  ;;  %v2863_v47 = vrot.slane %v6739_v40, 5  ;;  %v285_v10 = vld [vmem:[%s6626_s11 + $0xa4] sm:$0x1]  ;;  %v5274_v11 = vld [vmem:[%s6626_s11 + $0x48] sm:$0xe] }
  0x78   : > { %v572_v44 = vor.u32 %v571_v21, %v567_v18  ;;  %v2861_v49 = vsel %vm6878_vm7, %v5288_v1, %v2860_v28  ;;  %v2862_v50 = vrot.slane %v2860_v28, 4  ;;  %v580_v51 = vshrl.u32 %v6962_v5, 16 }
  0x79   : > { %v563_v48 = vrot.slane %v562_v38, 4  ;;  %5727 = vmatprep.mubr.msk.bf16.mxu1 %vm725_vm3, %v5020_v42  ;;  %v583_v15 = vshll.u32 %v6962_v5, 16  ;;  %v589_v62 = vshll.u32 %v6974_v30, 16  ;;  %v593_v40 = vshrl.u32 %v6974_v30, 16 }
  0x7a   : > { %v573_v33 = vrot.slane %v572_v44, 4  ;;  %v2864_v56 = vsel %vm6878_vm7, %v2862_v50, %v2863_v47  ;;  %v582_v57 = vrot.slane %v580_v51, 4  ;;  %v599_v63 = vshll.u32 %v284_v60, 16 }
  0x7b   : > { %v568_v55 = vsel %vm6652_vm4, %v563_v48, %v567_v18  ;;  %v5305_v54 = vcombine.low %v2861_v49, %v2864_v56  ;;  %v585_v61 = vrot.slane %v583_v15, 5  ;;  %v591_v2 = vrot.slane %v589_v62, 5  ;;  %v7020_v56 = vld [vmem:[%s6626_s11 + $0xac] sm:$0xf] }
  0x7c   : > { %v578_v58 = vsel %vm6652_vm4, %v573_v33, %v577_v45  ;;  %v595_v7 = vrot.slane %v593_v40, 4  ;;  %v601_v41 = vrot.slane %v599_v63, 5  ;;  %v5289_v17 = vrot.slane %v5273_v26, 9  ;;  %v7015_v33 = vld [vmem:[%s6626_s11 + $0xa8] sm:$0xf] }
  0x7d   : > { %v5021_v6 = vcombine.low %v568_v55, %v578_v58  ;;  %5882 = vmatmul.mubr.msk.bf16.gmra.mrb[4].mxu0 %vm725_vm3, %v5305_v54  ;;  %v586_v14 = vor.u32 %v585_v61, %v582_v57  ;;  %v2867_v18 = vrot.slane %v6756_v20, 5  ;;  %v2870_v21 = vrot.slane %v6761_v34, 5  ;;  %v286_v61 = vld [vmem:[%s6626_s11 + $0xb0] sm:$0x1] }
  0x7e   : > { %v604_v25 = vshrl.u32 %v6983_v52, 16  ;;  %v596_v31 = vor.u32 %v595_v7, %v591_v2  ;;  %v607_v38 = vshll.u32 %v6983_v52, 16  ;;  %v613_v1 = vshll.u32 %v6994_v46, 16 }
  0x7f   : > { %5728 = vmatmul.mubr.msk.bf16.gmra.mrb[20].mxu1 %vm725_vm3, %v5021_v6  ;;  %v617_v28 = vshrl.u32 %v6994_v46, 16  ;;  %v587_v60 = vrot.slane %v586_v14, 4  ;;  %v2868_v42 = vsel %vm6878_vm7, %v5289_v17, %v2867_v18  ;;  %v2869_v20 = vrot.slane %v2867_v18, 4  ;;  %v7035_v14 = vld [vmem:[%s6626_s11 + $0xb4] sm:$0xf] }
  0x80   : > { %v606_v44 = vrot.slane %v604_v25, 4  ;;  %v597_v34 = vrot.slane %v596_v31, 4  ;;  %v609_v45 = vrot.slane %v607_v38, 5  ;;  %v615_v47 = vrot.slane %v613_v1, 5 }
  0x81   : > { %v619_v26 = vrot.slane %v617_v28, 4  ;;  %v592_v48 = vsel %vm6652_vm4, %v587_v60, %v591_v2  ;;  %v2871_v49 = vsel %vm6878_vm7, %v2869_v20, %v2870_v21  ;;  %v623_v50 = vshll.u32 %v285_v10, 16  ;;  %v5275_v2 = vld [vmem:[%s6626_s11 + $0x54] sm:$0xe] }
  0x82   : > { %v5290_v51 = vrot.slane %v5274_v11, 9  ;;  %v602_v15 = vsel %vm6652_vm4, %v597_v34, %v601_v41  ;;  %v5306_v62 = vcombine.low %v2868_v42, %v2871_v49  ;;  %v610_v40 = vor.u32 %v609_v45, %v606_v44  ;;  %v7044_v42 = vld [vmem:[%s6626_s11 + $0xb8] sm:$0xf]  ;;  %v287_v49 = vld [vmem:[%s6626_s11 + $0xbc] sm:$0x1] }
  0x83   : > { %v620_v55 = vor.u32 %v619_v26, %v615_v47  ;;  %v5022_v57 = vcombine.low %v592_v48, %v602_v15  ;;  %v625_v63 = vrot.slane %v623_v50, 5  ;;  %v2874_v58 = vrot.slane %v6779_v8, 5 }
  0x84   : > { %v2877_v54 = vrot.slane %v6787_v23, 5  ;;  %5885 = vmatprep.mubr.msk.bf16.mxu0 %vm725_vm3, %v5306_v62  ;;  %v611_v6 = vrot.slane %v610_v40, 4  ;;  %v628_v41 = vshrl.u32 %v7015_v33, 16  ;;  %v631_v17 = vshll.u32 %v7015_v33, 16 }
  0x85   : > { %v621_v7 = vrot.slane %v620_v55, 4  ;;  %5731 = vmatprep.mubr.msk.bf16.mxu1 %vm725_vm3, %v5022_v57  ;;  %v2875_v10 = vsel %vm6878_vm7, %v5290_v51, %v2874_v58  ;;  %v2876_v11 = vrot.slane %v2874_v58, 4  ;;  %v637_v8 = vshll.u32 %v7020_v56, 16  ;;  %v5276_v55 = vld [vmem:[%s6626_s11 + $0x60] sm:$0xe] }
  0x86   : > { %v641_v23 = vshrl.u32 %v7020_v56, 16  ;;  %v616_v18 = vsel %vm6652_vm4, %v611_v6, %v615_v47  ;;  %v630_v25 = vrot.slane %v628_v41, 4  ;;  %v633_v31 = vrot.slane %v631_v17, 5  ;;  %v5277_v6 = vld [vmem:[%s6626_s11 + $0x6c] sm:$0xe] }
  0x87   : > { %v626_v21 = vsel %vm6652_vm4, %v621_v7, %v625_v63  ;;  %v2878_v1 = vsel %vm6878_vm7, %v2876_v11, %v2877_v54  ;;  %v639_v28 = vrot.slane %v637_v8, 5  ;;  %v647_v34 = vshll.u32 %v286_v61, 16  ;;  %v5213_v11 = vld [vmem:[%s6626_s11 + $0x70] sm:$0xf]  ;;  %v5214_v8 = vld [vmem:[%s6626_s11 + $0x74] sm:$0x1] }
  0x88   : > { %v5023_v38 = vcombine.low %v616_v18, %v626_v21  ;;  %v643_v60 = vrot.slane %v641_v23, 4  ;;  %v5307_v20 = vcombine.low %v2875_v10, %v2878_v1  ;;  %v634_v44 = vor.u32 %v633_v31, %v630_v25 }
  0x89   : > { %v5291_v45 = vrot.slane %v5275_v2, 9  ;;  %v2881_v26 = vrot.slane %v6810_v4, 5  ;;  %v2884_v48 = vrot.slane %v6816_v12, 5  ;;  %v652_v50 = vshrl.u32 %v7035_v14, 16 }
  0x8a   : > { %5732 = vmatmul.mubr.msk.bf16.gmra.mrb[24].mxu1 %vm725_vm3, %v5023_v38  ;;  %v644_v47 = vor.u32 %v643_v60, %v639_v28  ;;  %5886 = vmatmul.mubr.msk.bf16.gmra.mrb[8].mxu0 %vm725_vm3, %v5307_v20  ;;  %v635_v51 = vrot.slane %v634_v44, 4  ;;  %v649_v15 = vrot.slane %v647_v34, 5  ;;  %v655_v62 = vshll.u32 %v7035_v14, 16 }
  0x8b   : > { %v661_v40 = vshll.u32 %v7044_v42, 16  ;;  %v2882_v4 = vsel %vm6878_vm7, %v5291_v45, %v2881_v26  ;;  %v2883_v12 = vrot.slane %v2881_v26, 4  ;;  %v654_v63 = vrot.slane %v652_v50, 4 }
  0x8c   : > { %v645_v57 = vrot.slane %v644_v47, 4  ;;  %v640_v58 = vsel %vm6652_vm4, %v635_v51, %v639_v28  ;;  %v657_v54 = vrot.slane %v655_v62, 5  ;;  %v665_v2 = vshrl.u32 %v7044_v42, 16  ;;  %v5278_v47 = vld [vmem:[%s6626_s11 + $0x78] sm:$0xe] }
  0x8d   : > { %v663_v61 = vrot.slane %v661_v40, 5  ;;  %v2885_v41 = vsel %vm6878_vm7, %v2883_v12, %v2884_v48  ;;  %v671_v17 = vshll.u32 %v287_v49, 16  ;;  %v5292_v10 = vrot.slane %v5276_v55, 9  ;;  %v6385_v51 = vld [vmem:[%s6626_s11] sm:$0xf] }
  0x8e   : > { %v650_v7 = vsel %vm6652_vm4, %v645_v57, %v649_v15  ;;  %v5308_v18 = vcombine.low %v2882_v4, %v2885_v41  ;;  %v658_v21 = vor.u32 %v657_v54, %v654_v63  ;;  %v667_v25 = vrot.slane %v665_v2, 4  ;;  %v7082_v15 = vld [vmem:[%s6626_s11 + $0x4] sm:$0xf]  ;;  %v7086_v40 = vld [vmem:[%s6626_s11 + $0x7c] sm:$0xf] }
  0x8f   : > { %v5024_v23 = vcombine.low %v640_v58, %v650_v7  ;;  %v673_v31 = vrot.slane %v671_v17, 5  ;;  %v2888_v38 = vrot.slane %v6840_v59, 5  ;;  %v2891_v1 = vrot.slane %v6847_v9, 5  ;;  %v7089_v55 = vld [vmem:[%s6626_s11 + $0x80] sm:$0x1] }
  0x90   : > { %v5293_v28 = vrot.slane %v5277_v6, 9  ;;  %5889 = vmatprep.mubr.msk.bf16.mxu0 %vm725_vm3, %v5308_v18  ;;  %v659_v60 = vrot.slane %v658_v21, 4  ;;  %v668_v20 = vor.u32 %v667_v25, %v663_v61  ;;  %v2895_v44 = vrot.slane %v5213_v11, 5  ;;  %v5219_v57 = vld [vmem:[%s6626_s11 + $0x88] sm:$0xf] }
  0x91   : > { %5735 = vmatprep.mubr.msk.bf16.mxu1 %vm725_vm3, %v5024_v23  ;;  %v2898_v34 = vrot.slane %v5214_v8, 5  ;;  %v2889_v45 = vsel %vm6878_vm7, %v5292_v10, %v2888_v38  ;;  %v2890_v59 = vrot.slane %v2888_v38, 4  ;;  %v5042_v62 = vcombine.low %v6385_v51, %v7082_v15  ;;  %v5220_v54 = vld [vmem:[%s6626_s11 + $0x8c] sm:$0x1]  ;;  %v5222_v17 = vld [vmem:[%s6626_s11 + $0x94] sm:$0xf] }
  0x92   : > { %v664_v9 = vsel %vm6652_vm4, %v659_v60, %v663_v61  ;;  %v669_v26 = vrot.slane %v668_v20, 4  ;;  %v2896_v48 = vsel %vm6878_vm7, %v5293_v28, %v2895_v44  ;;  %v2897_v49 = vrot.slane %v2895_v44, 4  ;;  %v5279_v61 = vld [vmem:[%s6626_s11 + $0x84] sm:$0xe]  ;;  %v5280_v23 = vld [vmem:[%s6626_s11 + $0x90] sm:$0xe] }
  0x93   : > { %v2892_v50 = vsel %vm6878_vm7, %v2890_v59, %v2891_v1  ;;  %v5294_v58 = vrot.slane %v5278_v47, 9  ;;  %v2902_v7 = vrot.slane %v7086_v40, 5  ;;  %v2905_v41 = vrot.slane %v7089_v55, 5  ;;  %v5223_v25 = vld [vmem:[%s6626_s11 + $0x98] sm:$0x1] }
  0x94   : > { %v674_v4 = vsel %vm6652_vm4, %v669_v26, %v673_v31  ;;  %v5309_v12 = vcombine.low %v2889_v45, %v2892_v50  ;;  %v2899_v63 = vsel %vm6878_vm7, %v2897_v49, %v2898_v34  ;;  %v5295_v10 = vrot.slane %v5279_v61, 9  ;;  %v5225_v31 = vld [vmem:[%s6626_s11 + $0xa0] sm:$0xf]  ;;  %v5226_v60 = vld [vmem:[%s6626_s11 + $0xa4] sm:$0x1] }
  0x95   : > { %v5025_v2 = vcombine.low %v664_v9, %v674_v4  ;;  %v5310_v6 = vcombine.low %v2896_v48, %v2899_v63  ;;  %v2909_v11 = vrot.slane %v5219_v57, 5  ;;  %v2912_v8 = vrot.slane %v5220_v54, 5  ;;  %v5281_v20 = vld [vmem:[%s6626_s11 + $0x9c] sm:$0xe]  ;;  %v6387_v44 = vld [vmem:[%s6626_s11 + $0xc] sm:$0xf] }
  0x96   : > { %5890 = vmatmul.mubr.msk.bf16.gmra.mrb[12].mxu0 %vm725_vm3, %v5309_v12  ;;  %v2903_v18 = vsel %vm6878_vm7, %v5294_v58, %v2902_v7  ;;  %v2904_v21 = vrot.slane %v2902_v7, 4  ;;  %v2916_v28 = vrot.slane %v5222_v17, 5  ;;  %v7116_v34 = vld [vmem:[%s6626_s11 + $0x10] sm:$0xf]  ;;  %v6389_v47 = vld [vmem:[%s6626_s11 + $0x18] sm:$0xf] }
  0x97   : > { %5736 = vmatmul.mubr.msk.bf16.gmra.mrb[28].mxu1 %vm725_vm3, %v5025_v2  ;;  %5893 = vmatprep.mubr.msk.bf16.mxu0 %vm725_vm3, %v5310_v6  ;;  %v2910_v38 = vsel %vm6878_vm7, %v5295_v10, %v2909_v11  ;;  %v2911_v1 = vrot.slane %v2909_v11, 4  ;;  %v5043_v45 = vcombine.low %v6387_v44, %v7116_v34  ;;  %v7123_v9 = vld [vmem:[%s6626_s11 + $0x1c] sm:$0xf]  ;;  %v5296_v48 = vrot.slane %v5280_v23, 9  ;;  %v5228_v57 = vld [vmem:[%s6626_s11 + $0xac] sm:$0xf] }
  0x98   : > { %5741 = vmatprep.mubr.msk.bf16.mxu1 %vm725_vm3, %v5042_v62  ;;  %v2906_v59 = vsel %vm6878_vm7, %v2904_v21, %v2905_v41  ;;  %v5044_v26 = vcombine.low %v6389_v47, %v7123_v9  ;;  %v2918_v51 = vrot.slane %v2916_v28, 4  ;;  %v2919_v62 = vrot.slane %v5223_v25, 5  ;;  %v6391_v54 = vld [vmem:[%s8434_s1 + $0x4] sm:$0x3]  ;;  %v5231_v2 = vld [vmem:[%s6626_s11 + $0xb8] sm:$0xf] }
  0x99   : > { %v5311_v49 = vcombine.low %v2903_v18, %v2906_v59  ;;  %v2913_v50 = vsel %vm6878_vm7, %v2911_v1, %v2912_v8  ;;  %v5297_v12 = vrot.slane %v5281_v20, 9  ;;  %v2923_v63 = vrot.slane %v5225_v31, 5  ;;  %v7138_v7 = vld [vmem:[%s8434_s1 + $0x6] sm:$0x3]  ;;  %v5229_v10 = vld [vmem:[%s6626_s11 + $0xb0] sm:$0x1] }
  0x9a   : > { %v5312_v4 = vcombine.low %v2910_v38, %v2913_v50  ;;  %v2926_v58 = vrot.slane %v5226_v60, 5  ;;  %v1493_v61 = vsel %vm774_vm0, %v6391_v54, 0  ;;  %v2917_v41 = vsel %vm6878_vm7, %v5296_v48, %v2916_v28  ;;  %v5282_v11 = vld [vmem:[%s6626_s11 + $0xa8] sm:$0xe]  ;;  %v5232_v25 = vld [vmem:[%s6626_s11 + $0xbc] sm:$0x1] }
  0x9b   : > { %v2925_v6 = vrot.slane %v2923_v63, 4  ;;  %v2920_v17 = vsel %vm6878_vm7, %v2918_v51, %v2919_v62  ;;  %v2930_v8 = vrot.slane %v5228_v57, 5  ;;  %v2924_v23 = vsel %vm6878_vm7, %v5297_v12, %v2923_v63  ;;  %v5283_v31 = vld [vmem:[%s6626_s11 + $0xb4] sm:$0xe]  ;;  %v6392_v38 = vld [vmem:[%s6626_s11 + $0x24] sm:$0xf] }
  0x9c   : > { %v2937_v21 = vrot.slane %v5231_v2, 5  ;;  %v7159_v1 = vld [vmem:[%s6626_s11 + $0x28] sm:$0xf]  ;;  %v5313_v60 = vcombine.low %v2917_v41, %v2920_v17  ;;  %v5298_v44 = vrot.slane %v5282_v11, 9  ;;  %v2933_v59 = vrot.slane %v5229_v10, 5 }
  0x9d   : > { %v2927_v18 = vsel %vm6878_vm7, %v2925_v6, %v2926_v58  ;;  %v5045_v28 = vcombine.low %v6392_v38, %v7159_v1  ;;  %v6394_v47 = vld [vmem:[%s6626_s11 + $0x30] sm:$0xf]  ;;  %v2940_v51 = vrot.slane %v5232_v25, 5  ;;  %v5234_v62 = vld [vmem:[%s6626_s11 + $0xc4] sm:$0xf]  ;;  %v2325_v25 = vshrl.u32 %v7086_v40, 16 }
  0x9e   : > { %5894 = vmatmul.mubr.msk.bf16.gmra.mrb[16].mxu0 %vm725_vm3, %v5311_v49  ;;  %v5314_v20 = vcombine.low %v2924_v23, %v2927_v18  ;;  %v5299_v49 = vrot.slane %v5283_v31, 9  ;;  %v2939_v50 = vrot.slane %v2937_v21, 4  ;;  %v2931_v57 = vsel %vm6878_vm7, %v5298_v44, %v2930_v8  ;;  %v5284_v12 = vld [vmem:[%s6626_s11 + $0xc0] sm:$0xe]  ;;  %v6396_v41 = vld [vmem:[%s6626_s11 + $0x3c] sm:$0xf] }
  0x9f   : > { %5742 = vmatmul.mubr.msk.bf16.vlgmr.msra.gmra.mrb[0].mxu1 %vm725_vm3, %v5043_v45  ;;  %5897 = vmatprep.mubr.msk.bf16.mxu0 %vm725_vm3, %v5312_v4  ;;  %v2932_v45 = vrot.slane %v2930_v8, 4  ;;  %v2944_v63 = vrot.slane %v5234_v62, 5  ;;  %v5300_v6 = vrot.slane %v5284_v12, 9  ;;  %v7184_v17 = vld [vmem:[%s6626_s11 + $0x40] sm:$0xf]  ;;  %v5048_v18 = vcombine.low %v6791_v27, %v6794_v36  ;;  %v6348_v62 = vld [vmem:[%s6626_s11 + $0x24] sm:$0xff]  }
  0xa0   : > { %5774 = vmatpush3.bf16.msra.mxu1 %v1493_v61  ;;  %5745 = vmatprep.mubr.msk.bf16.mxu1 %vm725_vm3, %v5044_v26  ;;  %v7164_v26 = vld [vmem:[%s6626_s11 + $0x34] sm:$0xf]  ;;  %v2938_v58 = vsel %vm6878_vm7, %v5299_v49, %v2937_v21  ;;  %v2941_v54 = vsel %vm6878_vm7, %v2939_v50, %v2940_v51  ;;  %v5235_v61 = vld [vmem:[%s6626_s11 + $0xc8] sm:$0x1]  ;;  %v5047_v10 = vcombine.low %v6396_v41, %v7184_v17  ;;  %v2321_v21 = vshll.u32 %v7086_v40, 16 }
  0xa1   : > { %6272 = vmatprep.subr.msk.bf16.mxu1 %vm774_vm0, %v7138_v7  ;;  %v5046_v48 = vcombine.low %v6394_v47, %v7164_v26  ;;  %v2934_v4 = vsel %vm6878_vm7, %v2932_v45, %v2933_v59  ;;  %v5316_v11 = vcombine.low %v2938_v58, %v2941_v54  ;;  %v2946_v8 = vrot.slane %v2944_v63, 4  ;;  %v1231_v45 = vld [vmem:[%s6626_s11] sm:$0xe]  ;;  %v1232_v59 = vld [vmem:[%s6626_s11 + $0xc] sm:$0xe] }
  0xa2   : > { %v5315_v2 = vcombine.low %v2931_v57, %v2934_v4  ;;  %v2947_v23 = vrot.slane %v5235_v61, 5  ;;  %v2945_v31 = vsel %vm6878_vm7, %v5300_v6, %v2944_v63  ;;  %v7199_v27 = vrot.slane %v2321_v21, 5  ;;  %v1235_v41 = vld [vmem:[%s6626_s11 + $0x30] sm:$0xe] }
  0xa3   : > { %v2327_v36 = vrot.slane %v2325_v25, 4  ;;  %v5050_v44 = vcombine.low %v6851_v19, %v6857_v35  ;;  %v2331_v47 = vshll.u32 %v7089_v55, 16  ;;  %v5074_v19 = vrot.slane %v1231_v45, 9 }
  0xa4   : > { %v2948_v38 = vsel %vm6878_vm7, %v2946_v8, %v2947_v23  ;;  %8457 = vst [vmem:[#allocation6_spill] sm:$0xff] %v7199_v27  ;;  %v5075_v35 = vrot.slane %v1232_v59, 9  ;;  %v1298_v4 = vrot.slane %v7123_v9, 5  ;;  %v1305_v12 = vrot.slane %v7159_v1, 5  ;;  %v1236_v8 = vld [vmem:[%s6626_s11 + $0x3c] sm:$0xe] }
  0xa5   : > { %v5317_v40 = vcombine.low %v2945_v31, %v2948_v38  ;;  %v2328_v49 = vor.u32 %v2327_v36, %v7199_v27  ;;  %v7219_v51 = vrot.slane %v2331_v47, 5  ;;  %v5051_v58 = vcombine.low %v6872_v0, %v6885_v29  ;;  %v1237_v31 = vld [vmem:[%s6626_s11 + $0x48] sm:$0xe]  ;;  %v6402_v59 = vld [vmem:[%s6626_s11 + $0x38] sm:$0x1] }
  0xa6   : > { %5898 = vmatmul.mubr.msk.bf16.gmra.mrb[20].mxu0 %vm725_vm3, %v5313_v60  ;;  %v5049_v60 = vcombine.low %v6820_v24, %v6826_v37  ;;  %v6399_v24 = vld [vmem:[%s6626_s11 + $0x14] sm:$0x1]  ;;  %v4133_v54 = vsel %vm774_vm0, %v6943_v22, 0  ;;  %v5052_v61 = vcombine.low %v6904_v53, %v6911_v16  ;;  %v5053_v6 = vcombine.low %v6930_v39, %v6938_v43  ;;  %v6400_v16 = vld [vmem:[%s6626_s11 + $0x20] sm:$0x1] }
  0xa7   : > { %5746 = vmatmul.mubr.msk.bf16.gmra.mrb[4].mxu1 %vm725_vm3, %v5045_v28  ;;  %5901 = vmatprep.mubr.msk.bf16.mxu0 %vm725_vm3, %v5314_v20  ;;  %v1291_v28 = vrot.slane %v7116_v34, 5  ;;  %v6346_v20 = vld [vmem:[%s6626_s11 + $0x18] sm:$0xff]   ;;  %v6398_v34 = vld [vmem:[%s6626_s11 + $0x8] sm:$0x1]  ;;  %v1294_v37 = vrot.slane %v6399_v24, 5  ;;  %8458 = vst [vmem:[#allocation7_spill] sm:$0xff] %v7219_v51  ;;  %v5054_v9 = vcombine.low %v6962_v5, %v6974_v30 }
  0xa8   : > { %5749 = vmatprep.mubr.msk.bf16.mxu1 %vm725_vm3, %v5046_v48  ;;  %v1284_v48 = vrot.slane %v7082_v15, 5  ;;  %v1287_v50 = vrot.slane %v6398_v34, 5  ;;  %v1233_v15 = vld [vmem:[%s6626_s11 + $0x18] sm:$0xe]  ;;  %v7224_v63 = vrot.slane %v2328_v49, 4  ;;  %v1301_v22 = vrot.slane %v6400_v16, 5 }
  0xa9   : > { %v1293_v55 = vrot.slane %v1291_v28, 4  ;;  %v5076_v1 = vrot.slane %v1233_v15, 9  ;;  %v7246_v29 = vsel %vm6878_vm7, %v5075_v35, %v1291_v28  ;;  %v1307_v25 = vrot.slane %v1305_v12, 4  ;;  %v5399_v24 = vld [vmem:[%s6626_s11 + $0x18] sm:$0xf] }
  0xaa   : > { %v1286_v57 = vrot.slane %v1284_v48, 4  ;;  %8459 = vst [vmem:[#allocation8_spill] sm:$0xff] %v7224_v63  ;;  %v7242_v0 = vsel %vm6878_vm7, %v5074_v19, %v1284_v48  ;;  %v1315_v47 = vrot.slane %v6402_v59, 5  ;;  %v7283_v49 = vsel %vm774_vm0, %v7138_v7, 0  ;;  %v5400_v7 = vld [vmem:[%s6626_s11 + $0x1c] sm:$0xf] }
  0xab   : > { %v7250_v53 = vsel %vm6878_vm7, %v1293_v55, %v1294_v37  ;;  %v7287_v34 = vsel %vm6878_vm7, %v5076_v1, %v1298_v4  ;;  %v6352_v37 = vld [vmem:[%s6626_s11 + $0x3c] sm:$0xff]   ;;  %v5079_v35 = vrot.slane %v1236_v8, 9  ;;  %v6403_v55 = vld [vmem:[%s6626_s11 + $0x44] sm:$0x1]  ;;  %v3654_v8 = vshll.u32 %v5399_v24, 16 }
  0xac   : > { %v7261_v23 = vsel %vm6878_vm7, %v1286_v57, %v1287_v50  ;;  %v1238_v50 = vld [vmem:[%s6626_s11 + $0x54] sm:$0xe]  ;;  %v1322_v15 = vrot.slane %v6403_v55, 5  ;;  %v5403_v39 = vld [vmem:[%s6626_s11 + $0x28] sm:$0xf] }
  0xad   : > { %v6410_v5 = vld [vmem:[%s6626_s11 + $0x70] sm:$0xf] }
  0xae   : > { %5902 = vmatmul.mubr.msk.bf16.gmra.mrb[24].mxu0 %vm725_vm3, %v5315_v2  ;;  %v1234_v2 = vld [vmem:[%s6626_s11 + $0x24] sm:$0xe]  ;;  %v1347_v30 = vrot.slane %v6410_v5, 5 }
  0xaf   : > { %5750 = vmatmul.mubr.msk.bf16.gmra.mrb[8].mxu1 %vm725_vm3, %v5047_v10  ;;  %5905 = vmatprep.mubr.msk.bf16.mxu0 %vm725_vm3, %v5316_v11  ;;  %v1312_v10 = vrot.slane %v7164_v26, 5  ;;  %v6350_v11 = vld [vmem:[%s6626_s11 + $0x30] sm:$0xff]   ;;  %v5077_v21 = vrot.slane %v1234_v2, 9 }
  0xb0   : > { %5753 = vmatprep.mubr.msk.bf16.mxu1 %vm725_vm3, %v5048_v18  ;;  %v7257_v26 = vld [vmem:[%s8434_s1 + $0x10] sm:$0x3]  ;;  %v1300_v18 = vrot.slane %v1298_v4, 4  ;;  %v1349_v48 = vrot.slane %v1347_v30, 4 }
  0xb1   : > { %v1314_v45 = vrot.slane %v1312_v10, 4  ;;  %v7294_v19 = vsel %vm6878_vm7, %v5077_v21, %v1305_v12  ;;  %v3664_v21 = vshrl.u32 %v5400_v7, 16 }
  0xb2   : > { %v7303_v4 = vsel %vm6878_vm7, %v1300_v18, %v1301_v22  ;;  %v3651_v22 = vshrl.u32 %v5399_v24, 16  ;;  %v3660_v18 = vshll.u32 %v5400_v7, 16  ;;  %v5402_v24 = vld [vmem:[%s6626_s11 + $0x24] sm:$0xf] }
  0xb3   : > { %v7316_v1 = vsel %vm6878_vm7, %v1314_v45, %v1315_v47 }
  0xb4   : > { %v3653_v43 = vrot.slane %v3651_v22, 4  ;;  %v7358_v7 = vrot.slane %v3660_v18, 5  ;;  %v3678_v22 = vshll.u32 %v5402_v24, 16  ;;  %v3688_v18 = vshrl.u32 %v5403_v39, 16 }
  0xb6   : > { %5906 = vmatmul.mubr.msk.bf16.gmra.mrb[28].mxu0 %vm725_vm3, %v5317_v40  ;;  %v6401_v40 = vld [vmem:[%s6626_s11 + $0x2c] sm:$0x1]  ;;  %v3680_v27 = vrot.slane %v3678_v22, 5 }
  0xb7   : > { %5754 = vmatmul.mubr.msk.bf16.gmra.mrb[12].mxu1 %vm725_vm3, %v5049_v60  ;;  %5911 = vmatprep.mubr.msk.bf16.mxu0 %vm725_vm3, %v6346_v20  ;;  %v1308_v28 = vrot.slane %v6401_v40, 5  ;;  %v1319_v60 = vrot.slane %v7184_v17, 5  ;;  %v6406_v40 = vld [vmem:[%s6626_s11 + $0x50] sm:$0x1]  ;;  %v6411_v17 = vld [vmem:[%s6626_s11 + $0x74] sm:$0x1] }
  0xb8   : > { %5757 = vmatprep.mubr.msk.bf16.mxu1 %vm725_vm3, %v5050_v44  ;;  %v5078_v44 = vrot.slane %v1235_v41, 9  ;;  %v5081_v41 = vrot.slane %v1238_v50, 9  ;;  %v1239_v50 = vld [vmem:[%s6626_s11 + $0x60] sm:$0xe]  ;;  %v5404_v20 = vld [vmem:[%s6626_s11 + $0x2c] sm:$0x1] }
  0xb9   : > { %v1321_v12 = vrot.slane %v1319_v60, 4  ;;  %v7329_v45 = vsel %vm6878_vm7, %v5079_v35, %v1319_v60  ;;  %v6407_v35 = vld [vmem:[%s6626_s11 + $0x5c] sm:$0x1] }
  0xba   : > { %v7312_v2 = vsel %vm6878_vm7, %v5078_v44, %v1312_v10  ;;  %v1336_v55 = vrot.slane %v6407_v35, 5  ;;  %v1240_v35 = vld [vmem:[%s6626_s11 + $0x6c] sm:$0xe] }
  0xbb   : > { %v7333_v59 = vsel %vm6878_vm7, %v1321_v12, %v1322_v15  ;;  %v6408_v15 = vld [vmem:[%s6626_s11 + $0x64] sm:$0xf]  ;;  %v3666_v12 = vrot.slane %v3664_v21, 4  ;;  %v5083_v5 = vrot.slane %v1240_v35, 9 }
  0xbc   : > { %v6358_v21 = vld [vmem:[%s6626_s11 + $0x60] sm:$0xff]  }
  0xbe   : > { %5912 = vmatmul.mubr.msk.bf16.vlgmr.msra.gmra.mrb[0].mxu0 %vm725_vm3, %v6348_v62  ;;  %v6404_v62 = vld [vmem:[%s6626_s11 + $0x4c] sm:$0xf] }
  0xbf   : > { %5758 = vmatmul.mubr.msk.bf16.gmra.mrb[16].mxu1 %vm725_vm3, %v5051_v58  ;;  %5944 = vmatpush3.bf16.msra.mxu0 %v4133_v54  ;;  %v1326_v57 = vrot.slane %v6404_v62, 5  ;;  %v7307_v58 = vsel %vm6878_vm7, %v1307_v25, %v1308_v28  ;;  %v5080_v54 = vrot.slane %v1237_v31, 9  ;;  %v1329_v28 = vrot.slane %v6406_v40, 5 }
  0xc0   : > { %5761 = vmatprep.mubr.msk.bf16.mxu1 %vm725_vm3, %v5052_v61  ;;  %5915 = vmatprep.mubr.msk.bf16.mxu0 %vm725_vm3, %v6350_v11  ;;  %v6354_v61 = vld [vmem:[%s6626_s11 + $0x48] sm:$0xff]   ;;  %v6405_v11 = vld [vmem:[%s6626_s11 + $0x58] sm:$0xf]  ;;  %v1340_v62 = vrot.slane %v6408_v15, 5  ;;  %v5406_v15 = vld [vmem:[%s6626_s11 + $0x34] sm:$0xf] }
  0xc1   : > { %6278 = vmatprep.subr.msk.bf16.mxu0 %vm774_vm0, %v7257_v26  ;;  %v1333_v16 = vrot.slane %v6405_v11, 5  ;;  %v1328_v31 = vrot.slane %v1326_v57, 4  ;;  %v7337_v47 = vsel %vm6878_vm7, %v5080_v54, %v1326_v57  ;;  %v5401_v57 = vld [vmem:[%s6626_s11 + $0x20] sm:$0x1]  ;;  %v5405_v54 = vld [vmem:[%s6626_s11 + $0x30] sm:$0xf] }
  0xc2   : > { %v5082_v11 = vrot.slane %v1239_v50, 9  ;;  %v3702_v50 = vshll.u32 %v5405_v54, 16  ;;  %v3670_v25 = vshll.u32 %v5401_v57, 16  ;;  %v3708_v36 = vshll.u32 %v5406_v15, 16 }
  0xc3   : > { %v7348_v60 = vsel %vm6878_vm7, %v5081_v41, %v1333_v16  ;;  %v7364_v41 = vsel %vm6878_vm7, %v1328_v31, %v1329_v28  ;;  %v1342_v31 = vrot.slane %v1340_v62, 4  ;;  %v3699_v28 = vshrl.u32 %v5405_v54, 16 }
  0xc4   : > { %v7406_v35 = vrot.slane %v3708_v36, 5 }
  0xc6   : > { %5916 = vmatmul.mubr.msk.bf16.gmra.mrb[4].mxu0 %vm725_vm3, %v6352_v37  ;;  %v1335_v37 = vrot.slane %v1333_v16, 4  ;;  %v6409_v16 = vld [vmem:[%s6626_s11 + $0x68] sm:$0x1] }
  0xc7   : > { %5762 = vmatmul.mubr.msk.bf16.gmra.mrb[20].mxu1 %vm725_vm3, %v5053_v6  ;;  %5919 = vmatprep.mubr.msk.bf16.mxu0 %vm725_vm3, %v6354_v61  ;;  %v3656_v6 = vrot.slane %v3654_v8, 5  ;;  %v6356_v61 = vld [vmem:[%s6626_s11 + $0x54] sm:$0xff]   ;;  %v1343_v40 = vrot.slane %v6409_v16, 5  ;;  %v3684_v8 = vshll.u32 %v5403_v39, 16  ;;  %v3667_v16 = vor.u32 %v3666_v12, %v7358_v7 }
  0xc8   : > { %5765 = vmatprep.mubr.msk.bf16.mxu1 %vm725_vm3, %v5054_v9  ;;  %v3675_v9 = vshrl.u32 %v5402_v24, 16  ;;  %v7373_v44 = vsel %vm6878_vm7, %v1335_v37, %v1336_v55  ;;  %v1350_v24 = vrot.slane %v6411_v17, 5  ;;  %v3712_v39 = vshrl.u32 %v5406_v15, 16 }
  0xc9   : > { %v3657_v10 = vor.u32 %v3656_v6, %v3653_v43  ;;  %v7379_v37 = vrot.slane %v3684_v8, 5  ;;  %v3690_v55 = vrot.slane %v3688_v18, 4  ;;  %v8460_v43 = vcombine.low %v6983_v52, %v6994_v46  ;;  %v6412_v8 = vld [vmem:[%s6626_s11 + $0x7c] sm:$0xf]  ;;  %v7415_v18 = vld [vmem:[%s6626_s11 + $0x38] sm:$0x1] }
  0xca   : > { %v3677_v38 = vrot.slane %v3675_v9, 4  ;;  %v7388_v17 = vsel %vm6878_vm7, %v5082_v11, %v1340_v62  ;;  %v7392_v57 = vsel %vm6878_vm7, %v1342_v31, %v1343_v40  ;;  %v3701_v6 = vrot.slane %v3699_v28, 4  ;;  %8462 = vst [vmem:[#allocation9_spill] sm:$0xff] %v7415_v18 }
  0xcb   : > { %v3704_v12 = vrot.slane %v3702_v50, 5  ;;  %v8461_v52 = vcombine.low %v7015_v33, %v7020_v56  ;;  %v3658_v46 = vrot.slane %v3657_v10, 4  ;;  %v3668_v54 = vrot.slane %v3667_v16, 4  ;;  %v6360_v33 = vld [vmem:[%s6626_s11 + $0x6c] sm:$0xff]   ;;  %v1242_v16 = vld [vmem:[%s6626_s11 + $0x84] sm:$0xe] }
  0xcc   : > { %v3694_v62 = vshll.u32 %v5404_v20, 16  ;;  %v7400_v11 = vsel %vm6878_vm7, %v5083_v5, %v1347_v30  ;;  %v7404_v40 = vsel %vm6878_vm7, %v1349_v48, %v1350_v24  ;;  %v3714_v9 = vrot.slane %v3712_v39, 4  ;;  %v6361_v48 = vld [vmem:[%s6626_s11 + $0x78] sm:$0xff]  }
  0xcd   : > { %v3681_v10 = vor.u32 %v3680_v27, %v3677_v38  ;;  %v3691_v20 = vor.u32 %v3690_v55, %v7379_v37  ;;  %v1354_v30 = vrot.slane %v6412_v8, 5  ;;  %v3705_v38 = vor.u32 %v3704_v12, %v3701_v6  ;;  %v5408_v5 = vld [vmem:[%s6626_s11 + $0x3c] sm:$0xf] }
  0xce   : > { %5920 = vmatmul.mubr.msk.bf16.gmra.mrb[8].mxu0 %vm725_vm3, %v6356_v61  ;;  %v3672_v61 = vrot.slane %v3670_v25, 5  ;;  %v1241_v25 = vld [vmem:[%s6626_s11 + $0x78] sm:$0xe]  ;;  %v7431_v50 = vrot.slane %v3694_v62, 5  ;;  %v3715_v39 = vor.u32 %v3714_v9, %v7406_v35  ;;  %v3718_v55 = vshll.u32 %v7415_v18, 16 }
  0xcf   : > { %5766 = vmatmul.mubr.msk.bf16.gmra.mrb[24].mxu1 %vm725_vm3, %v8460_v43  ;;  %5923 = vmatprep.mubr.msk.bf16.mxu0 %vm725_vm3, %v6358_v21  ;;  %v3663_v21 = vsel %vm6652_vm4, %v3658_v46, %v7358_v7  ;;  %v5084_v24 = vrot.slane %v1241_v25, 9  ;;  %v6413_v43 = vld [vmem:[%s6626_s11 + $0x88] sm:$0xf]  ;;  %v7439_v7 = vld [vmem:[%s6626_s11 + $0x40] sm:$0xf]  ;;  %v3682_v12 = vrot.slane %v3681_v10, 4  ;;  %v8464_v62 = vcombine.low %v7035_v14, %v7044_v42 }
  0xd0   : > { %5769 = vmatprep.mubr.msk.bf16.mxu1 %vm725_vm3, %v8461_v52  ;;  %v3673_v31 = vsel %vm6652_vm4, %v3668_v54, %v3672_v61  ;;  %v1361_v6 = vrot.slane %v6413_v43, 5  ;;  %8463 = vst [vmem:[#allocation10_spill] sm:$0xff] %v7439_v7  ;;  %v3692_v52 = vrot.slane %v3691_v20, 4  ;;  %v1356_v46 = vrot.slane %v1354_v30, 4  ;;  %v6414_v54 = vld [vmem:[%s6626_s11 + $0x80] sm:$0x1] }
  0xd1   : > { %v1357_v61 = vrot.slane %v6414_v54, 5  ;;  %v3706_v9 = vrot.slane %v3705_v38, 4  ;;  %v5085_v25 = vrot.slane %v1242_v16, 9  ;;  %v3723_v8 = vshrl.u32 %v5408_v5, 16  ;;  %v6362_v10 = vld [vmem:[%s6626_s11 + $0x84] sm:$0xff]  }
  0xd2   : > { %v3726_v43 = vshll.u32 %v5408_v5, 16  ;;  %v7453_v20 = vcombine.low %v3663_v21, %v3673_v31  ;;  %v7457_v14 = vsel %vm774_vm0, %v7257_v26, 0  ;;  %v3736_v38 = vshrl.u32 %v7439_v7, 16  ;;  %v6363_v21 = vld [vmem:[%s6626_s11 + $0x90] sm:$0xff]   ;;  %v6419_v18 = vld [vmem:[%s6626_s11 + $0xa0] sm:$0xf] }
  0xd3   : > { %v3716_v16 = vrot.slane %v3715_v39, 4  ;;  %v3720_v5 = vrot.slane %v3718_v55, 5  ;;  %v1363_v54 = vrot.slane %v1361_v6, 4  ;;  %v3687_v31 = vsel %vm6652_vm4, %v3682_v12, %v7379_v37 }
  0xd4   : > { %v3697_v26 = vsel %vm6652_vm4, %v3692_v52, %v7431_v50  ;;  %v7472_v39 = vsel %vm6878_vm7, %v5084_v24, %v1354_v30  ;;  %v7476_v55 = vsel %vm6878_vm7, %v1356_v46, %v1357_v61  ;;  %v3711_v37 = vsel %vm6652_vm4, %v3706_v9, %v7406_v35  ;;  %v5414_v30 = vld [vmem:[%s6626_s11 + $0x54] sm:$0xf]  ;;  %v7493_v24 = vld [vmem:[%s6626_s11 + $0x58] sm:$0xf]  ;;  %v7498_v61 = vld [vmem:[%s6626_s11 + $0x90] sm:$0xe] }
  0xd5   : > { %v7489_v12 = vsel %vm6878_vm7, %v5085_v25, %v1361_v6  ;;  %v3725_v50 = vrot.slane %v3723_v8, 4  ;;  %v3728_v52 = vrot.slane %v3726_v43, 5  ;;  %v3738_v46 = vrot.slane %v3736_v38, 4 }
  0xd6   : > { %5924 = vmatmul.mubr.msk.bf16.gmra.mrb[12].mxu0 %vm725_vm3, %v6360_v33  ;;  %v8465_v33 = vcombine.low %v7242_v0, %v7261_v23  ;;  %v6415_v0 = vld [vmem:[%s6626_s11 + $0x8c] sm:$0x1]  ;;  %v3721_v36 = vsel %vm6652_vm4, %v3716_v16, %v3720_v5  ;;  %v3771_v25 = vshrl.u32 %v5414_v30, 16  ;;  %v3774_v8 = vshll.u32 %v5414_v30, 16 }
  0xd7   : > { %5770 = vmatmul.mubr.msk.bf16.gmra.mrb[28].mxu1 %vm725_vm3, %v8464_v62  ;;  %5927 = vmatprep.mubr.msk.bf16.mxu0 %vm725_vm3, %v6361_v48  ;;  %v3732_v48 = vshll.u32 %v7439_v7, 16  ;;  %v1364_v23 = vrot.slane %v6415_v0, 5  ;;  %v5411_v62 = vld [vmem:[%s6626_s11 + $0x48] sm:$0xf]  ;;  %v7482_v0 = vld [vmem:[%s6626_s11 + $0x4c] sm:$0xf]  ;;  %v8467_v38 = vcombine.low %v7246_v29, %v7250_v53  ;;  %v7516_v16 = vcombine.low %v3687_v31, %v3697_v26 }
  0xd8   : > { %5775 = vmatprep.mubr.msk.bf16.mxu1 %vm725_vm3, %v8465_v33  ;;  %v7479_v33 = vld [vmem:[%s6626_s11 + $0x44] sm:$0x1]  ;;  %v3747_v27 = vshrl.u32 %v5411_v62, 16  ;;  %v3750_v15 = vshll.u32 %v5411_v62, 16  ;;  %v3756_v6 = vshll.u32 %v7482_v0, 16  ;;  %v3760_v9 = vshrl.u32 %v7482_v0, 16 }
  0xd9   : > { %8466 = vst [vmem:[#allocation11_spill] sm:$0xff] %v7479_v33  ;;  %v7495_v28 = vrot.slane %v3732_v48, 5  ;;  %v7504_v35 = vsel %vm6878_vm7, %v1363_v54, %v1364_v23  ;;  %v3780_v43 = vshll.u32 %v7493_v24, 16  ;;  %v3784_v48 = vshrl.u32 %v7493_v24, 16  ;;  %v5417_v31 = vld [vmem:[%s6626_s11 + $0x60] sm:$0xf] }
  0xda   : > { %v3742_v5 = vshll.u32 %v7479_v33, 16  ;;  %v5086_v54 = vrot.slane %v7498_v61, 9  ;;  %v8468_v23 = vcombine.low %v7287_v34, %v7303_v4  ;;  %v7527_v29 = vcombine.low %v3711_v37, %v3721_v36  ;;  %v6364_v26 = vld [vmem:[%s6626_s11 + $0x9c] sm:$0xff]   ;;  %v6365_v30 = vld [vmem:[%s6626_s11 + $0xa8] sm:$0xff]  }
  0xdb   : > { %v3729_v53 = vor.u32 %v3728_v52, %v3725_v50  ;;  %v3749_v62 = vrot.slane %v3747_v27, 4  ;;  %v7538_v34 = vrot.slane %v3756_v6, 5  ;;  %v3762_v4 = vrot.slane %v3760_v9, 4  ;;  %v6416_v36 = vld [vmem:[%s8434_s1 + $0x8] sm:$0x3] }
  0xdc   : > { %v3773_v27 = vrot.slane %v3771_v25, 4  ;;  %v3776_v37 = vrot.slane %v3774_v8, 5  ;;  %v7547_v50 = vrot.slane %v3780_v43, 5  ;;  %v3786_v52 = vrot.slane %v3784_v48, 4  ;;  %v6417_v6 = vld [vmem:[%s6626_s11 + $0x94] sm:$0xf] }
  0xdd   : > { %v7553_v9 = vld [vmem:[%s6626_s11 + $0x64] sm:$0xf]  ;;  %v3795_v61 = vshrl.u32 %v5417_v31, 16  ;;  %v7555_v22 = vrot.slane %v3729_v53, 4  ;;  %v1375_v25 = vrot.slane %v6419_v18, 5  ;;  %v3763_v43 = vor.u32 %v3762_v4, %v7538_v34 }
  0xde   : > { %5928 = vmatmul.mubr.msk.bf16.gmra.mrb[16].mxu0 %vm725_vm3, %v6362_v10  ;;  %8469 = vst [vmem:[#allocation12_spill] sm:$0xff] %v7553_v9  ;;  %v3798_v10 = vshll.u32 %v5417_v31, 16  ;;  %v3777_v31 = vor.u32 %v3776_v37, %v3773_v27  ;;  %v3787_v53 = vor.u32 %v3786_v52, %v7547_v50  ;;  %v8470_v18 = vcombine.low %v7294_v19, %v7307_v58  ;;  %v6366_v37 = vld [vmem:[%s6626_s11 + $0xb4] sm:$0xff]  }
  0xdf   : > { %5776 = vmatmul.mubr.msk.bf16.vlgmr.msra.gmra.mrb[0].mxu1 %vm725_vm3, %v8467_v38  ;;  %5931 = vmatprep.mubr.msk.bf16.mxu0 %vm725_vm3, %v6363_v21  ;;  %v3752_v21 = vrot.slane %v3750_v15, 5  ;;  %v7536_v38 = vld [vmem:[%s6626_s11 + $0x50] sm:$0x1]  ;;  %v7545_v15 = vld [vmem:[%s6626_s11 + $0x5c] sm:$0x1]  ;;  %v8471_v27 = vcombine.low %v7312_v2, %v7316_v1  ;;  %v1377_v52 = vrot.slane %v1375_v25, 4 }
  0xe0   : > { %5808 = vmatpush3.bf16.msra.mxu1 %v7283_v49  ;;  %5779 = vmatprep.mubr.msk.bf16.mxu1 %vm725_vm3, %v8468_v23  ;;  %v3739_v49 = vor.u32 %v3738_v46, %v7495_v28  ;;  %v7549_v46 = vrot.slane %v3742_v5, 5  ;;  %v1368_v23 = vrot.slane %v6417_v6, 5  ;;  %v3766_v48 = vshll.u32 %v7536_v38, 16  ;;  %v1244_v5 = vld [vmem:[%s6626_s11 + $0x9c] sm:$0xe] }
  0xe1   : > { %6274 = vmatprep.subr.msk.bf16.mxu1 %vm774_vm0, %v6416_v36  ;;  %v6418_v36 = vld [vmem:[%s6626_s11 + $0x98] sm:$0x1]  ;;  %v3753_v7 = vor.u32 %v3752_v21, %v3749_v62  ;;  %v3790_v6 = vshll.u32 %v7545_v15, 16  ;;  %v3808_v62 = vshrl.u32 %v7553_v9, 16  ;;  %v3800_v4 = vrot.slane %v3798_v10, 5 }
  0xe2   : > { %v1371_v33 = vrot.slane %v6418_v36, 5  ;;  %v3740_v8 = vrot.slane %v3739_v49, 4  ;;  %v3804_v36 = vshll.u32 %v7553_v9, 16  ;;  %v7574_v21 = vsel %vm6878_vm7, %v5086_v54, %v1368_v23  ;;  %v7585_v2 = vld [vmem:[%s6626_s11 + $0x68] sm:$0x1] }
  0xe3   : > { %v3797_v49 = vrot.slane %v3795_v61, 4  ;;  %v3754_v19 = vrot.slane %v3753_v7, 4  ;;  %v5087_v58 = vrot.slane %v1244_v5, 9  ;;  %v3764_v3 = vrot.slane %v3763_v43, 4  ;;  %8472 = vst [vmem:[#allocation13_spill] sm:$0xff] %v7585_v2  ;;  %v6367_v5 = vld [vmem:[%s6626_s11 + $0xc0] sm:$0xff]  }
  0xe4   : > { %v3768_v54 = vrot.slane %v3766_v48, 5  ;;  %v3792_v63 = vrot.slane %v3790_v6, 5  ;;  %v1382_v61 = vrot.slane %v7020_v56, 5  ;;  %v3778_v10 = vrot.slane %v3777_v31, 4  ;;  %v1246_v31 = vld [vmem:[%s6626_s11 + $0xb4] sm:$0xe] }
  0xe5   : > { %v3788_v51 = vrot.slane %v3787_v53, 4  ;;  %v7587_v1 = vrot.slane %v3804_v36, 5  ;;  %v3810_v7 = vrot.slane %v3808_v62, 4  ;;  %v3735_v43 = vsel %vm6652_vm4, %v7555_v22, %v7495_v28  ;;  %v6421_v62 = vld [vmem:[%s6626_s11 + $0xb0] sm:$0x1] }
  0xe6   : > { %5932 = vmatmul.mubr.msk.bf16.gmra.mrb[20].mxu0 %vm725_vm3, %v6364_v26  ;;  %v1370_v26 = vrot.slane %v1368_v23, 4  ;;  %v1245_v23 = vld [vmem:[%s6626_s11 + $0xa8] sm:$0xe]  ;;  %v3745_v48 = vsel %vm6652_vm4, %v3740_v8, %v7549_v46  ;;  %v3801_v6 = vor.u32 %v3800_v4, %v3797_v49  ;;  %v3759_v53 = vsel %vm6652_vm4, %v3754_v19, %v7538_v34  ;;  %v5420_v46 = vld [vmem:[%s6626_s11 + $0x6c] sm:$0xf] }
  0xe7   : > { %5780 = vmatmul.mubr.msk.bf16.gmra.mrb[4].mxu1 %vm725_vm3, %v8470_v18  ;;  %5935 = vmatprep.mubr.msk.bf16.mxu0 %vm725_vm3, %v6365_v30  ;;  %v6420_v18 = vld [vmem:[%s6626_s11 + $0xa4] sm:$0x1]  ;;  %v7607_v36 = vsel %vm6878_vm7, %v5087_v58, %v1375_v25  ;;  %v5088_v28 = vrot.slane %v1245_v23, 9  ;;  %v1384_v8 = vrot.slane %v1382_v61, 4  ;;  %v3814_v49 = vshll.u32 %v7585_v2, 16 }
  0xe8   : > { %5783 = vmatprep.mubr.msk.bf16.mxu1 %vm725_vm3, %v8471_v27  ;;  %v1378_v30 = vrot.slane %v6420_v18, 5  ;;  %v7599_v56 = vsel %vm6878_vm7, %v1370_v26, %v1371_v33  ;;  %v3769_v33 = vsel %vm6652_vm4, %v3764_v3, %v3768_v54  ;;  %v1385_v26 = vrot.slane %v6421_v62, 5  ;;  %v5423_v18 = vld [vmem:[%s6626_s11 + $0x78] sm:$0xf]  ;;  %v7662_v54 = vld [vmem:[%s6626_s11 + $0xbc] sm:$0x1] }
  0xe9   : > { %v3783_v34 = vsel %vm6652_vm4, %v3778_v10, %v7547_v50  ;;  %v3793_v25 = vsel %vm6652_vm4, %v3788_v51, %v3792_v63  ;;  %v3811_v4 = vor.u32 %v3810_v7, %v7587_v1  ;;  %v5089_v27 = vrot.slane %v1246_v31, 9  ;;  %v7636_v51 = vld [vmem:[%s6626_s11 + $0x70] sm:$0xf]  ;;  %v7666_v10 = vld [vmem:[%s6626_s11 + $0x7c] sm:$0xf] }
  0xea   : > { %v7611_v22 = vsel %vm6878_vm7, %v1377_v52, %v1378_v30  ;;  %v8474_v3 = vcombine.low %v7329_v45, %v7333_v59  ;;  %v7632_v19 = vrot.slane %v3801_v6, 4  ;;  %v1389_v50 = vrot.slane %v7044_v42, 5  ;;  %8475 = vst [vmem:[#allocation15_spill] sm:$0xff] %v7636_v51  ;;  %8477 = vst [vmem:[#allocation16_spill] sm:$0xff] %v7666_v10  ;;  %v5426_v7 = vld [vmem:[%s6626_s11 + $0x84] sm:$0xf] }
  0xeb   : > { %8473 = vst [vmem:[#allocation14_spill] sm:$0xff] %v7611_v22  ;;  %v3819_v63 = vshrl.u32 %v5420_v46, 16  ;;  %v8476_v45 = vcombine.low %v7337_v47, %v7364_v41  ;;  %v7644_v58 = vcombine.low %v3759_v53, %v3769_v33  ;;  %v7650_v42 = vsel %vm6878_vm7, %v5088_v28, %v1382_v61  ;;  %v6368_v61 = vld [vmem:[%s6626_s11 + $0xcc] sm:$0xff]   ;;  %v7678_v31 = vld [vmem:[%s6626_s11 + $0x88] sm:$0xf] }
  0xec   : > { %v7653_v30 = vcombine.low %v3783_v34, %v3793_v25  ;;  %v7657_v47 = vsel %vm6878_vm7, %v1384_v8, %v1385_v26  ;;  %v7659_v41 = vrot.slane %v3814_v49, 5  ;;  %v3828_v6 = vshll.u32 %v7636_v51, 16  ;;  %8478 = vst [vmem:[#allocation17_spill] sm:$0xff] %v7678_v31  ;;  %v5429_v62 = vld [vmem:[%s6626_s11 + $0x90] sm:$0xf] }
  0xed   : > { %v7684_v28 = vrot.slane %v1389_v50, 4  ;;  %v7686_v33 = vrot.slane %v3819_v63, 4  ;;  %v3832_v8 = vshrl.u32 %v7636_v51, 16  ;;  %v3843_v26 = vshrl.u32 %v5423_v18, 16  ;;  %v7693_v25 = vld [vmem:[%s6626_s11 + $0x94] sm:$0xf] }
  0xee   : > { %5936 = vmatmul.mubr.msk.bf16.gmra.mrb[24].mxu0 %vm725_vm3, %v6366_v37  ;;  %v7630_v37 = vcombine.low %v3735_v43, %v3745_v48  ;;  %v7674_v43 = vsel %vm6878_vm7, %v5089_v27, %v1389_v50  ;;  %v3822_v48 = vshll.u32 %v5420_v46, 16  ;;  %v3846_v49 = vshll.u32 %v5423_v18, 16  ;;  %8479 = vst [vmem:[#allocation18_spill] sm:$0xff] %v7693_v25  ;;  %v7731_v2 = vld [vmem:[%s6626_s11 + $0x8c] sm:$0x1] }
  0xef   : > { %5784 = vmatmul.mubr.msk.bf16.gmra.mrb[8].mxu1 %vm725_vm3, %v8474_v3  ;;  %5939 = vmatprep.mubr.msk.bf16.mxu0 %vm725_vm3, %v6367_v5  ;;  %v7670_v5 = vrot.slane %v3811_v4, 4  ;;  %v3852_v46 = vshll.u32 %v7666_v10, 16  ;;  %v3856_v34 = vshrl.u32 %v7666_v10, 16  ;;  %v3867_v4 = vshrl.u32 %v5426_v7, 16 }
  0xf0   : > { %5787 = vmatprep.mubr.msk.bf16.mxu1 %vm725_vm3, %v8476_v45  ;;  %v3870_v27 = vshll.u32 %v5426_v7, 16  ;;  %v3876_v3 = vshll.u32 %v7678_v31, 16  ;;  %v3880_v50 = vshrl.u32 %v7678_v31, 16  ;;  %v7703_v45 = vld [vmem:[%s6626_s11 + $0x74] sm:$0x1]  ;;  %v3824_v18 = vrot.slane %v3822_v48, 5 }
  0xf1   : > { %v3891_v52 = vshrl.u32 %v5429_v62, 16  ;;  %v3894_v53 = vshll.u32 %v5429_v62, 16  ;;  %v8480_v7 = vcombine.low %v7348_v60, %v7373_v44  ;;  %v3834_v59 = vrot.slane %v3832_v8, 4  ;;  %v5432_v48 = vld [vmem:[%s6626_s11 + $0x9c] sm:$0xf] }
  0xf2   : > { %v3900_v63 = vshll.u32 %v7693_v25, 16  ;;  %v3904_v23 = vshrl.u32 %v7693_v25, 16  ;;  %v8481_v62 = vcombine.low %v7388_v17, %v7392_v57  ;;  %v7721_v44 = vld [vmem:[%s6626_s11 + $0x80] sm:$0x1]  ;;  %v3845_v60 = vrot.slane %v3843_v26, 4 }
  0xf3   : > { %8482 = vst [vmem:[#allocation19_spill] sm:$0xff] %v7721_v44  ;;  %v3869_v31 = vrot.slane %v3867_v4, 4  ;;  %v3872_v8 = vrot.slane %v3870_v27, 5  ;;  %v7725_v10 = vrot.slane %v3876_v3, 5  ;;  %v3882_v51 = vrot.slane %v3880_v50, 4 }
  0xf4   : > { %v7728_v25 = vld [vmem:[%s6626_s11 + $0xa0] sm:$0xf]  ;;  %v3893_v17 = vrot.slane %v3891_v52, 4  ;;  %v3896_v57 = vrot.slane %v3894_v53, 5  ;;  %v3918_v9 = vshll.u32 %v5432_v48, 16  ;;  %v3825_v26 = vor.u32 %v3824_v18, %v7686_v33 }
  0xf5   : > { %v3862_v27 = vshll.u32 %v7721_v44, 16  ;;  %v7740_v3 = vld [vmem:[%s6626_s11 + $0x98] sm:$0x1]  ;;  %v3924_v50 = vshll.u32 %v7728_v25, 16  ;;  %v3928_v52 = vshrl.u32 %v7728_v25, 16  ;;  %v3873_v22 = vor.u32 %v3872_v8, %v3869_v31 }
  0xf6   : > { %5940 = vmatmul.mubr.msk.bf16.gmra.mrb[28].mxu0 %vm725_vm3, %v6368_v61  ;;  %v7711_v61 = vrot.slane %v3828_v6, 5  ;;  %v3858_v6 = vrot.slane %v3856_v34, 4  ;;  %v3906_v34 = vrot.slane %v3904_v23, 4  ;;  %v3886_v33 = vshll.u32 %v7731_v2, 16 }
  0xf7   : > { %5788 = vmatmul.mubr.msk.bf16.gmra.mrb[12].mxu1 %vm725_vm3, %v8480_v7  ;;  %5945 = vmatprep.mubr.msk.bf16.mxu0 %vm725_vm3, %v7453_v20  ;;  %v3848_v7 = vrot.slane %v3846_v49, 5  ;;  %v7723_v20 = vrot.slane %v3852_v46, 5  ;;  %v3838_v49 = vshll.u32 %v7703_v45, 16  ;;  %v7735_v46 = vrot.slane %v3900_v63, 5 }
  0xf8   : > { %5791 = vmatprep.mubr.msk.bf16.mxu1 %vm725_vm3, %v8481_v62  ;;  %v3915_v62 = vshrl.u32 %v5432_v48, 16  ;;  %v3835_v4 = vor.u32 %v3834_v59, %v7711_v61  ;;  %v3883_v23 = vor.u32 %v3882_v51, %v7725_v10  ;;  %v3897_v59 = vor.u32 %v3896_v57, %v3893_v17  ;;  %v7773_v57 = vld [vmem:[%s6626_s11 + $0xa4] sm:$0x1] }
  0xf9   : > { %v3849_v53 = vor.u32 %v3848_v7, %v3845_v60  ;;  %v3859_v48 = vor.u32 %v3858_v6, %v7723_v20  ;;  %v3920_v18 = vrot.slane %v3918_v9, 5  ;;  %v8483_v44 = vcombine.low %v7400_v11, %v7404_v40 }
  0xfa   : > { %v3917_v63 = vrot.slane %v3915_v62, 4  ;;  %v8484_v31 = vrot.slane %v7662_v54, 5  ;;  %v3840_v51 = vrot.slane %v3838_v49, 5  ;;  %v3907_v60 = vor.u32 %v3906_v34, %v7735_v46  ;;  %v7776_v34 = vld [vmem:[%s6626_s11 + $0xac] sm:$0xf] }
  0xfb   : > { %v3910_v9 = vshll.u32 %v7740_v3, 16  ;;  %v8485_v11 = vcombine.low %v7472_v39, %v7476_v55  ;;  %v3826_v40 = vrot.slane %v3825_v26, 4  ;;  %v7769_v54 = vrot.slane %v3924_v50, 5 }
  0xfc   : > { %v3850_v7 = vrot.slane %v3849_v53, 4  ;;  %v3860_v6 = vrot.slane %v3859_v48, 4  ;;  %v3864_v8 = vrot.slane %v3862_v27, 5  ;;  %v3888_v17 = vrot.slane %v3886_v33, 5  ;;  %v7786_v48 = vld [vmem:[%s6626_s11 + $0xb0] sm:$0x1] }
  0xfd   : > { %v3874_v39 = vrot.slane %v3873_v22, 4  ;;  %v3884_v55 = vrot.slane %v3883_v23, 4  ;;  %v3898_v62 = vrot.slane %v3897_v59, 4  ;;  %v3921_v49 = vor.u32 %v3920_v18, %v3917_v63 }
  0xfe   : > { %5946 = vmatmul.mubr.msk.bf16.vlgmr.msra.gmra.mrb[0].mxu0 %vm725_vm3, %v7516_v16  ;;  %v7759_v16 = vsel %vm6878_vm7, %v7684_v28, %v8484_v31  ;;  %v3930_v28 = vrot.slane %v3928_v52, 4  ;;  %v3912_v26 = vrot.slane %v3910_v9, 5  ;;  %v3831_v52 = vsel %vm6652_vm4, %v3826_v40, %v7711_v61 }
  0xff   : > { %5792 = vmatmul.mubr.msk.bf16.gmra.mrb[16].mxu1 %vm725_vm3, %v8483_v44  ;;  %5978 = vmatpush3.bf16.msra.mxu0 %v7457_v14  ;;  %v3836_v14 = vrot.slane %v3835_v4, 4  ;;  %v5435_v44 = vld [vmem:[%s6626_s11 + $0xa8] sm:$0xf]  ;;  %v3934_v22 = vshll.u32 %v7773_v57, 16  ;;  %v3855_v33 = vsel %vm6652_vm4, %v3850_v7, %v7723_v20  ;;  %v3865_v23 = vsel %vm6652_vm4, %v3860_v6, %v3864_v8 }
 0x100   : > { %5795 = vmatprep.mubr.msk.bf16.mxu1 %vm725_vm3, %v8485_v11  ;;  %5949 = vmatprep.mubr.msk.bf16.mxu0 %vm725_vm3, %v7527_v29  ;;  %v3908_v29 = vrot.slane %v3907_v60, 4  ;;  %v3939_v4 = vshrl.u32 %v5435_v44, 16  ;;  %v3942_v50 = vshll.u32 %v5435_v44, 16  ;;  %v3931_v53 = vor.u32 %v3930_v28, %v7769_v54  ;;  %v5484_v11 = vld [vmem:[%s6626_s11 + $0x48] sm:$0xe] }
 0x101   : > { %v3841_v27 = vsel %vm6652_vm4, %v3836_v14, %v3840_v51  ;;  %v3948_v59 = vshll.u32 %v7776_v34, 16  ;;  %v3952_v61 = vshrl.u32 %v7776_v34, 16  ;;  %v3879_v63 = vsel %vm6652_vm4, %v3874_v39, %v7725_v10  ;;  %v7851_v39 = vld [vmem:[%s6626_s11 + $0xb8] sm:$0xf] }
 0x102   : > { %v3889_v18 = vsel %vm6652_vm4, %v3884_v55, %v3888_v17  ;;  %v3903_v20 = vsel %vm6652_vm4, %v3898_v62, %v7735_v46  ;;  %v3922_v31 = vrot.slane %v3921_v49, 4  ;;  %v8486_v51 = vcombine.low %v7489_v12, %v7504_v35 }
 0x103   : > { %v3941_v10 = vrot.slane %v3939_v4, 4  ;;  %v3944_v60 = vrot.slane %v3942_v50, 5  ;;  %v3958_v9 = vshll.u32 %v7786_v48, 16  ;;  %v8487_v46 = vcombine.low %v7574_v21, %v7599_v56  ;;  %v5438_v21 = vld [vmem:[%s6626_s11 + $0xb4] sm:$0xf] }
 0x104   : > { %v5105_v12 = vcombine.low %v7650_v42, %v7657_v47  ;;  %v8488_v35 = vsel %vm6652_vm4, %v7670_v5, %v7659_v41  ;;  %v3932_v14 = vrot.slane %v3931_v53, 4  ;;  %v3936_v28 = vrot.slane %v3934_v22, 5  ;;  %v5486_v4 = vld [vmem:[%s6626_s11 + $0x60] sm:$0xe]  ;;  %v5487_v53 = vld [vmem:[%s6626_s11 + $0x6c] sm:$0xe] }
 0x105   : > { %v5106_v56 = vcombine.low %v7674_v43, %v7759_v16  ;;  %v7834_v44 = vcombine.low %v3831_v52, %v3841_v27  ;;  %v7836_v42 = vrot.slane %v3948_v59, 5  ;;  %v3954_v47 = vrot.slane %v3952_v61, 4  ;;  %v8497_v16 = vld [vmem:[#allocation7_spill] sm:$0xff] }
 0x106   : > { %5950 = vmatmul.mubr.msk.bf16.gmra.mrb[4].mxu0 %vm725_vm3, %v7630_v37  ;;  %v3913_v37 = vsel %vm6652_vm4, %v3908_v29, %v3912_v26  ;;  %v7838_v41 = vcombine.low %v3855_v33, %v3865_v23  ;;  %v7840_v5 = vcombine.low %v3879_v63, %v3889_v18  ;;  %v3927_v6 = vsel %vm6652_vm4, %v3922_v31, %v7769_v54  ;;  %v8490_v23 = vld [vmem:[#allocation14_spill] sm:$0xff]  ;;  %v5441_v63 = vld [vmem:[%s6626_s11 + $0xc0] sm:$0xf]  ;;  %v8492_v18 = vld [vmem:[#allocation12_spill] sm:$0xff] }
 0x107   : > { %5796 = vmatmul.mubr.msk.bf16.gmra.mrb[20].mxu1 %vm725_vm3, %v8486_v51  ;;  %5953 = vmatprep.mubr.msk.bf16.mxu0 %vm725_vm3, %v7644_v58  ;;  %v8489_v58 = vsel %vm6652_vm4, %v7632_v19, %v7587_v1  ;;  %v7842_v7 = vcombine.low %v3903_v20, %v3913_v37  ;;  %v5500_v1 = vrot.slane %v5484_v11, 9  ;;  %v5485_v19 = vld [vmem:[%s6626_s11 + $0x54] sm:$0xe]  ;;  %v3945_v8 = vor.u32 %v3944_v60, %v3941_v10 }
 0x108   : > { %5799 = vmatprep.mubr.msk.bf16.mxu1 %vm725_vm3, %v8487_v46  ;;  %v5454_v40 = vcombine.low %v8489_v58, %v8488_v35  ;;  %v7848_v17 = vrot.slane %v3958_v9, 5  ;;  %v3963_v55 = vshrl.u32 %v5438_v21, 16  ;;  %v3937_v62 = vsel %vm6652_vm4, %v3932_v14, %v3936_v28  ;;  %v8493_v31 = vld [vmem:[#allocation13_spill] sm:$0xff]  ;;  %v8494_v9 = vld [vmem:[#allocation15_spill] sm:$0xff]  ;;  %v7900_v35 = vld [vmem:[%s6626_s11 + $0xbc] sm:$0x1] }
 0x109   : > { %v3966_v49 = vshll.u32 %v5438_v21, 16  ;;  %v4422_v29 = vrot.slane %v7482_v0, 5  ;;  %v4425_v26 = vrot.slane %v7536_v38, 5  ;;  %v3955_v50 = vor.u32 %v3954_v47, %v7836_v42  ;;  %v7903_v58 = vld [vmem:[%s6626_s11 + $0xc4] sm:$0xf] }
 0x10a   : > { %v5501_v52 = vrot.slane %v5485_v19, 9  ;;  %v4429_v54 = vrot.slane %v7493_v24, 5  ;;  %v4432_v27 = vrot.slane %v7545_v15, 5  ;;  %v3972_v22 = vshll.u32 %v7851_v39, 16  ;;  %v5488_v19 = vld [vmem:[%s6626_s11 + $0x78] sm:$0xe] }
 0x10b   : > { %v3976_v33 = vshrl.u32 %v7851_v39, 16  ;;  %v7868_v0 = vsel %vm6878_vm7, %v5500_v1, %v4422_v29  ;;  %v4424_v38 = vrot.slane %v4422_v29, 4  ;;  %v8491_v59 = vcombine.low %v7607_v36, %v8490_v23  ;;  %v8495_v23 = vld [vmem:[#allocation16_spill] sm:$0xff] }
 0x10c   : > { %v7875_v24 = vcombine.low %v3927_v6, %v3937_v62  ;;  %v7879_v15 = vsel %vm6878_vm7, %v5501_v52, %v4429_v54  ;;  %v5502_v61 = vrot.slane %v5486_v4, 9  ;;  %v4436_v20 = vrot.slane %v8492_v18, 5  ;;  %v6369_v6 = vld [vmem:[%s6626_s11 + $0xc] sm:$0xff]  }
 0x10d   : > { %v7885_v36 = vsel %vm6878_vm7, %v4424_v38, %v4425_v26  ;;  %v4439_v51 = vrot.slane %v8493_v31, 5  ;;  %v5503_v37 = vrot.slane %v5487_v53, 9  ;;  %v4443_v11 = vrot.slane %v8494_v9, 5 }
 0x10e   : > { %5954 = vmatmul.mubr.msk.bf16.gmra.mrb[8].mxu0 %vm725_vm3, %v7653_v30  ;;  %v4431_v30 = vrot.slane %v4429_v54, 4  ;;  %v5517_v10 = vcombine.low %v7868_v0, %v7885_v36  ;;  %v4446_v46 = vrot.slane %v7703_v45, 5  ;;  %v7909_v14 = vsel %vm6878_vm7, %v5502_v61, %v4436_v20 }
 0x10f   : > { %5800 = vmatmul.mubr.msk.bf16.gmra.mrb[24].mxu1 %vm725_vm3, %v8491_v59  ;;  %5957 = vmatprep.mubr.msk.bf16.mxu0 %vm725_vm3, %v5454_v40  ;;  %v4438_v28 = vrot.slane %v4436_v20, 4  ;;  %v7911_v21 = vrot.slane %v3963_v55, 4  ;;  %v3987_v47 = vshrl.u32 %v5441_v63, 16  ;;  %v7915_v45 = vsel %vm6878_vm7, %v5503_v37, %v4443_v11  ;;  %v5215_v55 = vld [vmem:[%s6626_s11 + $0x78] sm:$0xf]  ;;  %v8496_v59 = vld [vmem:[#allocation19_spill] sm:$0xff] }
 0x110   : > { %5803 = vmatprep.mubr.msk.bf16.mxu1 %vm725_vm3, %v5105_v12  ;;  %v7893_v60 = vsel %vm6878_vm7, %v4431_v30, %v4432_v27  ;;  %v7897_v12 = vrot.slane %v3945_v8, 4  ;;  %v4445_v1 = vrot.slane %v4443_v11, 4  ;;  %v7919_v8 = vrot.slane %v3955_v50, 4 }
 0x111   : > { %v5518_v40 = vcombine.low %v7879_v15, %v7893_v60  ;;  %v7921_v62 = vrot.slane %v3966_v49, 5  ;;  %v3990_v29 = vshll.u32 %v5441_v63, 16  ;;  %v7925_v26 = vsel %vm6878_vm7, %v4438_v28, %v4439_v51  ;;  %v8499_v28 = vld [vmem:[#allocation17_spill] sm:$0xff]  ;;  %v6432_v60 = vld [vmem:[%s6626_s11 + $0xa0] sm:$0xf] }
 0x112   : > { %v7928_v4 = vrot.slane %v3972_v22, 5  ;;  %v7930_v52 = vrot.slane %v3976_v33, 4  ;;  %v5519_v54 = vcombine.low %v7909_v14, %v7925_v26  ;;  %v7936_v27 = vsel %vm6878_vm7, %v4445_v1, %v4446_v46  ;;  %v5489_v33 = vld [vmem:[%s6626_s11 + $0x84] sm:$0xe]  ;;  %v6370_v1 = vld [vmem:[%s6626_s11 + $0x18] sm:$0xff]  }
 0x113   : > { %v3982_v49 = vshll.u32 %v7900_v35, 16  ;;  %v3996_v50 = vshll.u32 %v7903_v58, 16  ;;  %v5520_v53 = vcombine.low %v7915_v45, %v7936_v27  ;;  %v5504_v22 = vrot.slane %v5488_v19, 9  ;;  %v6436_v27 = vld [vmem:[%s6626_s11 + $0xac] sm:$0xf] }
 0x114   : > { %v3989_v38 = vrot.slane %v3987_v47, 4  ;;  %v4453_v30 = vrot.slane %v8496_v59, 5  ;;  %v2312_v61 = vshrl.u32 %v5215_v55, 16  ;;  %v3992_v63 = vrot.slane %v3990_v29, 5  ;;  %v5444_v29 = vld [vmem:[%s6626_s11 + $0xcc] sm:$0xf] }
 0x115   : > { %v4000_v18 = vshrl.u32 %v7903_v58, 16  ;;  %v2315_v43 = vshll.u32 %v5215_v55, 16  ;;  %v5505_v37 = vrot.slane %v5489_v33, 9  ;;  %v3951_v9 = vsel %vm6652_vm4, %v7897_v12, %v7836_v42  ;;  %v7979_v55 = vld [vmem:[%s6626_s11 + $0xd0] sm:$0xf] }
 0x116   : > { %5958 = vmatmul.mubr.msk.bf16.gmra.mrb[12].mxu0 %vm725_vm3, %v7834_v44  ;;  %v4450_v44 = vrot.slane %v8495_v23, 5  ;;  %v2314_v51 = vrot.slane %v2312_v61, 4  ;;  %v3969_v11 = vor.u32 %v7921_v62, %v7911_v21  ;;  %v4457_v47 = vrot.slane %v8499_v28, 5  ;;  %v6371_v21 = vld [vmem:[%s6626_s11 + $0x24] sm:$0xff]  }
 0x117   : > { %5804 = vmatmul.mubr.msk.bf16.gmra.mrb[28].mxu1 %vm725_vm3, %v5106_v56  ;;  %5961 = vmatprep.mubr.msk.bf16.mxu0 %vm725_vm3, %v7838_v41  ;;  %v8498_v56 = vld [vmem:[#allocation8_spill] sm:$0xff]  ;;  %v2317_v46 = vrot.slane %v2315_v43, 5  ;;  %v3961_v19 = vsel %vm6652_vm4, %v7919_v8, %v7848_v17  ;;  %v4460_v12 = vrot.slane %v7731_v2, 5  ;;  %v7987_v62 = vrot.slane %v3996_v50, 5  ;;  %v5490_v8 = vld [vmem:[%s6626_s11 + $0x90] sm:$0xe] }
 0x118   : > { %5809 = vmatprep.mubr.msk.bf16.mxu1 %vm725_vm3, %v6369_v6  ;;  %v2334_v41 = vsel %vm6652_vm4, %v8498_v56, %v8497_v16  ;;  %v7961_v20 = vsel %vm6878_vm7, %v5504_v22, %v4450_v44  ;;  %v4452_v31 = vrot.slane %v4450_v44, 4  ;;  %v3979_v6 = vor.u32 %v7930_v52, %v7928_v4  ;;  %v7993_v52 = vld [vmem:[%s6626_s11 + $0xc8] sm:$0x1]  ;;  %v8501_v16 = vld [vmem:[#allocation5_spill] sm:$0xff] }
 0x119   : > { %v4002_v22 = vrot.slane %v4000_v18, 4  ;;  %v2318_v17 = vor.u32 %v2317_v46, %v2314_v51  ;;  %v3984_v23 = vrot.slane %v3982_v49, 5  ;;  %v3993_v44 = vor.u32 %v3992_v63, %v3989_v38  ;;  %v8502_v51 = vld [vmem:[#allocation6_spill] sm:$0xff] }
 0x11a   : > { %v7983_v42 = vsel %vm6878_vm7, %v4452_v31, %v4453_v30  ;;  %v7997_v59 = vsel %vm6878_vm7, %v5505_v37, %v4457_v47  ;;  %v4459_v30 = vrot.slane %v4457_v47, 4  ;;  %v4011_v2 = vshrl.u32 %v5444_v29, 16 }
 0x11b   : > { %v5521_v33 = vcombine.low %v7961_v20, %v7983_v42  ;;  %v4014_v50 = vshll.u32 %v5444_v29, 16  ;;  %v4020_v61 = vshll.u32 %v7979_v55, 16  ;;  %v2319_v18 = vrot.slane %v2318_v17, 4  ;;  %v6372_v29 = vld [vmem:[%s6626_s11 + $0x30] sm:$0xff]  }
 0x11c   : > { %v4024_v49 = vshrl.u32 %v7979_v55, 16  ;;  %v8008_v38 = vsel %vm6878_vm7, %v4459_v30, %v4460_v12  ;;  %v5506_v63 = vrot.slane %v5490_v8, 9  ;;  %v4003_v56 = vor.u32 %v4002_v22, %v7987_v62 }
 0x11d   : > { %v4006_v31 = vshll.u32 %v7993_v52, 16  ;;  %v5522_v37 = vcombine.low %v7997_v59, %v8008_v38  ;;  %v5460_v46 = vcombine.low %v3951_v9, %v3961_v19  ;;  %v3970_v28 = vrot.slane %v3969_v11, 4  ;;  %v5491_v11 = vld [vmem:[%s6626_s11 + $0x9c] sm:$0xe] }
 0x11e   : > { %5962 = vmatmul.mubr.msk.bf16.gmra.mrb[16].mxu0 %vm725_vm3, %v7840_v5  ;;  %v8500_v5 = vld [vmem:[#allocation18_spill] sm:$0xff]  ;;  %v3980_v47 = vrot.slane %v3979_v6, 4  ;;  %v3994_v12 = vrot.slane %v3993_v44, 4  ;;  %v4467_v8 = vrot.slane %v7740_v3, 5  ;;  %v4013_v30 = vrot.slane %v4011_v2, 4 }
 0x11f   : > { %5810 = vmatmul.mubr.msk.bf16.vlgmr.msra.gmra.mrb[0].mxu1 %vm725_vm3, %v6370_v1  ;;  %5965 = vmatprep.mubr.msk.bf16.mxu0 %vm725_vm3, %v7842_v7  ;;  %v4464_v43 = vrot.slane %v8500_v5, 5  ;;  %v2324_v7 = vsel %vm6652_vm4, %v2319_v18, %v8502_v51  ;;  %v4016_v18 = vrot.slane %v4014_v50, 5  ;;  %v8031_v5 = vrot.slane %v4020_v61, 5  ;;  %v6373_v19 = vld [vmem:[%s6626_s11 + $0x3c] sm:$0xff]  }
 0x120   : > { %6012 = vmatpush3.bf16.msra.mxu1 %v8501_v16  ;;  %5813 = vmatprep.mubr.msk.bf16.mxu1 %vm725_vm3, %v6371_v21  ;;  %v8020_v1 = vcombine.low %v2324_v7, %v2334_v41  ;;  %v8024_v21 = vld [vmem:[%s6626_s11 + $0xd4] sm:$0x1]  ;;  %v4026_v9 = vrot.slane %v4024_v49, 4  ;;  %v4004_v41 = vrot.slane %v4003_v56, 4  ;;  %v4008_v6 = vrot.slane %v4006_v31, 5 }
 0x121   : > { %v8028_v22 = vsel %vm6878_vm7, %v5506_v63, %v4464_v43  ;;  %v4466_v17 = vrot.slane %v4464_v43, 4  ;;  %v3975_v63 = vsel %vm6652_vm4, %v3970_v28, %v7928_v4  ;;  %v3985_v2 = vsel %vm6652_vm4, %v3980_v47, %v3984_v23  ;;  %v6423_v16 = vld [vmem:[%s6626_s11 + $0x1c] sm:$0xf]  ;;  %v5492_v28 = vld [vmem:[%s6626_s11 + $0xa8] sm:$0xe] }
 0x122   : > { %v4030_v50 = vshll.u32 %v8024_v21, 16  ;;  %v5507_v61 = vrot.slane %v5491_v11, 9  ;;  %v4471_v49 = vrot.slane %v7728_v25, 5  ;;  %v3999_v4 = vsel %vm6652_vm4, %v3994_v12, %v7987_v62  ;;  %v5480_v62 = vld [vmem:[%s6626_s11 + $0x18] sm:$0xe]  ;;  %v6374_v47 = vld [vmem:[%s6626_s11 + $0x48] sm:$0xff]  }
 0x123   : > { %v8037_v44 = vsel %vm6878_vm7, %v4466_v17, %v4467_v8  ;;  %v4027_v43 = vor.u32 %v4026_v9, %v8031_v5  ;;  %v4474_v23 = vrot.slane %v7773_v57, 5  ;;  %v4009_v25 = vsel %vm6652_vm4, %v4004_v41, %v4008_v6  ;;  %v6424_v11 = vld [vmem:[%s6626_s11 + $0x20] sm:$0x1] }
 0x124   : > { %v5523_v3 = vcombine.low %v8028_v22, %v8037_v44  ;;  %v4394_v56 = vrot.slane %v6423_v16, 5  ;;  %v8063_v31 = vsel %vm6878_vm7, %v5507_v61, %v4471_v49  ;;  %v4473_v51 = vrot.slane %v4471_v49, 4  ;;  %v5493_v49 = vld [vmem:[%s6626_s11 + $0xb4] sm:$0xe] }
 0x125   : > { %v5461_v7 = vcombine.low %v3975_v63, %v3985_v2  ;;  %v4028_v17 = vrot.slane %v4027_v43, 4  ;;  %v5508_v41 = vrot.slane %v5492_v28, 9  ;;  %v4478_v6 = vrot.slane %v7776_v34, 5  ;;  %v5481_v2 = vld [vmem:[%s6626_s11 + $0x24] sm:$0xe] }
 0x126   : > { %5966 = vmatmul.mubr.msk.bf16.gmra.mrb[20].mxu0 %vm725_vm3, %v7875_v24  ;;  %v4017_v24 = vor.u32 %v4016_v18, %v4013_v30  ;;  %v8068_v57 = vsel %vm6878_vm7, %v4473_v51, %v4474_v23  ;;  %v6375_v30 = vld [vmem:[%s6626_s11 + $0x54] sm:$0xff]   ;;  %v5496_v18 = vrot.slane %v5480_v62, 9  ;;  %v4396_v9 = vrot.slane %v4394_v56, 4  ;;  %v6427_v28 = vld [vmem:[%s6626_s11 + $0x2c] sm:$0x1] }
 0x127   : > { %5814 = vmatmul.mubr.msk.bf16.gmra.mrb[4].mxu1 %vm725_vm3, %v6372_v29  ;;  %5969 = vmatprep.mubr.msk.bf16.mxu0 %vm725_vm3, %v5460_v46  ;;  %v4032_v46 = vrot.slane %v4030_v50, 5  ;;  %v5462_v29 = vcombine.low %v3999_v4, %v4009_v25  ;;  %v5524_v8 = vcombine.low %v8063_v31, %v8068_v57  ;;  %v4481_v63 = vrot.slane %v7786_v48, 5  ;;  %v6425_v50 = vld [vmem:[%s6626_s11 + $0x28] sm:$0xf]  ;;  %v5482_v25 = vld [vmem:[%s6626_s11 + $0x30] sm:$0xe] }
 0x128   : > { %5817 = vmatprep.mubr.msk.bf16.mxu1 %vm725_vm3, %v6373_v19  ;;  %v4018_v12 = vrot.slane %v4017_v24, 4  ;;  %v4397_v19 = vrot.slane %v6424_v11, 5  ;;  %v4401_v61 = vrot.slane %v6425_v50, 5  ;;  %v8091_v48 = vsel %vm6878_vm7, %v5508_v41, %v4478_v6  ;;  %v6377_v11 = vld [vmem:[%s6626_s11 + $0x6c] sm:$0xff]   ;;  %v5494_v50 = vld [vmem:[%s6626_s11 + $0xc0] sm:$0xe] }
 0x129   : > { %v4033_v34 = vsel %vm6652_vm4, %v4028_v17, %v4032_v46  ;;  %v4480_v24 = vrot.slane %v4478_v6, 4  ;;  %v4395_v43 = vsel %vm6878_vm7, %v5496_v18, %v4394_v56  ;;  %v5497_v51 = vrot.slane %v5481_v2, 9  ;;  %v8503_v41 = vld [vmem:[#allocation9_spill] sm:$0xff]  ;;  %v6441_v31 = vld [vmem:[%s6626_s11 + $0xc8] sm:$0x1] }
 0x12a   : > { %v4023_v4 = vsel %vm6652_vm4, %v4018_v12, %v8031_v5  ;;  %v4398_v23 = vsel %vm6878_vm7, %v4396_v9, %v4397_v19  ;;  %v6426_v5 = vld [vmem:[%s6626_s11 + $0x34] sm:$0xf]  ;;  %v6376_v12 = vld [vmem:[%s6626_s11 + $0x60] sm:$0xff]   ;;  %v5498_v18 = vrot.slane %v5482_v25, 9  ;;  %v4488_v9 = vrot.slane %v7900_v35, 5 }
 0x12b   : > { %v4408_v16 = vrot.slane %v6426_v5, 5  ;;  %v8102_v62 = vsel %vm6878_vm7, %v4480_v24, %v4481_v63  ;;  %v5463_v46 = vcombine.low %v4023_v4, %v4033_v34  ;;  %v5513_v17 = vcombine.low %v4395_v43, %v4398_v23  ;;  %v5483_v24 = vld [vmem:[%s6626_s11 + $0x3c] sm:$0xe] }
 0x12c   : > { %v5525_v56 = vcombine.low %v8091_v48, %v8102_v62  ;;  %v4411_v6 = vrot.slane %v8503_v41, 5  ;;  %v4402_v35 = vsel %vm6878_vm7, %v5497_v51, %v4401_v61  ;;  %v5510_v5 = vrot.slane %v5494_v50, 9 }
 0x12d   : > { %v4410_v19 = vrot.slane %v4408_v16, 4  ;;  %v4409_v23 = vsel %vm6878_vm7, %v5498_v18, %v4408_v16  ;;  %v4495_v51 = vrot.slane %v7993_v52, 5  ;;  %v2475_v57 = vshll.u32 %v6441_v31, 16 }
 0x12e   : > { %5970 = vmatmul.mubr.msk.bf16.gmra.mrb[24].mxu0 %vm725_vm3, %v5461_v7  ;;  %v5509_v7 = vrot.slane %v5493_v49, 9 }
 0x12f   : > { %5818 = vmatmul.mubr.msk.bf16.gmra.mrb[8].mxu1 %vm725_vm3, %v6374_v47  ;;  %5973 = vmatprep.mubr.msk.bf16.mxu0 %vm725_vm3, %v5462_v29  ;;  %v4404_v47 = vrot.slane %v6427_v28, 5  ;;  %v4485_v29 = vrot.slane %v7851_v39, 5  ;;  %v8504_v39 = vld [vmem:[#allocation10_spill] sm:$0xff]  ;;  %v4412_v25 = vsel %vm6878_vm7, %v4410_v19, %v4411_v6  ;;  %v5499_v28 = vrot.slane %v5483_v24, 9 }
 0x130   : > { %5821 = vmatprep.mubr.msk.bf16.mxu1 %vm725_vm3, %v6375_v30  ;;  %v4403_v30 = vrot.slane %v4401_v61, 4  ;;  %v4415_v49 = vrot.slane %v8504_v39, 5  ;;  %v4492_v61 = vrot.slane %v7903_v58, 5  ;;  %v6428_v39 = vld [vmem:[%s6626_s11 + $0x70] sm:$0xf]  ;;  %v4499_v24 = vrot.slane %v7979_v55, 5 }
 0x131   : > { %v8114_v63 = vsel %vm6878_vm7, %v5509_v7, %v4485_v29  ;;  %v4487_v2 = vrot.slane %v4485_v29, 4  ;;  %v5212_v7 = vld [vmem:[%s6626_s11 + $0x6c] sm:$0xf]  ;;  %v8505_v29 = vld [vmem:[#allocation11_spill] sm:$0xff] }
 0x132   : > { %v4405_v34 = vsel %vm6878_vm7, %v4403_v30, %v4404_v47  ;;  %v4417_v47 = vrot.slane %v4415_v49, 4  ;;  %v6378_v30 = vld [vmem:[%s6626_s11 + $0x78] sm:$0xff]   ;;  %v8145_v16 = vsel %vm6878_vm7, %v5510_v5, %v4492_v61  ;;  %v4494_v18 = vrot.slane %v4492_v61, 4 }
 0x133   : > { %v8121_v4 = vsel %vm6878_vm7, %v4487_v2, %v4488_v9  ;;  %v5515_v9 = vcombine.low %v4409_v23, %v4412_v25  ;;  %v2288_v19 = vshrl.u32 %v5212_v7, 16  ;;  %v2291_v41 = vshll.u32 %v5212_v7, 16 }
 0x134   : > { %v5526_v43 = vcombine.low %v8114_v63, %v8121_v4  ;;  %v8150_v58 = vsel %vm6878_vm7, %v4494_v18, %v4495_v51  ;;  %v4416_v6 = vsel %vm6878_vm7, %v5499_v28, %v4415_v49  ;;  %v4502_v49 = vrot.slane %v8024_v21, 5  ;;  %v6380_v51 = vld [vmem:[%s6626_s11 + $0x90] sm:$0xff]   ;;  %v6381_v21 = vld [vmem:[%s6626_s11 + $0x9c] sm:$0xff]  }
 0x135   : > { %v5527_v50 = vcombine.low %v8145_v16, %v8150_v58  ;;  %v2290_v23 = vrot.slane %v2288_v19, 4  ;;  %v2293_v25 = vrot.slane %v2291_v41, 5  ;;  %v4501_v7 = vrot.slane %v4499_v24, 4 }
 0x136   : > { %5974 = vmatmul.mubr.msk.bf16.gmra.mrb[28].mxu0 %vm725_vm3, %v5463_v46  ;;  %v5514_v46 = vcombine.low %v4402_v35, %v4405_v34  ;;  %v2297_v35 = vshll.u32 %v6428_v39, 16  ;;  %v2301_v34 = vshrl.u32 %v6428_v39, 16 }
 0x137   : > { %5822 = vmatmul.mubr.msk.bf16.gmra.mrb[12].mxu1 %vm725_vm3, %v6376_v12  ;;  %5979 = vmatprep.mubr.msk.bf16.mxu0 %vm725_vm3, %v5513_v17  ;;  %v4418_v12 = vrot.slane %v8505_v29, 5  ;;  %v5495_v17 = vld [vmem:[%s6626_s11 + $0xcc] sm:$0xe]  ;;  %v8172_v55 = vsel %vm6878_vm7, %v4501_v7, %v4502_v49 }
 0x138   : > { %5825 = vmatprep.mubr.msk.bf16.mxu1 %vm725_vm3, %v6377_v11  ;;  %v6379_v11 = vld [vmem:[%s6626_s11 + $0x84] sm:$0xff]   ;;  %v5511_v52 = vrot.slane %v5495_v17, 9  ;;  %v2303_v28 = vrot.slane %v2301_v34, 4  ;;  %v6429_v17 = vld [vmem:[%s6626_s11 + $0x74] sm:$0x1] }
 0x139   : > { %v4419_v2 = vsel %vm6878_vm7, %v4417_v47, %v4418_v12  ;;  %v5218_v47 = vld [vmem:[%s6626_s11 + $0x84] sm:$0xf]  ;;  %v2294_v12 = vor.u32 %v2293_v25, %v2290_v23  ;;  %v6383_v34 = vld [vmem:[%s6626_s11 + $0xb4] sm:$0xff]  }
 0x13a   : > { %v8167_v5 = vsel %vm6878_vm7, %v5511_v52, %v4499_v24  ;;  %v5516_v61 = vcombine.low %v4416_v6, %v4419_v2  ;;  %v2339_v18 = vshll.u32 %v5218_v47, 16  ;;  %v5221_v6 = vld [vmem:[%s6626_s11 + $0x90] sm:$0xf]  ;;  %v6382_v2 = vld [vmem:[%s6626_s11 + $0xa8] sm:$0xff]  }
 0x13b   : > { %v5528_v29 = vcombine.low %v8167_v5, %v8172_v55  ;;  %v2295_v52 = vrot.slane %v2294_v12, 4  ;;  %v2360_v23 = vshrl.u32 %v5221_v6, 16  ;;  %v2363_v25 = vshll.u32 %v5221_v6, 16 }
 0x13c   : > { %v2393_v12 = vshll.u32 %v6432_v60, 16 }
 0x13d   : > { %v2365_v14 = vrot.slane %v2363_v25, 5  ;;  %v6435_v25 = vld [vmem:[%s6626_s11 + $0xa4] sm:$0x1] }
 0x13e   : > { %5980 = vmatmul.mubr.msk.bf16.vlgmr.msra.gmra.mrb[0].mxu0 %vm725_vm3, %v5514_v46  ;;  %v2299_v46 = vrot.slane %v2297_v35, 5  ;;  %v5224_v35 = vld [vmem:[%s6626_s11 + $0x9c] sm:$0xf]  ;;  %v8214_v6 = vrot.slane %v2393_v12, 5 }
 0x13f   : > { %5826 = vmatmul.mubr.msk.bf16.gmra.mrb[16].mxu1 %vm725_vm3, %v6378_v30  ;;  %5983 = vmatprep.mubr.msk.bf16.mxu0 %vm725_vm3, %v5515_v9  ;;  %v2307_v30 = vshll.u32 %v6429_v17, 16  ;;  %v2336_v9 = vshrl.u32 %v5218_v47, 16  ;;  %v2387_v47 = vshll.u32 %v5224_v35, 16  ;;  %v6433_v17 = vld [vmem:[%s6626_s11 + $0x8c] sm:$0x1] }
 0x140   : > { %5829 = vmatprep.mubr.msk.bf16.mxu1 %vm725_vm3, %v6379_v11  ;;  %v2304_v13 = vor.u32 %v2303_v28, %v2299_v46  ;;  %v6430_v11 = vld [vmem:[%s6626_s11 + $0x88] sm:$0xf]  ;;  %v2300_v7 = vsel %vm6652_vm4, %v2295_v52, %v2299_v46 }
 0x141   : > { %v2345_v19 = vshll.u32 %v6430_v11, 16  ;;  %v2349_v41 = vshrl.u32 %v6430_v11, 16  ;;  %v2309_v0 = vrot.slane %v2307_v30, 5  ;;  %v2338_v36 = vrot.slane %v2336_v9, 4 }
 0x142   : > { %v2305_v39 = vrot.slane %v2304_v13, 4  ;;  %v2355_v30 = vshll.u32 %v6433_v17, 16  ;;  %v2362_v9 = vrot.slane %v2360_v23, 4  ;;  %v2389_v11 = vrot.slane %v2387_v47, 5 }
 0x143   : > { %v8191_v24 = vrot.slane %v2345_v19, 5  ;;  %v2351_v49 = vrot.slane %v2349_v41, 4  ;;  %v6384_v19 = vld [vmem:[%s6626_s11 + $0xc0] sm:$0xff]  }
 0x144   : > { %v2310_v46 = vsel %vm6652_vm4, %v2305_v39, %v2309_v0  ;;  %v5227_v39 = vld [vmem:[%s6626_s11 + $0xa8] sm:$0xf] }
 0x145   : > { %v2352_v13 = vor.u32 %v2351_v49, %v8191_v24  ;;  %v5245_v41 = vcombine.low %v2300_v7, %v2310_v46  ;;  %v2403_v7 = vshll.u32 %v6435_v25, 16  ;;  %v2411_v45 = vshll.u32 %v5227_v39, 16 }
 0x146   : > { %5984 = vmatmul.mubr.msk.bf16.gmra.mrb[4].mxu0 %vm725_vm3, %v5516_v61  ;;  %v6431_v61 = vld [vmem:[%s6626_s11 + $0x94] sm:$0xf] }
 0x147   : > { %5830 = vmatmul.mubr.msk.bf16.gmra.mrb[20].mxu1 %vm725_vm3, %v6380_v51  ;;  %5987 = vmatprep.mubr.msk.bf16.mxu0 %vm725_vm3, %v5517_v10  ;;  %v2341_v10 = vrot.slane %v2339_v18, 5  ;;  %v2369_v51 = vshll.u32 %v6431_v61, 16  ;;  %v2373_v28 = vshrl.u32 %v6431_v61, 16  ;;  %v2353_v0 = vrot.slane %v2352_v13, 4 }
 0x148   : > { %5833 = vmatprep.mubr.msk.bf16.mxu1 %vm725_vm3, %v6381_v21  ;;  %v2384_v21 = vshrl.u32 %v5224_v35, 16  ;;  %v6434_v35 = vld [vmem:[%s6626_s11 + $0x98] sm:$0x1]  ;;  %v2408_v61 = vshrl.u32 %v5227_v39, 16  ;;  %v5233_v39 = vld [vmem:[%s6626_s11 + $0xc0] sm:$0xf] }
 0x149   : > { %v2342_v15 = vor.u32 %v2341_v10, %v2338_v36  ;;  %v8211_v26 = vrot.slane %v2369_v51, 5  ;;  %v2357_v36 = vrot.slane %v2355_v30, 5  ;;  %v2366_v10 = vor.u32 %v2365_v14, %v2362_v9  ;;  %v5230_v51 = vld [vmem:[%s6626_s11 + $0xb4] sm:$0xf] }
 0x14a   : > { %v2386_v18 = vrot.slane %v2384_v21, 4  ;;  %v2421_v21 = vshrl.u32 %v6436_v27, 16  ;;  %v2432_v20 = vshrl.u32 %v5230_v51, 16  ;;  %v2435_v42 = vshll.u32 %v5230_v51, 16 }
 0x14b   : > { %v2343_v52 = vrot.slane %v2342_v15, 4  ;;  %v2358_v46 = vsel %vm6652_vm4, %v2353_v0, %v2357_v36  ;;  %v2367_v15 = vrot.slane %v2366_v10, 4  ;;  %v2405_v30 = vrot.slane %v2403_v7, 5 }
 0x14c   : > { %v2390_v23 = vor.u32 %v2389_v11, %v2386_v18  ;;  %v2410_v9 = vrot.slane %v2408_v61, 4  ;;  %v2423_v11 = vrot.slane %v2421_v21, 4  ;;  %v6440_v61 = vld [vmem:[%s6626_s11 + $0xbc] sm:$0x1] }
 0x14d   : > { %v2348_v47 = vsel %vm6652_vm4, %v2343_v52, %v8191_v24  ;;  %v2372_v0 = vsel %vm6652_vm4, %v2367_v15, %v8211_v26  ;;  %v2451_v22 = vshll.u32 %v6440_v61, 16 }
 0x14e   : > { %5988 = vmatmul.mubr.msk.bf16.gmra.mrb[8].mxu0 %vm725_vm3, %v5518_v40  ;;  %v2397_v40 = vshrl.u32 %v6432_v60, 16  ;;  %v2391_v17 = vrot.slane %v2390_v23, 4  ;;  %v5247_v24 = vcombine.low %v2348_v47, %v2358_v46 }
 0x14f   : > { %5834 = vmatmul.mubr.msk.bf16.gmra.mrb[24].mxu1 %vm725_vm3, %v6382_v2  ;;  %5991 = vmatprep.mubr.msk.bf16.mxu0 %vm725_vm3, %v5519_v54  ;;  %v2375_v54 = vrot.slane %v2373_v28, 4 }
 0x150   : > { %5837 = vmatprep.mubr.msk.bf16.mxu1 %vm725_vm3, %v6383_v34  ;;  %v2399_v2 = vrot.slane %v2397_v40, 4  ;;  %v2379_v34 = vshll.u32 %v6434_v35, 16  ;;  %v2396_v10 = vsel %vm6652_vm4, %v2391_v17, %v8214_v6  ;;  %v2477_v17 = vrot.slane %v2475_v57, 5 }
 0x151   : > { %v2376_v49 = vor.u32 %v2375_v54, %v8211_v26  ;;  %v2413_v54 = vrot.slane %v2411_v45, 5  ;;  %v6438_v26 = vld [vmem:[%s6626_s11 + $0xb0] sm:$0x1] }
 0x152   : > { %v2400_v28 = vor.u32 %v2399_v2, %v8214_v6  ;;  %v2381_v60 = vrot.slane %v2379_v34, 5  ;;  %v2427_v35 = vshll.u32 %v6438_v26, 16  ;;  %v2456_v34 = vshrl.u32 %v5233_v39, 16 }
 0x153   : > { %v2377_v13 = vrot.slane %v2376_v49, 4  ;;  %v2414_v38 = vor.u32 %v2413_v54, %v2410_v9  ;;  %v2459_v6 = vshll.u32 %v5233_v39, 16  ;;  %v6439_v49 = vld [vmem:[%s6626_s11 + $0xc4] sm:$0xf] }
 0x154   : > { %v2401_v14 = vrot.slane %v2400_v28, 4  ;;  %v2465_v23 = vshll.u32 %v6439_v49, 16  ;;  %v2469_v25 = vshrl.u32 %v6439_v49, 16  ;;  %v2429_v45 = vrot.slane %v2427_v35, 5 }
 0x155   : > { %v2382_v36 = vsel %vm6652_vm4, %v2377_v13, %v2381_v60  ;;  %v2415_v51 = vrot.slane %v2414_v38, 4  ;;  %v2453_v60 = vrot.slane %v2451_v22, 5 }
 0x156   : > { %5992 = vmatmul.mubr.msk.bf16.gmra.mrb[12].mxu0 %vm725_vm3, %v5520_v53  ;;  %v2417_v53 = vshll.u32 %v6436_v27, 16  ;;  %v2406_v59 = vsel %vm6652_vm4, %v2401_v14, %v2405_v30  ;;  %v5248_v44 = vcombine.low %v2372_v0, %v2382_v36  ;;  %v2458_v27 = vrot.slane %v2456_v34, 4 }
 0x157   : > { %5838 = vmatmul.mubr.msk.bf16.gmra.mrb[28].mxu1 %vm725_vm3, %v6384_v19  ;;  %5995 = vmatprep.mubr.msk.bf16.mxu0 %vm725_vm3, %v5521_v33  ;;  %v6437_v33 = vld [vmem:[%s6626_s11 + $0xb8] sm:$0xf]  ;;  %v2434_v19 = vrot.slane %v2432_v20, 4  ;;  %v2467_v21 = vrot.slane %v2465_v23, 5  ;;  %v2471_v47 = vrot.slane %v2469_v25, 4 }
 0x158   : > { %5859 = vmatprep.mubr.msk.bf16.mxu1 %vm725_vm3, %v5245_v41  ;;  %v2441_v12 = vshll.u32 %v6437_v33, 16  ;;  %v2445_v40 = vshrl.u32 %v6437_v33, 16  ;;  %v2419_v18 = vrot.slane %v2417_v53, 5  ;;  %v2437_v41 = vrot.slane %v2435_v42, 5 }
 0x159   : > { %v2461_v53 = vrot.slane %v2459_v6, 5 }
 0x15a   : > { %v2443_v52 = vrot.slane %v2441_v12, 5  ;;  %v2447_v2 = vrot.slane %v2445_v40, 4  ;;  %v2420_v20 = vsel %vm6652_vm4, %v2415_v51, %v2419_v18  ;;  %v2472_v12 = vor.u32 %v2471_v47, %v2467_v21 }
 0x15b   : > { %v2462_v33 = vor.u32 %v2461_v53, %v2458_v27 }
 0x15c   : > { %v2448_v7 = vor.u32 %v2447_v2, %v2443_v52  ;;  %v2473_v13 = vrot.slane %v2472_v12, 4  ;;  %v8308_v2 = vld [vmem:[%s8435_s2] ss:$0 sm:$0xff] }
 0x15d   : > { %v2463_v40 = vrot.slane %v2462_v33, 4 }
 0x15e   : > { %5996 = vmatmul.mubr.msk.bf16.gmra.mrb[16].mxu0 %vm725_vm3, %v5522_v37  ;;  %v2424_v37 = vor.u32 %v2423_v11, %v2419_v18  ;;  %v2449_v15 = vrot.slane %v2448_v7, 4  ;;  %v2478_v9 = vsel %vm6652_vm4, %v2473_v13, %v2477_v17 }
 0x15f   : > { %5860 = vmatmul.mubr.msk.bf16.vlgmr.msra.gmra.mrb[16].mxu1 %vm725_vm3, %v8020_v1  ;;  %5999 = vmatprep.mubr.msk.bf16.mxu0 %vm725_vm3, %v5523_v3  ;;  %v2438_v1 = vor.u32 %v2437_v41, %v2434_v19  ;;  %v5249_v3 = vcombine.low %v2396_v10, %v2406_v59  ;;  %v2468_v30 = vsel %vm6652_vm4, %v2463_v40, %v2467_v21 }
 0x160   : > { %5863 = vmatprep.mubr.msk.bf16.mxu1 %vm725_vm3, %v5247_v24  ;;  %v2425_v28 = vrot.slane %v2424_v37, 4  ;;  %v2454_v48 = vsel %vm6652_vm4, %v2449_v15, %v2453_v60  ;;  %v5252_v14 = vcombine.low %v2468_v30, %v2478_v9 }
 0x161   : > { %v2439_v46 = vrot.slane %v2438_v1, 4 }
 0x162   : > { %v2430_v42 = vsel %vm6652_vm4, %v2425_v28, %v2429_v45 }
 0x163   : > { %v5250_v62 = vcombine.low %v2420_v20, %v2430_v42 }
 0x166   : > { %6000 = vmatmul.mubr.msk.bf16.gmra.mrb[20].mxu0 %vm725_vm3, %v5524_v8  ;;  %v2444_v8 = vsel %vm6652_vm4, %v2439_v46, %v2443_v52 }
 0x167   : > { %5864 = vmatmul.mubr.msk.bf16.gmra.mrb[20].mxu1 %vm725_vm3, %v5248_v44  ;;  %6003 = vmatprep.mubr.msk.bf16.mxu0 %vm725_vm3, %v5525_v56  ;;  %v5251_v56 = vcombine.low %v2444_v8, %v2454_v48 }
 0x168   : > { %5867 = vmatprep.mubr.msk.bf16.mxu1 %vm725_vm3, %v5249_v3 }
 0x16e   : > { %6004 = vmatmul.mubr.msk.bf16.gmra.mrb[24].mxu0 %vm725_vm3, %v5526_v43 }
 0x16f   : > { %5868 = vmatmul.mubr.msk.bf16.gmra.mrb[24].mxu1 %vm725_vm3, %v5250_v62  ;;  %6007 = vmatprep.mubr.msk.bf16.mxu0 %vm725_vm3, %v5527_v50 }
 0x170   : > { %5871 = vmatprep.mubr.msk.bf16.mxu1 %vm725_vm3, %v5251_v56 }
 0x176   : > { %6008 = vmatmul.mubr.msk.bf16.gmra.mrb[28].mxu0 %vm725_vm3, %v5528_v29 }
 0x177   : > { %5872 = vmatmul.mubr.msk.bf16.gmra.mrb[28].mxu1 %vm725_vm3, %v5252_v14 }
 0x1f2   : > { %v5811_v63 = vpop.f32.mrb[0].mxu1 }
 0x1f3   : > { %v1888_v4 = vpop.f32.mrb[1].mxu1 }
 0x1f4   : > { %v5812_v43 = vpop.f32.mrb[2].mxu1 }
 0x1f5   : > { %v1891_v16 = vpop.f32.mrb[3].mxu1 }
 0x1fa   : > { %v5815_v58 = vpop.f32.mrb[4].mxu1 }
 0x1fb   : > { %v1904_v50 = vpop.f32.mrb[5].mxu1 }
 0x1fc   : > { %v5816_v54 = vpop.f32.mrb[6].mxu1 }
 0x1fd   : > { %v1907_v18 = vpop.f32.mrb[7].mxu1 }
 0x202   : > { %v5819_v32 = vpop.f32.mrb[8].mxu1 }
 0x203   : > { %v1920_v11 = vpop.f32.mrb[9].mxu1 }
 0x204   : > { %v5820_v24 = vpop.f32.mrb[10].mxu1 }
 0x205   : > { %v1923_v19 = vpop.f32.mrb[11].mxu1 }
 0x20a   : > { %v5823_v41 = vpop.f32.mrb[12].mxu1 }
 0x20b   : > { %v1936_v5 = vpop.f32.mrb[13].mxu1 }
 0x20c   : > { %v5824_v55 = vpop.f32.mrb[14].mxu1 }
 0x20d   : > { %v1939_v29 = vpop.f32.mrb[15].mxu1 }
 0x211   : > { %v5981_v52 = vpop.f32.mrb[0].mxu0 }
 0x212   : > { %v6013_v39 = vadd.f32 %v5981_v52, %v5811_v63  ;;  %v4639_v0 = vpop.f32.mrb[1].mxu0 }
 0x213   : > { %v6014_v36 = vadd.f32 %v4639_v0, %v1888_v4  ;;  %v5982_v10 = vpop.f32.mrb[2].mxu0 }
 0x214   : > { %v4807_v59 = vadd.f32 %v6013_v39, %v8308_v2  ;;  %v6015_v38 = vadd.f32 %v5982_v10, %v5812_v43  ;;  %v4642_v37 = vpop.f32.mrb[3].mxu0 }
 0x215   : > { %v4805_v26 = vadd.f32 %v6014_v36, %v8308_v2  ;;  %v6016_v35 = vadd.f32 %v4642_v37, %v1891_v16 }
 0x216   : > { %4839 = vst [vmem:[%s8312_s19 + $0x10] sm:$0xff] %v4807_v59  ;;  %v4808_v34 = vadd.f32 %v6015_v38, %v8308_v2 }
 0x217   : > { %4837 = vst [vmem:[%s8312_s19] sm:$0xff] %v4805_v26  ;;  %v4806_v6 = vadd.f32 %v6016_v35, %v8308_v2 }
 0x218   : > { %4840 = vst [vmem:[%s8312_s19 + $0x18] sm:$0xff] %v4808_v34 }
 0x219   : > { %4838 = vst [vmem:[%s8312_s19 + $0x8] sm:$0xff] %v4806_v6  ;;  %v5985_v49 = vpop.f32.mrb[4].mxu0 }
 0x21a   : > { %v6017_v23 = vadd.f32 %v5985_v49, %v5815_v58  ;;  %v4655_v25 = vpop.f32.mrb[5].mxu0 }
 0x21b   : > { %v6018_v1 = vadd.f32 %v4655_v25, %v1904_v50  ;;  %v5986_v7 = vpop.f32.mrb[6].mxu0 }
 0x21c   : > { %v4811_v61 = vadd.f32 %v6017_v23, %v8308_v2  ;;  %v6019_v22 = vadd.f32 %v5986_v7, %v5816_v54  ;;  %v4658_v44 = vpop.f32.mrb[7].mxu0 }
 0x21d   : > { %v4809_v3 = vadd.f32 %v6018_v1, %v8308_v2  ;;  %v6020_v51 = vadd.f32 %v4658_v44, %v1907_v18 }
 0x21e   : > { %4843 = vst [vmem:[%s8312_s19 + $0x30] sm:$0xff] %v4811_v61  ;;  %v4812_v28 = vadd.f32 %v6019_v22, %v8308_v2 }
 0x21f   : > { %4841 = vst [vmem:[%s8312_s19 + $0x20] sm:$0xff] %v4809_v3  ;;  %v4810_v45 = vadd.f32 %v6020_v51, %v8308_v2 }
 0x220   : > { %4844 = vst [vmem:[%s8312_s19 + $0x38] sm:$0xff] %v4812_v28 }
 0x221   : > { %4842 = vst [vmem:[%s8312_s19 + $0x28] sm:$0xff] %v4810_v45  ;;  %v5989_v27 = vpop.f32.mrb[8].mxu0 }
 0x222   : > { %v6021_v53 = vadd.f32 %v5989_v27, %v5819_v32  ;;  %v4671_v21 = vpop.f32.mrb[9].mxu0 }
 0x223   : > { %v6022_v47 = vadd.f32 %v4671_v21, %v1920_v11  ;;  %v5990_v46 = vpop.f32.mrb[10].mxu0 }
 0x224   : > { %v4815_v15 = vadd.f32 %v6021_v53, %v8308_v2  ;;  %v6023_v60 = vadd.f32 %v5990_v46, %v5820_v24  ;;  %v4674_v20 = vpop.f32.mrb[11].mxu0 }
 0x225   : > { %v4813_v42 = vadd.f32 %v6022_v47, %v8308_v2  ;;  %v6024_v33 = vadd.f32 %v4674_v20, %v1923_v19 }
 0x226   : > { %4847 = vst [vmem:[%s8312_s19 + $0x50] sm:$0xff] %v4815_v15  ;;  %v4816_v12 = vadd.f32 %v6023_v60, %v8308_v2 }
 0x227   : > { %4845 = vst [vmem:[%s8312_s19 + $0x40] sm:$0xff] %v4813_v42  ;;  %v4814_v31 = vadd.f32 %v6024_v33, %v8308_v2 }
 0x228   : > { %4848 = vst [vmem:[%s8312_s19 + $0x58] sm:$0xff] %v4816_v12 }
 0x229   : > { %4846 = vst [vmem:[%s8312_s19 + $0x48] sm:$0xff] %v4814_v31  ;;  %v5993_v57 = vpop.f32.mrb[12].mxu0 }
 0x22a   : > { %v6025_v8 = vadd.f32 %v5993_v57, %v5823_v41  ;;  %v4687_v48 = vpop.f32.mrb[13].mxu0 }
 0x22b   : > { %v6026_v62 = vadd.f32 %v4687_v48, %v1936_v5  ;;  %v5994_v56 = vpop.f32.mrb[14].mxu0 }
 0x22c   : > { %v4819_v40 = vadd.f32 %v6025_v8, %v8308_v2  ;;  %v6027_v13 = vadd.f32 %v5994_v56, %v5824_v55  ;;  %v4690_v17 = vpop.f32.mrb[15].mxu0 }
 0x22d   : > { %v4817_v30 = vadd.f32 %v6026_v62, %v8308_v2  ;;  %v6028_v9 = vadd.f32 %v4690_v17, %v1939_v29 }
 0x22e   : > { %4851 = vst [vmem:[%s8312_s19 + $0x70] sm:$0xff] %v4819_v40  ;;  %v4820_v14 = vadd.f32 %v6027_v13, %v8308_v2 }
 0x22f   : > { %4849 = vst [vmem:[%s8312_s19 + $0x60] sm:$0xff] %v4817_v30  ;;  %v4818_v63 = vadd.f32 %v6028_v9, %v8308_v2 }
 0x230   : > { %4852 = vst [vmem:[%s8312_s19 + $0x78] sm:$0xff] %v4820_v14 }
 0x231   : > { %4850 = vst [vmem:[%s8312_s19 + $0x68] sm:$0xff] %v4818_v63  ;;  %v5997_v4 = vpop.f32.mrb[16].mxu0 }
 0x232   : > { %v5861_v43 = vpop.f32.mrb[16].mxu1  ;;  %v4703_v16 = vpop.f32.mrb[17].mxu0 }
 0x233   : > { %v6029_v58 = vadd.f32 %v5997_v4, %v5861_v43  ;;  %v2678_v50 = vpop.f32.mrb[17].mxu1  ;;  %v5998_v54 = vpop.f32.mrb[18].mxu0 }
 0x234   : > { %v6030_v18 = vadd.f32 %v4703_v16, %v2678_v50  ;;  %v5862_v32 = vpop.f32.mrb[18].mxu1  ;;  %v4706_v11 = vpop.f32.mrb[19].mxu0 }
 0x235   : > { %v4823_v24 = vadd.f32 %v6029_v58, %v8308_v2  ;;  %v6031_v19 = vadd.f32 %v5998_v54, %v5862_v32  ;;  %v2681_v41 = vpop.f32.mrb[19].mxu1 }
 0x236   : > { %v4821_v5 = vadd.f32 %v6030_v18, %v8308_v2  ;;  %v6032_v55 = vadd.f32 %v4706_v11, %v2681_v41 }
 0x237   : > { %4855 = vst [vmem:[%s8312_s19 + $0x90] sm:$0xff] %v4823_v24  ;;  %v4824_v29 = vadd.f32 %v6031_v19, %v8308_v2 }
 0x238   : > { %4853 = vst [vmem:[%s8312_s19 + $0x80] sm:$0xff] %v4821_v5  ;;  %v4822_v52 = vadd.f32 %v6032_v55, %v8308_v2 }
 0x239   : > { %4856 = vst [vmem:[%s8312_s19 + $0x98] sm:$0xff] %v4824_v29  ;;  %v6001_v39 = vpop.f32.mrb[20].mxu0 }
 0x23a   : > { %4854 = vst [vmem:[%s8312_s19 + $0x88] sm:$0xff] %v4822_v52  ;;  %v5865_v0 = vpop.f32.mrb[20].mxu1  ;;  %v4719_v36 = vpop.f32.mrb[21].mxu0 }
 0x23b   : > { %v6033_v10 = vadd.f32 %v6001_v39, %v5865_v0  ;;  %v2694_v59 = vpop.f32.mrb[21].mxu1  ;;  %v6002_v38 = vpop.f32.mrb[22].mxu0 }
 0x23c   : > { %v6034_v37 = vadd.f32 %v4719_v36, %v2694_v59  ;;  %v5866_v26 = vpop.f32.mrb[22].mxu1  ;;  %v4722_v35 = vpop.f32.mrb[23].mxu0 }
 0x23d   : > { %v4827_v34 = vadd.f32 %v6033_v10, %v8308_v2  ;;  %v6035_v6 = vadd.f32 %v6002_v38, %v5866_v26  ;;  %v2697_v49 = vpop.f32.mrb[23].mxu1 }
 0x23e   : > { %v4825_v23 = vadd.f32 %v6034_v37, %v8308_v2  ;;  %v6036_v25 = vadd.f32 %v4722_v35, %v2697_v49 }
 0x23f   : > { %4859 = vst [vmem:[%s8312_s19 + $0xb0] sm:$0xff] %v4827_v34  ;;  %v4828_v1 = vadd.f32 %v6035_v6, %v8308_v2 }
 0x240   : > { %4857 = vst [vmem:[%s8312_s19 + $0xa0] sm:$0xff] %v4825_v23  ;;  %v4826_v7 = vadd.f32 %v6036_v25, %v8308_v2 }
 0x241   : > { %4860 = vst [vmem:[%s8312_s19 + $0xb8] sm:$0xff] %v4828_v1  ;;  %v6005_v61 = vpop.f32.mrb[24].mxu0 }
 0x242   : > { %4858 = vst [vmem:[%s8312_s19 + $0xa8] sm:$0xff] %v4826_v7  ;;  %v5869_v22 = vpop.f32.mrb[24].mxu1  ;;  %v4735_v44 = vpop.f32.mrb[25].mxu0 }
 0x243   : > { %v6037_v3 = vadd.f32 %v6005_v61, %v5869_v22  ;;  %v2710_v51 = vpop.f32.mrb[25].mxu1  ;;  %v6006_v28 = vpop.f32.mrb[26].mxu0 }
 0x244   : > { %v6038_v45 = vadd.f32 %v4735_v44, %v2710_v51  ;;  %v5870_v27 = vpop.f32.mrb[26].mxu1  ;;  %v4738_v53 = vpop.f32.mrb[27].mxu0 }
 0x245   : > { %v4831_v21 = vadd.f32 %v6037_v3, %v8308_v2  ;;  %v6039_v47 = vadd.f32 %v6006_v28, %v5870_v27  ;;  %v2713_v46 = vpop.f32.mrb[27].mxu1 }
 0x246   : > { %v4829_v15 = vadd.f32 %v6038_v45, %v8308_v2  ;;  %v6040_v60 = vadd.f32 %v4738_v53, %v2713_v46 }
 0x247   : > { %4863 = vst [vmem:[%s8312_s19 + $0xd0] sm:$0xff] %v4831_v21  ;;  %v4832_v20 = vadd.f32 %v6039_v47, %v8308_v2 }
 0x248   : > { %4861 = vst [vmem:[%s8312_s19 + $0xc0] sm:$0xff] %v4829_v15  ;;  %v4830_v42 = vadd.f32 %v6040_v60, %v8308_v2 }
 0x249   : > { %4864 = vst [vmem:[%s8312_s19 + $0xd8] sm:$0xff] %v4832_v20  ;;  %v6009_v33 = vpop.f32.mrb[28].mxu0 }
 0x24a   : > { %4862 = vst [vmem:[%s8312_s19 + $0xc8] sm:$0xff] %v4830_v42  ;;  %v5873_v12 = vpop.f32.mrb[28].mxu1  ;;  %v4751_v31 = vpop.f32.mrb[29].mxu0 }
 0x24b   : > { %v6041_v57 = vadd.f32 %v6009_v33, %v5873_v12  ;;  %v2726_v8 = vpop.f32.mrb[29].mxu1  ;;  %v6010_v48 = vpop.f32.mrb[30].mxu0 }
 0x24c   : > { %v6042_v62 = vadd.f32 %v4751_v31, %v2726_v8  ;;  %v5874_v56 = vpop.f32.mrb[30].mxu1  ;;  %v4754_v40 = vpop.f32.mrb[31].mxu0 }
 0x24d   : > { %v4835_v13 = vadd.f32 %v6041_v57, %v8308_v2  ;;  %v6043_v17 = vadd.f32 %v6010_v48, %v5874_v56  ;;  %v2729_v30 = vpop.f32.mrb[31].mxu1 }
 0x24e   : > { %v4833_v9 = vadd.f32 %v6042_v62, %v8308_v2  ;;  %v6044_v14 = vadd.f32 %v4754_v40, %v2729_v30 }
 0x24f   : > { %4867 = vst [vmem:[%s8312_s19 + $0xf0] sm:$0xff] %v4835_v13  ;;  %v4836_v63 = vadd.f32 %v6043_v17, %v8308_v2 }
 0x250   : > { %4865 = vst [vmem:[%s8312_s19 + $0xe0] sm:$0xff] %v4833_v9  ;;  %v4834_v4 = vadd.f32 %v6044_v14, %v8308_v2 }
 0x251   : > { %4868 = vst [vmem:[%s8312_s19 + $0xf8] sm:$0xff] %v4836_v63 }
 0x252   : > { %4866 = vst [vmem:[%s8312_s19 + $0xe8] sm:$0xff] %v4834_v4 }
 0x253   : > { %6455 = shalt.err (!%p6452_p5)
}
 0x254   : > { %s6456_s6 = scalar_lea.hbm %s8377_s28, 4096  ;;  %s6460_s9 = scalar_lea.hbm %s8436_s3, 8192 }
 0x255   : > { %p6457_p6 = scmp.ne.s32.totalorder %s8377_s28, %s6456_s6  ;;  %p6461_p10 = scmp.lt.u32.totalorder %s8377_s28, %s8436_s3 }
 0x256   : > { %p6462_p11 = scmp.lt.u32.totalorder %s6460_s9, %s6456_s6  ;;  %p6464_p13 = scmp.lt.u32.totalorder %s6456_s6, %s8377_s28 }
 0x257   : > { %p6458_p7 = pnand %p6457_p6, %p6585_p4 }
 0x258   : > { %p6463_p12 = por %p6462_p11, %p6461_p10 }
 0x259   : > { %p6459_p9 = pneg %p6458_p7 }
 0x25a   : > { %p6465_p0 = por %p6464_p13, %p6463_p12 }
 0x25c   : > { %p6466_p1 = pnand %p6465_p0, %p6459_p9 }
 0x25e   : > { %6469 = shalt.err (!%p6466_p1)
}
 0x25f   : > { %s6523_s18 = smov 128   ;;  %s6524_s19 = smov 8  }
 0x260   : > { %6280 = dma.vmem_to_hbm [thread:$0]  (%p6585_p4), %s8379_s23, 4096, %s8377_s28, %s8387_s15, %s6523_s18, %s6523_s18, %s6524_s19  }
 0x261 PF: > { %p6286_p2 = scmp.ge.s32.totalorder %s6520_s17, 2  ;;  %s4902_s21 = sand.u32 1, %s6500_s12  }
 0x262   : > { %s4903_s26 = scalar_lea.sflag [#allocation3], %s4902_s21 }
 0x263   : > { %p6283_p3 = pnand %p6286_p2, %p6592_p8 }
 0x265   : > { %6495 = dma.done.wait (!%p6283_p3), %s4903_s26, 4096  }
 0x266   : > { %6497 = vsyncadd (!%p6283_p3), %s4903_s26, 4294963200  ;;  %s16_s17 = sadd.s32 1, %s6520_s17   ;;  %s8506_s12 = smov %s6504_s13 }
 0x267   : > { %p13_p5 = scmp.ge.s32.totalorder %s16_s17, 4   ;;  %s8507_s13 = smov %s6508_s14 }
 0x268   : > { %s8508_s14 = smov %s6598_s25  ;;  %s8509_s15 = smov %s6516_s16 }
 0x269   : > { %s8510_s16 = smov %s8512_s20  ;;  %15 = sbr.rel (!%p13_p5) target bundleno = 4 (0x4), region = 83 }
 0x270   :  { %4908 = vsyncpa [#allocation3], 1 }
 0x271   :  { %4910 = vsyncpa [#allocation3 + $0x1], 1 }

</bundles_post_ra>
